<compile_context>
chip_gen: v5e
topology: v5e:2x2
jax: 0.10.0
libtpu: 0.0.40
codegen_flags: <defaults>
</compile_context>

<pallas_src>
import math
import functools

import jax
import jax.numpy as jnp
import numpy as np
from jax.experimental import pallas as pl
from jax.experimental.pallas import tpu as pltpu


# ----------------------------------------------------------------------------
# Positional embedding (pure-JAX glue; elementwise prep, not the hot path).
# ----------------------------------------------------------------------------
def positional_embedding(bbox_coor, dim_g=128, wave_len=1000.0):
    # bbox_coor: (1, N, 5) ; column 0 is a batch index, columns 1:5 are coords.
    bbox = bbox_coor[0]                      # squeeze(0)
    bbox = bbox[:, 1:]                       # (N, 4)
    x_min, y_min, x_max, y_max = jnp.split(bbox, 4, axis=1)   # each (N, 1)
    cx = (x_min + x_max) * 0.5
    cy = (y_min + y_max) * 0.5
    w = jnp.maximum(x_max - x_min, 1e-4)
    h = jnp.maximum(y_max - y_min, 1e-4)

    delta_x = jnp.log(jnp.maximum(jnp.abs((cx - cx.reshape(1, -1)) / w), 1e-3))
    delta_y = jnp.log(jnp.maximum(jnp.abs((cy - cy.reshape(1, -1)) / h), 1e-3))
    delta_w = jnp.log(w / w.reshape(1, -1))
    delta_h = jnp.log(h / h.reshape(1, -1))

    n = delta_h.shape[0]
    position_mat = jnp.stack([delta_x, delta_y, delta_w, delta_h], axis=-1)  # (N,N,4)

    feat_range = jnp.arange(dim_g // 8, dtype=jnp.float32)                   # (16,)
    dim_mat = 1.0 / jnp.power(wave_len, feat_range / (dim_g / 8.0))          # (16,)
    dim_mat = dim_mat.reshape(1, 1, 1, -1)

    position_mat = 100.0 * position_mat.reshape(n, n, 4, 1)
    mul_mat = (position_mat * dim_mat).reshape(n, n, -1)                     # (N,N,64)
    embedding = jnp.concatenate([jnp.sin(mul_mat), jnp.cos(mul_mat)], axis=-1)
    return embedding                                                         # (N,N,128)


# ----------------------------------------------------------------------------
# Pallas kernel: one *group* of relation units per grid step (default: all R).
# ----------------------------------------------------------------------------
def relation_group_kernel(app_ref, gate_ref,
                          qkv_w_ref, qkv_b_ref,
                          vecp_ref,            # (4, rg*K): [ln_g, ln_b, w1_b, w2_b]
                          w1_ref, w2_ref,      # block-diagonal (rg*K, rg*K) bf16
                          out_ref):
    rg = gate_ref.shape[0]                     # relations handled this grid step
    dim_k = vecp_ref.shape[-1] // rg
    inv_sqrt_dk = 1.0 / math.sqrt(dim_k)

    app = app_ref[...]                                         # (N, A) bf16

    # Fused Q/K/V projection for all relations of this group:
    # one wide, lane-dense MXU matmul instead of 3*rg narrow ones.
    qkv = jnp.dot(app, qkv_w_ref[...],
                  preferred_element_type=jnp.float32)          # (N, rg*3K) f32
    qkv = qkv + qkv_b_ref[...]

    norms = []
    # Static unrolled loop is fine at rg<=4; switch to lax.fori_loop(unroll=True)
    # if R grows and the bundle dump shows vreg spills.
    for r in range(rg):
        base = 3 * r * dim_k
        w_q = qkv[:, base:base + dim_k]                        # (N, K)
        w_k = qkv[:, base + dim_k:base + 2 * dim_k]            # (N, K)
        w_v = qkv[:, base + 2 * dim_k:base + 3 * dim_k]        # (N, K)

        # q @ k^T : contract lane dims directly (implicit XLU transpose, free).
        scaled_dot = jax.lax.dot_general(
            w_q, w_k, (((1,), (1,)), ((), ())),
            preferred_element_type=jnp.float32) * inv_sqrt_dk  # (N, N)

        # Geometric gate relu(WG(pos_emb)) is precomputed in the wrapper (bf16).
        logits = scaled_dot + gate_ref[r].astype(jnp.float32)
        logits = logits - jnp.max(logits, axis=1, keepdims=True)
        p = jnp.exp(logits)
        denom = jnp.sum(p, axis=1, keepdims=True)
        p = p * pl.reciprocal(denom, approx=True)              # EUP slot, ~free

        attention = jnp.dot(p, w_v, preferred_element_type=jnp.float32)  # (N, K)

        # LayerNorm stats (eps = 1e-6, biased variance); affine applied after
        # the lane-concat so gamma/beta come from one packed row.
        mean = jnp.mean(attention, axis=-1, keepdims=True)
        centered = attention - mean
        var = jnp.mean(centered * centered, axis=-1, keepdims=True)
        norms.append(centered * jax.lax.rsqrt(var + 1e-6))

    vp = vecp_ref[...]                                         # (4, rg*K) f32
    norm_all = jnp.concatenate(norms, axis=-1)                 # (N, rg*K)
    norm_all = norm_all * vp[0:1] + vp[1:2]                    # LN gamma / beta

    # Output MLP fused across relations via block-diagonal W1/W2:
    # two wide lane-dense MXU matmuls instead of 2*rg (M=16) tiny ones.
    hidden = jnp.dot(norm_all.astype(jnp.bfloat16), w1_ref[...],
                     preferred_element_type=jnp.float32) + vp[2:3]
    hidden = jnp.maximum(hidden, 0.0)
    out = jnp.dot(hidden.astype(jnp.bfloat16), w2_ref[...],
                  preferred_element_type=jnp.float32) + vp[3:4]

    # Direct write into the (N, R*K) output layout; lane-dense store.
    out_ref[...] = out.astype(out_ref.dtype)


# ----------------------------------------------------------------------------
# Param packing (done once): fuse Q/K/V weights along the output dim, pack the
# small per-relation vectors into one array, build block-diagonal W1/W2.
# ----------------------------------------------------------------------------
def _block_diag(w):
    # w: (R, K, K) -> (R*K, R*K) block-diagonal (runs once, outside jit).
    R, K, _ = w.shape
    bd = jnp.zeros((R * K, R * K), w.dtype)
    for r in range(R):
        bd = bd.at[r * K:(r + 1) * K, r * K:(r + 1) * K].set(w[r])
    return bd


def pack_params(params):
    R, A, K = params["wq_w"].shape
    qkv_w = jnp.concatenate(
        [params["wq_w"], params["wk_w"], params["wv_w"]], axis=-1)   # (R, A, 3K) bf16
    qkv_w = jnp.transpose(qkv_w, (1, 0, 2)).reshape(A, R * 3 * K)    # (A, R*3K)
    qkv_b = jnp.concatenate(
        [params["wq_b"], params["wk_b"], params["wv_b"]], axis=-1)   # (R, 1, 3K) f32
    qkv_b = jnp.transpose(qkv_b, (1, 0, 2)).reshape(1, R * 3 * K)    # (1, R*3K)

    # Small per-relation vectors packed in the concatenated (N, R*K) layout.
    vec_params = jnp.stack([
        params["ln_g"][:, 0, :].reshape(-1),
        params["ln_b"][:, 0, :].reshape(-1),
        params["w1_b"][:, 0, :].reshape(-1),
        params["w2_b"][:, 0, :].reshape(-1),
    ], axis=0).astype(jnp.float32)                                   # (4, R*K)

    return {
        "qkv_w": qkv_w, "qkv_b": qkv_b,
        "vec_params": vec_params,
        "w1_bd": _block_diag(params["w1_w"]).astype(jnp.bfloat16),   # (R*K, R*K)
        "w2_bd": _block_diag(params["w2_w"]).astype(jnp.bfloat16),   # (R*K, R*K)
        "wg_w": params["wg_w"][:, 0, :],                             # (R, G)
        "wg_b": params["wg_b"][:, 0, 0],                             # (R,)
    }


# ----------------------------------------------------------------------------
# Wrapper: precompute gate, single pallas_call (default: one grid step).
# ----------------------------------------------------------------------------
def relation_module_forward(app_feature, bbox_coordinates, packed, num_groups=1):
    # num_groups=1: single grid step (best on 1-TC v5e/v6e; overhead-bound op).
    # num_groups=2: one relation group per TensorCore on v7x (measure first).
    pos_emb = positional_embedding(bbox_coordinates)         # (N, N, G)
    N, A = app_feature.shape
    R = packed["wg_w"].shape[0]
    K = packed["vec_params"].shape[1] // R

    # Geometric gate relu(WG(pos_emb)) for all relations: (R, N, N) in bf16
    # (the only O(N^2) input); keeps the (N, N, G) tensor out of the kernel.
    gate = jnp.einsum("nmg,rg->rnm", pos_emb, packed["wg_w"])
    gate = jax.nn.relu(gate + packed["wg_b"].reshape(R, 1, 1)).astype(jnp.bfloat16)
    # TODO(synk): if N is scaled up, tile the key axis of `gate` (flash-style)
    # so the (rg, N, N) block fits v7x's 64 MiB VMEM.

    app_bf16 = app_feature.astype(jnp.bfloat16)               # pre-cast (halve DMA)

    rg = R // num_groups
    assert rg * num_groups == R

    def _nbytes(shape, dtype):
        return int(np.prod(shape)) * jnp.dtype(dtype).itemsize

    flops = int(2 * N * A * (R * 3 * K)                # fused QKV
                + R * (2 * N * N * K)                  # q @ k^T
                + R * (2 * N * N * K)                  # p @ v
                + 2 * (2 * N * (R * K) * (R * K)))     # block-diag MLP (2 matmuls)
    transcendentals = int(R * N * N)                   # softmax exp
    bytes_accessed = (
        _nbytes((N, A), jnp.bfloat16) + _nbytes((R, N, N), jnp.bfloat16)
        + _nbytes((A, R * 3 * K), jnp.bfloat16) + _nbytes((1, R * 3 * K), jnp.float32)
        + _nbytes((4, R * K), jnp.float32) + 2 * _nbytes((R * K, R * K), jnp.bfloat16)
        + _nbytes((N, R * K), jnp.float32))

    out = pl.pallas_call(
        relation_group_kernel,
        out_shape=jax.ShapeDtypeStruct((N, R * K), jnp.float32),
        grid_spec=pltpu.PrefetchScalarGridSpec(
            num_scalar_prefetch=0,
            grid=(num_groups,),
            in_specs=[
                pl.BlockSpec((N, A), lambda g: (0, 0)),              # app feature (bf16)
                pl.BlockSpec((rg, N, N), lambda g: (g, 0, 0)),       # precomputed gate (bf16)
                pl.BlockSpec((A, rg * 3 * K), lambda g: (0, g)),     # fused QKV weight
                pl.BlockSpec((1, rg * 3 * K), lambda g: (0, g)),     # fused QKV bias
                pl.BlockSpec((4, rg * K), lambda g: (0, g)),         # [ln_g, ln_b, w1_b, w2_b]
                pl.BlockSpec((rg * K, rg * K), lambda g: (g, g)),    # block-diag W1
                pl.BlockSpec((rg * K, rg * K), lambda g: (g, g)),    # block-diag W2
            ],
            out_specs=pl.BlockSpec((N, rg * K), lambda g: (0, g)),   # direct (N, R*K)
        ),
        compiler_params=pltpu.CompilerParams(
            dimension_semantics=("parallel",)),
        cost_estimate=pl.CostEstimate(
            flops=flops, transcendentals=transcendentals,
            bytes_accessed=bytes_accessed),
    )(
        app_bf16, gate,
        packed["qkv_w"], packed["qkv_b"],
        packed["vec_params"],
        packed["w1_bd"], packed["w2_bd"],
    )
    return out                                                # (N, R*K)


# ----------------------------------------------------------------------------
# Pure-JAX reference (per-relation loop, same math/precision as the kernel).
# ----------------------------------------------------------------------------
def reference_forward(app_feature, bbox_coordinates, params):
    pos_emb = positional_embedding(bbox_coordinates)
    R, _, K = params["wq_w"].shape
    app16 = app_feature.astype(jnp.bfloat16)
    outs = []
    for r in range(R):
        wq = jnp.dot(app16, params["wq_w"][r], preferred_element_type=jnp.float32) + params["wq_b"][r, 0]
        wk = jnp.dot(app16, params["wk_w"][r], preferred_element_type=jnp.float32) + params["wk_b"][r, 0]
        wv = jnp.dot(app16, params["wv_w"][r], preferred_element_type=jnp.float32) + params["wv_b"][r, 0]
        scaled = (wq @ wk.T) / np.sqrt(K)
        wg = jax.nn.relu(pos_emb @ params["wg_w"][r, 0] + params["wg_b"][r, 0, 0])
        wmn = jax.nn.softmax(scaled + wg, axis=1)
        attn = wmn @ wv
        mean = attn.mean(-1, keepdims=True)
        var = ((attn - mean) ** 2).mean(-1, keepdims=True)
        norm = (attn - mean) / jnp.sqrt(var + 1e-6)
        norm = norm * params["ln_g"][r, 0] + params["ln_b"][r, 0]
        h = jax.nn.relu(jnp.dot(norm.astype(jnp.bfloat16), params["w1_w"][r],
                                preferred_element_type=jnp.float32) + params["w1_b"][r, 0])
        outs.append(jnp.dot(h.astype(jnp.bfloat16), params["w2_w"][r],
                            preferred_element_type=jnp.float32) + params["w2_b"][r, 0])
    return jnp.concatenate(outs, axis=-1)


def init_params(key, R, A, K, G):
    ks = jax.random.split(key, 10)
    f32, bf16 = jnp.float32, jnp.bfloat16
    return {
        # projection / MLP weights stored in bf16 (halves weight DMA);
        # biases / LayerNorm / gate params stay f32.
        "wq_w": (jax.random.normal(ks[0], (R, A, K), f32) * 0.02).astype(bf16),
        "wq_b": jax.random.normal(ks[1], (R, 1, K), f32) * 0.01,
        "wk_w": (jax.random.normal(ks[2], (R, A, K), f32) * 0.02).astype(bf16),
        "wk_b": jax.random.normal(ks[3], (R, 1, K), f32) * 0.01,
        "wv_w": (jax.random.normal(ks[4], (R, A, K), f32) * 0.02).astype(bf16),
        "wv_b": jax.random.normal(ks[5], (R, 1, K), f32) * 0.01,
        "wg_w": jax.random.normal(ks[6], (R, 1, G), f32) * 0.02,
        "wg_b": jnp.full((R, 1, 1), 0.1, f32),
        "ln_g": jnp.ones((R, 1, K), f32),
        "ln_b": jnp.zeros((R, 1, K), f32),
        "w1_w": (jax.random.normal(ks[7], (R, K, K), f32) * 0.05).astype(bf16),
        "w1_b": jax.random.normal(ks[8], (R, 1, K), f32) * 0.01,
        "w2_w": (jax.random.normal(ks[9], (R, K, K), f32) * 0.05).astype(bf16),
        "w2_b": jnp.zeros((R, 1, K), f32),
    }


if __name__ == "__main__":
    # Small shapes: N=16 proposals, appearance dim A=256, key dim K=128,
    # geometric dim G=128 (forced by PositionalEmbedding), R=4 relation heads.
    N, A, K, G, R = 16, 256, 128, 128, 4

    key = jax.random.PRNGKey(0)
    k_app, k_box1, k_box2, k_params = jax.random.split(key, 4)

    app_feature = jax.random.normal(k_app, (N, A), jnp.float32)

    # bbox_coordinates: (batch=1, N, 5); col 0 = batch idx, cols 1:5 = box.
    xy_min = jax.random.uniform(k_box1, (N, 2), jnp.float32, 0.0, 50.0)
    wh = jax.random.uniform(k_box2, (N, 2), jnp.float32, 1.0, 30.0)
    bbox = jnp.concatenate(
        [jnp.zeros((N, 1), jnp.float32), xy_min, xy_min + wh], axis=1
    )[None]                                                   # (1, N, 5)

    params = init_params(k_params, R, A, K, G)
    packed = pack_params(params)                              # one-time weight fusion

    fwd = jax.jit(relation_module_forward)                    # num_groups=1 default
    out = jax.block_until_ready(fwd(app_feature, bbox, packed))
    assert out.shape == (N, R * K), out.shape
    assert bool(jnp.all(jnp.isfinite(out)))

    ref = jax.block_until_ready(reference_forward(app_feature, bbox, params))
    max_err = float(jnp.max(jnp.abs(out - ref)))
    assert max_err < 2e-2, f"max abs diff {max_err}"

    print("KERNEL_OK")
</pallas_src>

<mosaic_0001>
module attributes {stable_mosaic.version = 11 : i64} {
  func.func @relation_group_kernel(%arg0: i32, %arg1: memref<16x256xbf16, #tpu.memory_space<vmem>>, %arg2: memref<4x16x16xbf16, #tpu.memory_space<vmem>>, %arg3: memref<256x1536xbf16, #tpu.memory_space<vmem>>, %arg4: memref<1x1536xf32, #tpu.memory_space<vmem>>, %arg5: memref<4x512xf32, #tpu.memory_space<vmem>>, %arg6: memref<512x512xbf16, #tpu.memory_space<vmem>>, %arg7: memref<512x512xbf16, #tpu.memory_space<vmem>>, %arg8: memref<16x512xf32, #tpu.memory_space<vmem>>) attributes {dimension_semantics = [#tpu.dimension_semantics<parallel>], iteration_bounds = array<i64: 1>, scalar_prefetch = 0 : i64, scratch_operands = 0 : i64, tpu.core_type = #tpu.core_type<tc>, window_params = [{pipeline_mode = #tpu.pipeline_mode<synchronous>, transform_indices = @transform_0, window_bounds = array<i64: 16, 256>}, {transform_indices = @transform_1, window_bounds = array<i64: 4, 16, 16>}, {transform_indices = @transform_2, window_bounds = array<i64: 256, 1536>}, {transform_indices = @transform_3, window_bounds = array<i64: 1, 1536>}, {transform_indices = @transform_4, window_bounds = array<i64: 4, 512>}, {transform_indices = @transform_5, window_bounds = array<i64: 512, 512>}, {transform_indices = @transform_6, window_bounds = array<i64: 512, 512>}, {transform_indices = @transform_7, window_bounds = array<i64: 16, 512>}]} {
    %c0 = arith.constant 0 : index
    %c0_0 = arith.constant 0 : index
    %0 = vector.load %arg1[%c0, %c0_0] : memref<16x256xbf16, #tpu.memory_space<vmem>>, vector<16x256xbf16>
    %c0_1 = arith.constant 0 : index
    %c0_2 = arith.constant 0 : index
    %1 = vector.load %arg3[%c0_1, %c0_2] : memref<256x1536xbf16, #tpu.memory_space<vmem>>, vector<256x1536xbf16>
    %cst = arith.constant dense<0.000000e+00> : vector<16x1536xf32>
    %2 = tpu.matmul %0, %1, %cst {dimension_numbers = #tpu.dot_dimension_numbers<[1], [0], [0], [1], [0, 0, 1, 1], [], []>} : vector<16x256xbf16>, vector<256x1536xbf16>, vector<16x1536xf32> -> vector<16x1536xf32>
    %c0_3 = arith.constant 0 : index
    %c0_4 = arith.constant 0 : index
    %3 = vector.load %arg4[%c0_3, %c0_4] : memref<1x1536xf32, #tpu.memory_space<vmem>>, vector<1x1536xf32>
    %4 = vector.broadcast %3 : vector<1x1536xf32> to vector<16x1536xf32>
    %5 = arith.addf %2, %4 : vector<16x1536xf32>
    %6 = vector.extract_strided_slice %5 {offsets = [0, 0], sizes = [16, 128], strides = [1, 1]} : vector<16x1536xf32> to vector<16x128xf32>
    %7 = vector.extract_strided_slice %5 {offsets = [0, 128], sizes = [16, 128], strides = [1, 1]} : vector<16x1536xf32> to vector<16x128xf32>
    %8 = vector.extract_strided_slice %5 {offsets = [0, 256], sizes = [16, 128], strides = [1, 1]} : vector<16x1536xf32> to vector<16x128xf32>
    %cst_5 = arith.constant dense<0.000000e+00> : vector<16x16xf32>
    %9 = tpu.matmul %6, %7, %cst_5 {dimension_numbers = #tpu.dot_dimension_numbers<[1], [1], [0], [0], [0, 0, 1, 0], [], []>} : vector<16x128xf32>, vector<16x128xf32>, vector<16x16xf32> -> vector<16x16xf32>
    %cst_6 = arith.constant 0.0883883461 : f32
    %10 = vector.broadcast %cst_6 : f32 to vector<16x16xf32>
    %11 = arith.mulf %9, %10 : vector<16x16xf32>
    %c0_7 = arith.constant 0 : index
    %c0_8 = arith.constant 0 : index
    %c0_9 = arith.constant 0 : index
    %12 = vector.load %arg2[%c0_7, %c0_8, %c0_9] : memref<4x16x16xbf16, #tpu.memory_space<vmem>>, vector<1x16x16xbf16>
    %13 = vector.shape_cast %12 : vector<1x16x16xbf16> to vector<16x16xbf16>
    %14 = arith.extf %13 : vector<16x16xbf16> to vector<16x16xf32>
    %15 = arith.addf %11, %14 : vector<16x16xf32>
    %cst_10 = arith.constant dense<0xFF800000> : vector<16xf32>
    %16 = vector.multi_reduction <maximumf>, %15, %cst_10 [1] : vector<16x16xf32> to vector<16xf32>
    %17 = vector.shape_cast %16 : vector<16xf32> to vector<16x1xf32>
    %18 = vector.broadcast %17 : vector<16x1xf32> to vector<16x16xf32>
    %19 = arith.subf %15, %18 : vector<16x16xf32>
    %20 = math.exp %19 : vector<16x16xf32>
    %cst_11 = arith.constant dense<0.000000e+00> : vector<16xf32>
    %21 = vector.multi_reduction <add>, %20, %cst_11 [1] : vector<16x16xf32> to vector<16xf32>
    %22 = vector.shape_cast %21 : vector<16xf32> to vector<16x1xf32>
    %23 = tpu.reciprocal %22 {approx = true} : vector<16x1xf32> -> vector<16x1xf32>
    %24 = vector.broadcast %23 : vector<16x1xf32> to vector<16x16xf32>
    %25 = arith.mulf %20, %24 : vector<16x16xf32>
    %cst_12 = arith.constant dense<0.000000e+00> : vector<16x128xf32>
    %26 = tpu.matmul %25, %8, %cst_12 {dimension_numbers = #tpu.dot_dimension_numbers<[1], [0], [0], [1], [0, 0, 1, 1], [], []>} : vector<16x16xf32>, vector<16x128xf32>, vector<16x128xf32> -> vector<16x128xf32>
    %cst_13 = arith.constant dense<0.000000e+00> : vector<16xf32>
    %27 = vector.multi_reduction <add>, %26, %cst_13 [1] : vector<16x128xf32> to vector<16xf32>
    %28 = vector.shape_cast %27 : vector<16xf32> to vector<16x1xf32>
    %cst_14 = arith.constant 1.280000e+02 : f32
    %29 = vector.broadcast %cst_14 : f32 to vector<16x1xf32>
    %30 = arith.divf %28, %29 : vector<16x1xf32>
    %31 = vector.broadcast %30 : vector<16x1xf32> to vector<16x128xf32>
    %32 = arith.subf %26, %31 : vector<16x128xf32>
    %33 = arith.mulf %32, %32 : vector<16x128xf32>
    %cst_15 = arith.constant dense<0.000000e+00> : vector<16xf32>
    %34 = vector.multi_reduction <add>, %33, %cst_15 [1] : vector<16x128xf32> to vector<16xf32>
    %35 = vector.shape_cast %34 : vector<16xf32> to vector<16x1xf32>
    %cst_16 = arith.constant 1.280000e+02 : f32
    %36 = vector.broadcast %cst_16 : f32 to vector<16x1xf32>
    %37 = arith.divf %35, %36 : vector<16x1xf32>
    %cst_17 = arith.constant 9.99999997E-7 : f32
    %38 = vector.broadcast %cst_17 : f32 to vector<16x1xf32>
    %39 = arith.addf %37, %38 : vector<16x1xf32>
    %40 = math.rsqrt %39 : vector<16x1xf32>
    %41 = vector.broadcast %40 : vector<16x1xf32> to vector<16x128xf32>
    %42 = arith.mulf %32, %41 : vector<16x128xf32>
    %43 = vector.extract_strided_slice %5 {offsets = [0, 384], sizes = [16, 128], strides = [1, 1]} : vector<16x1536xf32> to vector<16x128xf32>
    %44 = vector.extract_strided_slice %5 {offsets = [0, 512], sizes = [16, 128], strides = [1, 1]} : vector<16x1536xf32> to vector<16x128xf32>
    %45 = vector.extract_strided_slice %5 {offsets = [0, 640], sizes = [16, 128], strides = [1, 1]} : vector<16x1536xf32> to vector<16x128xf32>
    %cst_18 = arith.constant dense<0.000000e+00> : vector<16x16xf32>
    %46 = tpu.matmul %43, %44, %cst_18 {dimension_numbers = #tpu.dot_dimension_numbers<[1], [1], [0], [0], [0, 0, 1, 0], [], []>} : vector<16x128xf32>, vector<16x128xf32>, vector<16x16xf32> -> vector<16x16xf32>
    %cst_19 = arith.constant 0.0883883461 : f32
    %47 = vector.broadcast %cst_19 : f32 to vector<16x16xf32>
    %48 = arith.mulf %46, %47 : vector<16x16xf32>
    %c1 = arith.constant 1 : index
    %c0_20 = arith.constant 0 : index
    %c0_21 = arith.constant 0 : index
    %49 = vector.load %arg2[%c1, %c0_20, %c0_21] : memref<4x16x16xbf16, #tpu.memory_space<vmem>>, vector<1x16x16xbf16>
    %50 = vector.shape_cast %49 : vector<1x16x16xbf16> to vector<16x16xbf16>
    %51 = arith.extf %50 : vector<16x16xbf16> to vector<16x16xf32>
    %52 = arith.addf %48, %51 : vector<16x16xf32>
    %cst_22 = arith.constant dense<0xFF800000> : vector<16xf32>
    %53 = vector.multi_reduction <maximumf>, %52, %cst_22 [1] : vector<16x16xf32> to vector<16xf32>
    %54 = vector.shape_cast %53 : vector<16xf32> to vector<16x1xf32>
    %55 = vector.broadcast %54 : vector<16x1xf32> to vector<16x16xf32>
    %56 = arith.subf %52, %55 : vector<16x16xf32>
    %57 = math.exp %56 : vector<16x16xf32>
    %cst_23 = arith.constant dense<0.000000e+00> : vector<16xf32>
    %58 = vector.multi_reduction <add>, %57, %cst_23 [1] : vector<16x16xf32> to vector<16xf32>
    %59 = vector.shape_cast %58 : vector<16xf32> to vector<16x1xf32>
    %60 = tpu.reciprocal %59 {approx = true} : vector<16x1xf32> -> vector<16x1xf32>
    %61 = vector.broadcast %60 : vector<16x1xf32> to vector<16x16xf32>
    %62 = arith.mulf %57, %61 : vector<16x16xf32>
    %cst_24 = arith.constant dense<0.000000e+00> : vector<16x128xf32>
    %63 = tpu.matmul %62, %45, %cst_24 {dimension_numbers = #tpu.dot_dimension_numbers<[1], [0], [0], [1], [0, 0, 1, 1], [], []>} : vector<16x16xf32>, vector<16x128xf32>, vector<16x128xf32> -> vector<16x128xf32>
    %cst_25 = arith.constant dense<0.000000e+00> : vector<16xf32>
    %64 = vector.multi_reduction <add>, %63, %cst_25 [1] : vector<16x128xf32> to vector<16xf32>
    %65 = vector.shape_cast %64 : vector<16xf32> to vector<16x1xf32>
    %cst_26 = arith.constant 1.280000e+02 : f32
    %66 = vector.broadcast %cst_26 : f32 to vector<16x1xf32>
    %67 = arith.divf %65, %66 : vector<16x1xf32>
    %68 = vector.broadcast %67 : vector<16x1xf32> to vector<16x128xf32>
    %69 = arith.subf %63, %68 : vector<16x128xf32>
    %70 = arith.mulf %69, %69 : vector<16x128xf32>
    %cst_27 = arith.constant dense<0.000000e+00> : vector<16xf32>
    %71 = vector.multi_reduction <add>, %70, %cst_27 [1] : vector<16x128xf32> to vector<16xf32>
    %72 = vector.shape_cast %71 : vector<16xf32> to vector<16x1xf32>
    %cst_28 = arith.constant 1.280000e+02 : f32
    %73 = vector.broadcast %cst_28 : f32 to vector<16x1xf32>
    %74 = arith.divf %72, %73 : vector<16x1xf32>
    %cst_29 = arith.constant 9.99999997E-7 : f32
    %75 = vector.broadcast %cst_29 : f32 to vector<16x1xf32>
    %76 = arith.addf %74, %75 : vector<16x1xf32>
    %77 = math.rsqrt %76 : vector<16x1xf32>
    %78 = vector.broadcast %77 : vector<16x1xf32> to vector<16x128xf32>
    %79 = arith.mulf %69, %78 : vector<16x128xf32>
    %80 = vector.extract_strided_slice %5 {offsets = [0, 768], sizes = [16, 128], strides = [1, 1]} : vector<16x1536xf32> to vector<16x128xf32>
    %81 = vector.extract_strided_slice %5 {offsets = [0, 896], sizes = [16, 128], strides = [1, 1]} : vector<16x1536xf32> to vector<16x128xf32>
    %82 = vector.extract_strided_slice %5 {offsets = [0, 1024], sizes = [16, 128], strides = [1, 1]} : vector<16x1536xf32> to vector<16x128xf32>
    %cst_30 = arith.constant dense<0.000000e+00> : vector<16x16xf32>
    %83 = tpu.matmul %80, %81, %cst_30 {dimension_numbers = #tpu.dot_dimension_numbers<[1], [1], [0], [0], [0, 0, 1, 0], [], []>} : vector<16x128xf32>, vector<16x128xf32>, vector<16x16xf32> -> vector<16x16xf32>
    %cst_31 = arith.constant 0.0883883461 : f32
    %84 = vector.broadcast %cst_31 : f32 to vector<16x16xf32>
    %85 = arith.mulf %83, %84 : vector<16x16xf32>
    %c2 = arith.constant 2 : index
    %c0_32 = arith.constant 0 : index
    %c0_33 = arith.constant 0 : index
    %86 = vector.load %arg2[%c2, %c0_32, %c0_33] : memref<4x16x16xbf16, #tpu.memory_space<vmem>>, vector<1x16x16xbf16>
    %87 = vector.shape_cast %86 : vector<1x16x16xbf16> to vector<16x16xbf16>
    %88 = arith.extf %87 : vector<16x16xbf16> to vector<16x16xf32>
    %89 = arith.addf %85, %88 : vector<16x16xf32>
    %cst_34 = arith.constant dense<0xFF800000> : vector<16xf32>
    %90 = vector.multi_reduction <maximumf>, %89, %cst_34 [1] : vector<16x16xf32> to vector<16xf32>
    %91 = vector.shape_cast %90 : vector<16xf32> to vector<16x1xf32>
    %92 = vector.broadcast %91 : vector<16x1xf32> to vector<16x16xf32>
    %93 = arith.subf %89, %92 : vector<16x16xf32>
    %94 = math.exp %93 : vector<16x16xf32>
    %cst_35 = arith.constant dense<0.000000e+00> : vector<16xf32>
    %95 = vector.multi_reduction <add>, %94, %cst_35 [1] : vector<16x16xf32> to vector<16xf32>
    %96 = vector.shape_cast %95 : vector<16xf32> to vector<16x1xf32>
    %97 = tpu.reciprocal %96 {approx = true} : vector<16x1xf32> -> vector<16x1xf32>
    %98 = vector.broadcast %97 : vector<16x1xf32> to vector<16x16xf32>
    %99 = arith.mulf %94, %98 : vector<16x16xf32>
    %cst_36 = arith.constant dense<0.000000e+00> : vector<16x128xf32>
    %100 = tpu.matmul %99, %82, %cst_36 {dimension_numbers = #tpu.dot_dimension_numbers<[1], [0], [0], [1], [0, 0, 1, 1], [], []>} : vector<16x16xf32>, vector<16x128xf32>, vector<16x128xf32> -> vector<16x128xf32>
    %cst_37 = arith.constant dense<0.000000e+00> : vector<16xf32>
    %101 = vector.multi_reduction <add>, %100, %cst_37 [1] : vector<16x128xf32> to vector<16xf32>
    %102 = vector.shape_cast %101 : vector<16xf32> to vector<16x1xf32>
    %cst_38 = arith.constant 1.280000e+02 : f32
    %103 = vector.broadcast %cst_38 : f32 to vector<16x1xf32>
    %104 = arith.divf %102, %103 : vector<16x1xf32>
    %105 = vector.broadcast %104 : vector<16x1xf32> to vector<16x128xf32>
    %106 = arith.subf %100, %105 : vector<16x128xf32>
    %107 = arith.mulf %106, %106 : vector<16x128xf32>
    %cst_39 = arith.constant dense<0.000000e+00> : vector<16xf32>
    %108 = vector.multi_reduction <add>, %107, %cst_39 [1] : vector<16x128xf32> to vector<16xf32>
    %109 = vector.shape_cast %108 : vector<16xf32> to vector<16x1xf32>
    %cst_40 = arith.constant 1.280000e+02 : f32
    %110 = vector.broadcast %cst_40 : f32 to vector<16x1xf32>
    %111 = arith.divf %109, %110 : vector<16x1xf32>
    %cst_41 = arith.constant 9.99999997E-7 : f32
    %112 = vector.broadcast %cst_41 : f32 to vector<16x1xf32>
    %113 = arith.addf %111, %112 : vector<16x1xf32>
    %114 = math.rsqrt %113 : vector<16x1xf32>
    %115 = vector.broadcast %114 : vector<16x1xf32> to vector<16x128xf32>
    %116 = arith.mulf %106, %115 : vector<16x128xf32>
    %117 = vector.extract_strided_slice %5 {offsets = [0, 1152], sizes = [16, 128], strides = [1, 1]} : vector<16x1536xf32> to vector<16x128xf32>
    %118 = vector.extract_strided_slice %5 {offsets = [0, 1280], sizes = [16, 128], strides = [1, 1]} : vector<16x1536xf32> to vector<16x128xf32>
    %119 = vector.extract_strided_slice %5 {offsets = [0, 1408], sizes = [16, 128], strides = [1, 1]} : vector<16x1536xf32> to vector<16x128xf32>
    %cst_42 = arith.constant dense<0.000000e+00> : vector<16x16xf32>
    %120 = tpu.matmul %117, %118, %cst_42 {dimension_numbers = #tpu.dot_dimension_numbers<[1], [1], [0], [0], [0, 0, 1, 0], [], []>} : vector<16x128xf32>, vector<16x128xf32>, vector<16x16xf32> -> vector<16x16xf32>
    %cst_43 = arith.constant 0.0883883461 : f32
    %121 = vector.broadcast %cst_43 : f32 to vector<16x16xf32>
    %122 = arith.mulf %120, %121 : vector<16x16xf32>
    %c3 = arith.constant 3 : index
    %c0_44 = arith.constant 0 : index
    %c0_45 = arith.constant 0 : index
    %123 = vector.load %arg2[%c3, %c0_44, %c0_45] : memref<4x16x16xbf16, #tpu.memory_space<vmem>>, vector<1x16x16xbf16>
    %124 = vector.shape_cast %123 : vector<1x16x16xbf16> to vector<16x16xbf16>
    %125 = arith.extf %124 : vector<16x16xbf16> to vector<16x16xf32>
    %126 = arith.addf %122, %125 : vector<16x16xf32>
    %cst_46 = arith.constant dense<0xFF800000> : vector<16xf32>
    %127 = vector.multi_reduction <maximumf>, %126, %cst_46 [1] : vector<16x16xf32> to vector<16xf32>
    %128 = vector.shape_cast %127 : vector<16xf32> to vector<16x1xf32>
    %129 = vector.broadcast %128 : vector<16x1xf32> to vector<16x16xf32>
    %130 = arith.subf %126, %129 : vector<16x16xf32>
    %131 = math.exp %130 : vector<16x16xf32>
    %cst_47 = arith.constant dense<0.000000e+00> : vector<16xf32>
    %132 = vector.multi_reduction <add>, %131, %cst_47 [1] : vector<16x16xf32> to vector<16xf32>
    %133 = vector.shape_cast %132 : vector<16xf32> to vector<16x1xf32>
    %134 = tpu.reciprocal %133 {approx = true} : vector<16x1xf32> -> vector<16x1xf32>
    %135 = vector.broadcast %134 : vector<16x1xf32> to vector<16x16xf32>
    %136 = arith.mulf %131, %135 : vector<16x16xf32>
    %cst_48 = arith.constant dense<0.000000e+00> : vector<16x128xf32>
    %137 = tpu.matmul %136, %119, %cst_48 {dimension_numbers = #tpu.dot_dimension_numbers<[1], [0], [0], [1], [0, 0, 1, 1], [], []>} : vector<16x16xf32>, vector<16x128xf32>, vector<16x128xf32> -> vector<16x128xf32>
    %cst_49 = arith.constant dense<0.000000e+00> : vector<16xf32>
    %138 = vector.multi_reduction <add>, %137, %cst_49 [1] : vector<16x128xf32> to vector<16xf32>
    %139 = vector.shape_cast %138 : vector<16xf32> to vector<16x1xf32>
    %cst_50 = arith.constant 1.280000e+02 : f32
    %140 = vector.broadcast %cst_50 : f32 to vector<16x1xf32>
    %141 = arith.divf %139, %140 : vector<16x1xf32>
    %142 = vector.broadcast %141 : vector<16x1xf32> to vector<16x128xf32>
    %143 = arith.subf %137, %142 : vector<16x128xf32>
    %144 = arith.mulf %143, %143 : vector<16x128xf32>
    %cst_51 = arith.constant dense<0.000000e+00> : vector<16xf32>
    %145 = vector.multi_reduction <add>, %144, %cst_51 [1] : vector<16x128xf32> to vector<16xf32>
    %146 = vector.shape_cast %145 : vector<16xf32> to vector<16x1xf32>
    %cst_52 = arith.constant 1.280000e+02 : f32
    %147 = vector.broadcast %cst_52 : f32 to vector<16x1xf32>
    %148 = arith.divf %146, %147 : vector<16x1xf32>
    %cst_53 = arith.constant 9.99999997E-7 : f32
    %149 = vector.broadcast %cst_53 : f32 to vector<16x1xf32>
    %150 = arith.addf %148, %149 : vector<16x1xf32>
    %151 = math.rsqrt %150 : vector<16x1xf32>
    %152 = vector.broadcast %151 : vector<16x1xf32> to vector<16x128xf32>
    %153 = arith.mulf %143, %152 : vector<16x128xf32>
    %c0_54 = arith.constant 0 : index
    %c0_55 = arith.constant 0 : index
    %154 = vector.load %arg5[%c0_54, %c0_55] : memref<4x512xf32, #tpu.memory_space<vmem>>, vector<4x512xf32>
    %155 = tpu.concatenate %42, %79, %116, %153 in 1 : vector<16x128xf32>, vector<16x128xf32>, vector<16x128xf32>, vector<16x128xf32> -> vector<16x512xf32>
    %156 = vector.extract_strided_slice %154 {offsets = [0, 0], sizes = [1, 512], strides = [1, 1]} : vector<4x512xf32> to vector<1x512xf32>
    %157 = vector.broadcast %156 : vector<1x512xf32> to vector<16x512xf32>
    %158 = arith.mulf %155, %157 : vector<16x512xf32>
    %159 = vector.extract_strided_slice %154 {offsets = [1, 0], sizes = [1, 512], strides = [1, 1]} : vector<4x512xf32> to vector<1x512xf32>
    %160 = vector.broadcast %159 : vector<1x512xf32> to vector<16x512xf32>
    %161 = arith.addf %158, %160 : vector<16x512xf32>
    %162 = arith.truncf %161 : vector<16x512xf32> to vector<16x512xbf16>
    %c0_56 = arith.constant 0 : index
    %c0_57 = arith.constant 0 : index
    %163 = vector.load %arg6[%c0_56, %c0_57] : memref<512x512xbf16, #tpu.memory_space<vmem>>, vector<512x512xbf16>
    %cst_58 = arith.constant dense<0.000000e+00> : vector<16x512xf32>
    %164 = tpu.matmul %162, %163, %cst_58 {dimension_numbers = #tpu.dot_dimension_numbers<[1], [0], [0], [1], [0, 0, 1, 1], [], []>} : vector<16x512xbf16>, vector<512x512xbf16>, vector<16x512xf32> -> vector<16x512xf32>
    %165 = vector.extract_strided_slice %154 {offsets = [2, 0], sizes = [1, 512], strides = [1, 1]} : vector<4x512xf32> to vector<1x512xf32>
    %166 = vector.broadcast %165 : vector<1x512xf32> to vector<16x512xf32>
    %167 = arith.addf %164, %166 : vector<16x512xf32>
    %cst_59 = arith.constant 0.000000e+00 : f32
    %168 = vector.broadcast %cst_59 : f32 to vector<16x512xf32>
    %169 = arith.maximumf %167, %168 : vector<16x512xf32>
    %170 = arith.truncf %169 : vector<16x512xf32> to vector<16x512xbf16>
    %c0_60 = arith.constant 0 : index
    %c0_61 = arith.constant 0 : index
    %171 = vector.load %arg7[%c0_60, %c0_61] : memref<512x512xbf16, #tpu.memory_space<vmem>>, vector<512x512xbf16>
    %cst_62 = arith.constant dense<0.000000e+00> : vector<16x512xf32>
    %172 = tpu.matmul %170, %171, %cst_62 {dimension_numbers = #tpu.dot_dimension_numbers<[1], [0], [0], [1], [0, 0, 1, 1], [], []>} : vector<16x512xbf16>, vector<512x512xbf16>, vector<16x512xf32> -> vector<16x512xf32>
    %173 = vector.extract_strided_slice %154 {offsets = [3, 0], sizes = [1, 512], strides = [1, 1]} : vector<4x512xf32> to vector<1x512xf32>
    %174 = vector.broadcast %173 : vector<1x512xf32> to vector<16x512xf32>
    %175 = arith.addf %172, %174 : vector<16x512xf32>
    %c0_63 = arith.constant 0 : index
    %c0_64 = arith.constant 0 : index
    %176 = vector.load %arg8[%c0_63, %c0_64] : memref<16x512xf32, #tpu.memory_space<vmem>>, vector<16x512xf32>
    tpu.vector_store %arg8[%c0_63, %c0_64], %175 {strides = array<i32>} : memref<16x512xf32, #tpu.memory_space<vmem>>, vector<16x512xf32>,
    return
  }
  func.func @transform_0(%arg0: i32) -> (i32, i32) {
    %c0_i32 = arith.constant 0 : i32
    %c0_i32_0 = arith.constant 0 : i32
    %c0_i32_1 = arith.constant 0 : i32
    return %c0_i32, %c0_i32_0 : i32, i32
  }
  func.func @transform_1(%arg0: i32) -> (i32, i32, i32) {
    %c0_i32 = arith.constant 0 : i32
    %c0_i32_0 = arith.constant 0 : i32
    %c0_i32_1 = arith.constant 0 : i32
    return %arg0, %c0_i32, %c0_i32_0 : i32, i32, i32
  }
  func.func @transform_2(%arg0: i32) -> (i32, i32) {
    %c0_i32 = arith.constant 0 : i32
    %c0_i32_0 = arith.constant 0 : i32
    return %c0_i32, %arg0 : i32, i32
  }
  func.func @transform_3(%arg0: i32) -> (i32, i32) {
    %c0_i32 = arith.constant 0 : i32
    %c0_i32_0 = arith.constant 0 : i32
    return %c0_i32, %arg0 : i32, i32
  }
  func.func @transform_4(%arg0: i32) -> (i32, i32) {
    %c0_i32 = arith.constant 0 : i32
    %c0_i32_0 = arith.constant 0 : i32
    return %c0_i32, %arg0 : i32, i32
  }
  func.func @transform_5(%arg0: i32) -> (i32, i32) {
    %c0_i32 = arith.constant 0 : i32
    return %arg0, %arg0 : i32, i32
  }
  func.func @transform_6(%arg0: i32) -> (i32, i32) {
    %c0_i32 = arith.constant 0 : i32
    return %arg0, %arg0 : i32, i32
  }
  func.func @transform_7(%arg0: i32) -> (i32, i32) {
    %c0_i32 = arith.constant 0 : i32
    %c0_i32_0 = arith.constant 0 : i32
    return %c0_i32, %arg0 : i32, i32
  }
}

</mosaic_0001>

<bundles_post_ra>
// kernel: relation_module_forward.1
= control target key start
LH: loop header
LB: loop body
LE: loop exit
PB: predicated region body
PF: predicated region fallthrough
CT: control target
= control target key end

     0   :  { %s9562_s0 = inlined_call_operand.vmem [shape: bf16[16,256], index: 0, kind: input, shape index: {}]   ;;  %s9563_s1 = inlined_call_operand.vmem [shape: bf16[4,16,16], index: 1, kind: input, shape index: {}]   ;;  %s9564_s2 = inlined_call_operand.vmem [shape: bf16[256,1536], index: 2, kind: input, shape index: {}]   ;;  %s9565_s3 = inlined_call_operand.vmem [shape: f32[1,1536], index: 3, kind: input, shape index: {}]   ;;  %s9566_s4 = inlined_call_operand.vmem [shape: f32[4,512], index: 4, kind: input, shape index: {}]   ;;  %s9567_s5 = inlined_call_operand.vmem [shape: bf16[512,512], index: 5, kind: input, shape index: {}]   ;;  %s9568_s6 = inlined_call_operand.vmem [shape: bf16[512,512], index: 6, kind: input, shape index: {}]   ;;  %s9569_s7 = inlined_call_operand.hbm [shape: f32[16,512], index: 7, kind: output, shape index: {}]  }
   0x1   :  { %v4494_v0 = vld [vmem:[%s9564_s2 + $0x2a0] sm:$0xf]  ;;  %v6054_v1 = vld [vmem:[%s9564_s2 + $0x2cc] sm:$0xf0]  ;;  %v6048_v5 = vld [vmem:[%s9564_s2 + $0x2a4] sm:$0xf] }
   0x2   :  { %v4878_v2 = vld [vmem:[%s9564_s2 + $0x5a0] sm:$0xf]  ;;  %v4495_v3 = vor.u32 %v6054_v1, %v4494_v0  ;;  %v6150_v4 = vld [vmem:[%s9564_s2 + $0x5cc] sm:$0xf0]  ;;  %v4496_v6 = vld [vmem:[%s9564_s2 + $0x2d0] sm:$0xf0] }
   0x3   :  { %v4879_v7 = vor.u32 %v6150_v4, %v4878_v2  ;;  %v4499_v8 = vor.u32 %v6048_v5, %v4496_v6  ;;  %v6144_v9 = vld [vmem:[%s9564_s2 + $0x5a4] sm:$0xf]  ;;  %v4880_v10 = vld [vmem:[%s9564_s2 + $0x5d0] sm:$0xf0]  ;;  %v4446_v11 = vld [vmem:[%s9564_s2 + $0x240] sm:$0xf] }
   0x4   :  { %1219 = vmatpush.bf16.msra.mxu0 %v4495_v3  ;;  %v4883_v12 = vor.u32 %v6144_v9, %v4880_v10  ;;  %v6042_v13 = vld [vmem:[%s9564_s2 + $0x26c] sm:$0xf0]  ;;  %v4830_v14 = vld [vmem:[%s9564_s2 + $0x540] sm:$0xf]  ;;  %v6036_v18 = vld [vmem:[%s9564_s2 + $0x244] sm:$0xf] }
   0x5   :  { %v6138_v15 = vld [vmem:[%s9564_s2 + $0x56c] sm:$0xf0]  ;;  %1233 = vmatpush.bf16.msra.mxu1 %v4879_v7  ;;  %1247 = vmatpush.bf16.msra.mxu2 %v4499_v8  ;;  %v4447_v16 = vor.u32 %v6042_v13, %v4446_v11  ;;  %v4448_v19 = vld [vmem:[%s9564_s2 + $0x270] sm:$0xf0]  ;;  %v6132_v20 = vld [vmem:[%s9564_s2 + $0x544] sm:$0xf] }
   0x6   :  { %v4831_v17 = vor.u32 %v6138_v15, %v4830_v14  ;;  %1261 = vmatpush.bf16.msra.mxu3 %v4883_v12  ;;  %v4451_v21 = vor.u32 %v6036_v18, %v4448_v19  ;;  %v4832_v22 = vld [vmem:[%s9564_s2 + $0x570] sm:$0xf0]  ;;  %v4398_v23 = vld [vmem:[%s9564_s2 + $0x1e0] sm:$0xf]  ;;  %v6030_v24 = vld [vmem:[%s9564_s2 + $0x20c] sm:$0xf0] }
   0x7   :  { %v4835_v25 = vor.u32 %v6132_v20, %v4832_v22  ;;  %v4782_v26 = vld [vmem:[%s9564_s2 + $0x4e0] sm:$0xf]  ;;  %v6126_v27 = vld [vmem:[%s9564_s2 + $0x50c] sm:$0xf0]  ;;  %v6024_v28 = vld [vmem:[%s9564_s2 + $0x1e4] sm:$0xf]  ;;  %v4399_v29 = vor.u32 %v6030_v24, %v4398_v23 }
   0x8   :  { %1220 = vmatpush.bf16.msra.mxu0 %v4447_v16  ;;  %v4400_v30 = vld [vmem:[%s9564_s2 + $0x210] sm:$0xf0]  ;;  %v6120_v31 = vld [vmem:[%s9564_s2 + $0x4e4] sm:$0xf]  ;;  %v4783_v33 = vor.u32 %v6126_v27, %v4782_v26  ;;  %v4350_v35 = vld [vmem:[%s9564_s2 + $0x180] sm:$0xf] }
   0x9   :  { %v4784_v32 = vld [vmem:[%s9564_s2 + $0x510] sm:$0xf0]  ;;  %1234 = vmatpush.bf16.msra.mxu1 %v4831_v17  ;;  %1248 = vmatpush.bf16.msra.mxu2 %v4451_v21  ;;  %v4403_v34 = vor.u32 %v6024_v28, %v4400_v30  ;;  %v6018_v36 = vld [vmem:[%s9564_s2 + $0x1ac] sm:$0xf0]  ;;  %v4734_v37 = vld [vmem:[%s9564_s2 + $0x480] sm:$0xf] }
   0xa   :  { %1262 = vmatpush.bf16.msra.mxu3 %v4835_v25  ;;  %v4787_v38 = vor.u32 %v6120_v31, %v4784_v32  ;;  %v6114_v39 = vld [vmem:[%s9564_s2 + $0x4ac] sm:$0xf0]  ;;  %v6012_v40 = vld [vmem:[%s9564_s2 + $0x184] sm:$0xf]  ;;  %v4352_v41 = vld [vmem:[%s9564_s2 + $0x1b0] sm:$0xf0]  ;;  %v4351_v44 = vor.u32 %v6018_v36, %v4350_v35 }
   0xb   :  { %v6108_v42 = vld [vmem:[%s9564_s2 + $0x484] sm:$0xf]  ;;  %v4736_v43 = vld [vmem:[%s9564_s2 + $0x4b0] sm:$0xf0]  ;;  %v4735_v45 = vor.u32 %v6114_v39, %v4734_v37  ;;  %v4355_v46 = vor.u32 %v6012_v40, %v4352_v41  ;;  %v4302_v47 = vld [vmem:[%s9564_s2 + $0x120] sm:$0xf] }
   0xc   :  { %1221 = vmatpush.bf16.msra.mxu0 %v4399_v29  ;;  %v6006_v48 = vld [vmem:[%s9564_s2 + $0x14c] sm:$0xf0]  ;;  %v4686_v49 = vld [vmem:[%s9564_s2 + $0x420] sm:$0xf]  ;;  %v4739_v50 = vor.u32 %v6108_v42, %v4736_v43  ;;  %v6000_v52 = vld [vmem:[%s9564_s2 + $0x124] sm:$0xf] }
   0xd   :  { %1235 = vmatpush.bf16.msra.mxu1 %v4783_v33  ;;  %1249 = vmatpush.bf16.msra.mxu2 %v4403_v34  ;;  %v6102_v51 = vld [vmem:[%s9564_s2 + $0x44c] sm:$0xf0]  ;;  %v4304_v53 = vld [vmem:[%s9564_s2 + $0x150] sm:$0xf0]  ;;  %v6096_v54 = vld [vmem:[%s9564_s2 + $0x424] sm:$0xf]  ;;  %v4303_v56 = vor.u32 %v6006_v48, %v4302_v47 }
   0xe   :  { %1263 = vmatpush.bf16.msra.mxu3 %v4787_v38  ;;  %v4688_v55 = vld [vmem:[%s9564_s2 + $0x450] sm:$0xf0]  ;;  %v4687_v57 = vor.u32 %v6102_v51, %v4686_v49  ;;  %v4307_v58 = vor.u32 %v6000_v52, %v4304_v53  ;;  %v4254_v59 = vld [vmem:[%s9564_s2 + $0xc0] sm:$0xf]  ;;  %v5994_v60 = vld [vmem:[%s9564_s2 + $0xec] sm:$0xf0] }
   0xf   :  { %v4638_v61 = vld [vmem:[%s9564_s2 + $0x3c0] sm:$0xf]  ;;  %v4691_v62 = vor.u32 %v6096_v54, %v4688_v55  ;;  %v6090_v63 = vld [vmem:[%s9564_s2 + $0x3ec] sm:$0xf0]  ;;  %v5988_v0 = vld [vmem:[%s9564_s2 + $0xc4] sm:$0xf]  ;;  %v4255_v4 = vor.u32 %v5994_v60, %v4254_v59 }
  0x10   :  { %1222 = vmatpush.bf16.msra.mxu0 %v4351_v44  ;;  %v4256_v1 = vld [vmem:[%s9564_s2 + $0xf0] sm:$0xf0]  ;;  %v6084_v2 = vld [vmem:[%s9564_s2 + $0x3c4] sm:$0xf]  ;;  %v4639_v5 = vor.u32 %v6090_v63, %v4638_v61  ;;  %v4206_v7 = vld [vmem:[%s9564_s2 + $0x60] sm:$0xf] }
  0x11   :  { %1236 = vmatpush.bf16.msra.mxu1 %v4735_v45  ;;  %1250 = vmatpush.bf16.msra.mxu2 %v4355_v46  ;;  %v4640_v3 = vld [vmem:[%s9564_s2 + $0x3f0] sm:$0xf0]  ;;  %v4259_v6 = vor.u32 %v5988_v0, %v4256_v1  ;;  %v5982_v8 = vld [vmem:[%s9564_s2 + $0x8c] sm:$0xf0]  ;;  %v4590_v9 = vld [vmem:[%s9564_s2 + $0x360] sm:$0xf] }
  0x12   :  { %1264 = vmatpush.bf16.msra.mxu3 %v4739_v50  ;;  %v4643_v10 = vor.u32 %v6084_v2, %v4640_v3  ;;  %v6078_v11 = vld [vmem:[%s9564_s2 + $0x38c] sm:$0xf0]  ;;  %v5976_v12 = vld [vmem:[%s9564_s2 + $0x64] sm:$0xf]  ;;  %v4208_v13 = vld [vmem:[%s9564_s2 + $0x90] sm:$0xf0]  ;;  %v4207_v16 = vor.u32 %v5982_v8, %v4206_v7 }
  0x13   :  { %v6072_v14 = vld [vmem:[%s9564_s2 + $0x364] sm:$0xf]  ;;  %v4592_v15 = vld [vmem:[%s9564_s2 + $0x390] sm:$0xf0]  ;;  %v4158_v17 = vld [vmem:[%s9564_s2] sm:$0xf]  ;;  %v4591_v19 = vor.u32 %v6078_v11, %v4590_v9  ;;  %v4211_v20 = vor.u32 %v5976_v12, %v4208_v13 }
  0x14   :  { %1223 = vmatpush.bf16.msra.mxu0 %v4303_v56  ;;  %v5970_v18 = vld [vmem:[%s9564_s2 + $0x2c] sm:$0xf0]  ;;  %v4542_v21 = vld [vmem:[%s9564_s2 + $0x300] sm:$0xf]  ;;  %v5964_v23 = vld [vmem:[%s9564_s2 + $0x4] sm:$0xf]  ;;  %v4595_v24 = vor.u32 %v6072_v14, %v4592_v15 }
  0x15   :  { %1237 = vmatpush.bf16.msra.mxu1 %v4687_v57  ;;  %1251 = vmatpush.bf16.msra.mxu2 %v4307_v58  ;;  %v6066_v22 = vld [vmem:[%s9564_s2 + $0x32c] sm:$0xf0]  ;;  %v4160_v25 = vld [vmem:[%s9564_s2 + $0x30] sm:$0xf0]  ;;  %v4502_v26 = vld [vmem:[%s9564_s2 + $0x2a8] sm:$0xf]  ;;  %v4159_v31 = vor.u32 %v5970_v18, %v4158_v17 }
  0x16   :  { %1265 = vmatpush.bf16.msra.mxu3 %v4691_v62  ;;  %v6055_v27 = vld [vmem:[%s9564_s2 + $0x2d4] sm:$0xf0]  ;;  %v4886_v28 = vld [vmem:[%s9564_s2 + $0x5a8] sm:$0xf]  ;;  %v6049_v30 = vld [vmem:[%s9564_s2 + $0x2ac] sm:$0xf]  ;;  %v4543_v35 = vor.u32 %v6066_v22, %v4542_v21  ;;  %v4163_v36 = vor.u32 %v5964_v23, %v4160_v25 }
  0x17   :  { %v6151_v29 = vld [vmem:[%s9564_s2 + $0x5d4] sm:$0xf0]  ;;  %v4504_v32 = vld [vmem:[%s9564_s2 + $0x2d8] sm:$0xf0]  ;;  %v6060_v33 = vld [vmem:[%s9564_s2 + $0x304] sm:$0xf]  ;;  %v4503_v39 = vor.u32 %v6055_v27, %v4502_v26 }
  0x18   :  { %1224 = vmatpush.bf16.msra.mxu0 %v4255_v4  ;;  %v4544_v34 = vld [vmem:[%s9564_s2 + $0x330] sm:$0xf0]  ;;  %v6145_v37 = vld [vmem:[%s9564_s2 + $0x5ac] sm:$0xf]  ;;  %v4888_v38 = vld [vmem:[%s9564_s2 + $0x5d8] sm:$0xf0]  ;;  %v4887_v40 = vor.u32 %v6151_v29, %v4886_v28  ;;  %v4507_v44 = vor.u32 %v6049_v30, %v4504_v32 }
  0x19   :  { %1238 = vmatpush.bf16.msra.mxu1 %v4639_v5  ;;  %1252 = vmatpush.bf16.msra.mxu2 %v4259_v6  ;;  %v4454_v41 = vld [vmem:[%s9564_s2 + $0x248] sm:$0xf]  ;;  %v4150_v42 = vld [vmem:[%s9562_s0] sm:$0xf]  ;;  %v4547_v45 = vor.u32 %v6060_v33, %v4544_v34  ;;  %v6043_v46 = vld [vmem:[%s9564_s2 + $0x274] sm:$0xf0]  ;;  %v4891_v49 = vor.u32 %v6145_v37, %v4888_v38 }
  0x1a   :  { %1266 = vmatpush.bf16.msra.mxu3 %v4643_v10  ;;  %v5963_v43 = vld [vmem:[%s9562_s0 + $0x4] sm:$0xf0]  ;;  %v6139_v48 = vld [vmem:[%s9564_s2 + $0x574] sm:$0xf0]  ;;  %v6037_v50 = vld [vmem:[%s9564_s2 + $0x24c] sm:$0xf]  ;;  %v4455_v57 = vor.u32 %v6043_v46, %v4454_v41 }
  0x1b   :  { %v4838_v47 = vld [vmem:[%s9564_s2 + $0x548] sm:$0xf]  ;;  %v4456_v51 = vld [vmem:[%s9564_s2 + $0x278] sm:$0xf0]  ;;  %v6133_v52 = vld [vmem:[%s9564_s2 + $0x54c] sm:$0xf]  ;;  %v6800_v53 = vor.u32 %v5963_v43, %v4150_v42 }
  0x1c   :  { %1225 = vmatpush.bf16.msra.mxu0 %v4207_v16  ;;  %v4840_v54 = vld [vmem:[%s9564_s2 + $0x578] sm:$0xf0]  ;;  %v5962_v55 = vld [vmem:[%s9562_s0 + $0x4] sm:$0xf]  ;;  %v4152_v56 = vld [vmem:[%s9562_s0 + $0x8] sm:$0xf0]  ;;  %v4839_v58 = vor.u32 %v6139_v48, %v4838_v47  ;;  %v4459_v60 = vor.u32 %v6037_v50, %v4456_v51 }
  0x1d   :  { %1239 = vmatpush.bf16.msra.mxu1 %v4591_v19  ;;  %1253 = vmatpush.bf16.msra.mxu2 %v4211_v20  ;;  %v4406_v59 = vld [vmem:[%s9564_s2 + $0x1e8] sm:$0xf]  ;;  %v6031_v61 = vld [vmem:[%s9564_s2 + $0x214] sm:$0xf0]  ;;  %v6823_v0 = vor.u32 %v5962_v55, %v4152_v56  ;;  %v4843_v1 = vor.u32 %v6133_v52, %v4840_v54  ;;  %v6025_v2 = vld [vmem:[%s9564_s2 + $0x1ec] sm:$0xf] }
  0x1e   :  { %1267 = vmatpush.bf16.msra.mxu3 %v4595_v24  ;;  %v4790_v62 = vld [vmem:[%s9564_s2 + $0x4e8] sm:$0xf]  ;;  %v6127_v63 = vld [vmem:[%s9564_s2 + $0x514] sm:$0xf0]  ;;  %v4408_v3 = vld [vmem:[%s9564_s2 + $0x218] sm:$0xf0]  ;;  %v4407_v6 = vor.u32 %v6031_v61, %v4406_v59 }
  0x1f   :  { %v6121_v4 = vld [vmem:[%s9564_s2 + $0x4ec] sm:$0xf]  ;;  %v4792_v5 = vld [vmem:[%s9564_s2 + $0x518] sm:$0xf0]  ;;  %v4791_v7 = vor.u32 %v6127_v63, %v4790_v62  ;;  %v4358_v8 = vld [vmem:[%s9564_s2 + $0x188] sm:$0xf]  ;;  %v4411_v9 = vor.u32 %v6025_v2, %v4408_v3 }
  0x20   :  { %1226 = vmatpush.bf16.msra.mxu0 %v4159_v31  ;;  %v6019_v10 = vld [vmem:[%s9564_s2 + $0x1b4] sm:$0xf0]  ;;  %v4742_v11 = vld [vmem:[%s9564_s2 + $0x488] sm:$0xf]  ;;  %v4795_v13 = vor.u32 %v6121_v4, %v4792_v5  ;;  %v6013_v14 = vld [vmem:[%s9564_s2 + $0x18c] sm:$0xf] }
  0x21   :  { %1240 = vmatpush.bf16.msra.mxu1 %v4543_v35  ;;  %1254 = vmatpush.bf16.msra.mxu2 %v4163_v36  ;;  %v6115_v12 = vld [vmem:[%s9564_s2 + $0x4b4] sm:$0xf0]  ;;  %v4360_v15 = vld [vmem:[%s9564_s2 + $0x1b8] sm:$0xf0]  ;;  %v6109_v16 = vld [vmem:[%s9564_s2 + $0x48c] sm:$0xf]  ;;  %v4359_v18 = vor.u32 %v6019_v10, %v4358_v8 }
  0x22   :  { %1268 = vmatpush.bf16.msra.mxu3 %v4547_v45  ;;  %v4744_v17 = vld [vmem:[%s9564_s2 + $0x4b8] sm:$0xf0]  ;;  %v4743_v19 = vor.u32 %v6115_v12, %v4742_v11  ;;  %v4310_v20 = vld [vmem:[%s9564_s2 + $0x128] sm:$0xf]  ;;  %v4363_v21 = vor.u32 %v6013_v14, %v4360_v15  ;;  %v6007_v22 = vld [vmem:[%s9564_s2 + $0x154] sm:$0xf0] }
  0x23   :  { %1227 = vmatmul.bf16.vlgmr.msra.gmra.mxu0 %v6800_v53  ;;  %v4694_v23 = vld [vmem:[%s9564_s2 + $0x428] sm:$0xf]  ;;  %v6103_v24 = vld [vmem:[%s9564_s2 + $0x454] sm:$0xf0]  ;;  %v4747_v25 = vor.u32 %v6109_v16, %v4744_v17  ;;  %v6001_v26 = vld [vmem:[%s9564_s2 + $0x12c] sm:$0xf]  ;;  %v4311_v30 = vor.u32 %v6007_v22, %v4310_v20 }
  0x24   :  { %1275 = vmatpush.bf16.msrb.mxu0 %v4503_v39  ;;  %1255 = vmatmul.bf16.vlgmr.msra.gmra.mxu2 %v6800_v53  ;;  %v4312_v27 = vld [vmem:[%s9564_s2 + $0x158] sm:$0xf0]  ;;  %v6097_v28 = vld [vmem:[%s9564_s2 + $0x42c] sm:$0xf]  ;;  %v4695_v31 = vor.u32 %v6103_v24, %v4694_v23  ;;  %v4262_v32 = vld [vmem:[%s9564_s2 + $0xc8] sm:$0xf] }
  0x25   :  { %1289 = vmatpush.bf16.msrb.mxu1 %v4887_v40  ;;  %1303 = vmatpush.bf16.msrb.mxu2 %v4507_v44  ;;  %v4696_v29 = vld [vmem:[%s9564_s2 + $0x458] sm:$0xf0]  ;;  %v4315_v33 = vor.u32 %v6001_v26, %v4312_v27  ;;  %v5995_v34 = vld [vmem:[%s9564_s2 + $0xf4] sm:$0xf0]  ;;  %v4646_v35 = vld [vmem:[%s9564_s2 + $0x3c8] sm:$0xf] }
  0x26   :  { %1317 = vmatpush.bf16.msrb.mxu3 %v4891_v49  ;;  %1241 = vmatmul.bf16.vlgmr.msra.gmra.mxu1 %v6823_v0  ;;  %v6091_v36 = vld [vmem:[%s9564_s2 + $0x3f4] sm:$0xf0]  ;;  %v4699_v37 = vor.u32 %v6097_v28, %v4696_v29  ;;  %v5989_v38 = vld [vmem:[%s9564_s2 + $0xcc] sm:$0xf]  ;;  %v4264_v39 = vld [vmem:[%s9564_s2 + $0xf8] sm:$0xf0]  ;;  %v4263_v42 = vor.u32 %v5995_v34, %v4262_v32 }
  0x27   :  { %1269 = vmatmul.bf16.vlgmr.msra.gmra.mxu3 %v6823_v0  ;;  %v6085_v40 = vld [vmem:[%s9564_s2 + $0x3cc] sm:$0xf]  ;;  %v4648_v41 = vld [vmem:[%s9564_s2 + $0x3f8] sm:$0xf0]  ;;  %v4647_v43 = vor.u32 %v6091_v36, %v4646_v35  ;;  %v4214_v44 = vld [vmem:[%s9564_s2 + $0x68] sm:$0xf]  ;;  %v4267_v45 = vor.u32 %v5989_v38, %v4264_v39 }
  0x28   :  { %1276 = vmatpush.bf16.msrb.mxu0 %v4455_v57  ;;  %v5983_v46 = vld [vmem:[%s9564_s2 + $0x94] sm:$0xf0]  ;;  %v4598_v47 = vld [vmem:[%s9564_s2 + $0x368] sm:$0xf]  ;;  %v4651_v49 = vor.u32 %v6085_v40, %v4648_v41  ;;  %v5977_v50 = vld [vmem:[%s9564_s2 + $0x6c] sm:$0xf] }
  0x29   :  { %1290 = vmatpush.bf16.msrb.mxu1 %v4839_v58  ;;  %1304 = vmatpush.bf16.msrb.mxu2 %v4459_v60  ;;  %v6079_v48 = vld [vmem:[%s9564_s2 + $0x394] sm:$0xf0]  ;;  %v4216_v51 = vld [vmem:[%s9564_s2 + $0x98] sm:$0xf0]  ;;  %v6073_v52 = vld [vmem:[%s9564_s2 + $0x36c] sm:$0xf]  ;;  %v4215_v55 = vor.u32 %v5983_v46, %v4214_v44 }
  0x2a   :  { %1318 = vmatpush.bf16.msrb.mxu3 %v4843_v1  ;;  %v4600_v54 = vld [vmem:[%s9564_s2 + $0x398] sm:$0xf0]  ;;  %v4599_v56 = vor.u32 %v6079_v48, %v4598_v47  ;;  %v4166_v57 = vld [vmem:[%s9564_s2 + $0x8] sm:$0xf]  ;;  %v5971_v58 = vld [vmem:[%s9564_s2 + $0x34] sm:$0xf0]  ;;  %v4219_v60 = vor.u32 %v5977_v50, %v4216_v51 }
  0x2b   :  { %v4550_v59 = vld [vmem:[%s9564_s2 + $0x308] sm:$0xf]  ;;  %v6067_v61 = vld [vmem:[%s9564_s2 + $0x334] sm:$0xf0]  ;;  %v5965_v62 = vld [vmem:[%s9564_s2 + $0xc] sm:$0xf]  ;;  %v4603_v1 = vor.u32 %v6073_v52, %v4600_v54  ;;  %v4167_v8 = vor.u32 %v5971_v58, %v4166_v57 }
  0x2c   :  { %1277 = vmatpush.bf16.msrb.mxu0 %v4407_v6  ;;  %v4168_v63 = vld [vmem:[%s9564_s2 + $0x38] sm:$0xf0]  ;;  %v4510_v2 = vld [vmem:[%s9564_s2 + $0x2b0] sm:$0xf]  ;;  %v6056_v3 = vld [vmem:[%s9564_s2 + $0x2dc] sm:$0xf0] }
  0x2d   :  { %1291 = vmatpush.bf16.msrb.mxu1 %v4791_v7  ;;  %1305 = vmatpush.bf16.msrb.mxu2 %v4411_v9  ;;  %v4894_v4 = vld [vmem:[%s9564_s2 + $0x5b0] sm:$0xf]  ;;  %v6152_v5 = vld [vmem:[%s9564_s2 + $0x5dc] sm:$0xf0]  ;;  %v6050_v6 = vld [vmem:[%s9564_s2 + $0x2b4] sm:$0xf]  ;;  %v4551_v9 = vor.u32 %v6067_v61, %v4550_v59  ;;  %v4171_v12 = vor.u32 %v5965_v62, %v4168_v63 }
  0x2e   :  { %1319 = vmatpush.bf16.msrb.mxu3 %v4795_v13  ;;  %v4512_v7 = vld [vmem:[%s9564_s2 + $0x2e0] sm:$0xf0]  ;;  %v6061_v10 = vld [vmem:[%s9564_s2 + $0x30c] sm:$0xf]  ;;  %v4552_v11 = vld [vmem:[%s9564_s2 + $0x338] sm:$0xf0]  ;;  %v4511_v13 = vor.u32 %v6056_v3, %v4510_v2  ;;  %v4895_v16 = vor.u32 %v6152_v5, %v4894_v4 }
  0x2f   :  { %v6146_v14 = vld [vmem:[%s9564_s2 + $0x5b4] sm:$0xf]  ;;  %v4896_v15 = vld [vmem:[%s9564_s2 + $0x5e0] sm:$0xf0]  ;;  %v4515_v17 = vor.u32 %v6050_v6, %v4512_v7  ;;  %v4846_v20 = vld [vmem:[%s9564_s2 + $0x550] sm:$0xf] }
  0x30   :  { %1278 = vmatpush.bf16.msrb.mxu0 %v4359_v18  ;;  %v4462_v18 = vld [vmem:[%s9564_s2 + $0x250] sm:$0xf]  ;;  %v6140_v22 = vld [vmem:[%s9564_s2 + $0x57c] sm:$0xf0]  ;;  %v6038_v23 = vld [vmem:[%s9564_s2 + $0x254] sm:$0xf] }
  0x31   :  { %1292 = vmatpush.bf16.msrb.mxu1 %v4743_v19  ;;  %1306 = vmatpush.bf16.msrb.mxu2 %v4363_v21  ;;  %v6044_v19 = vld [vmem:[%s9564_s2 + $0x27c] sm:$0xf0]  ;;  %v4555_v21 = vor.u32 %v6061_v10, %v4552_v11  ;;  %v4464_v24 = vld [vmem:[%s9564_s2 + $0x280] sm:$0xf0]  ;;  %v6134_v27 = vld [vmem:[%s9564_s2 + $0x554] sm:$0xf]  ;;  %v4847_v29 = vor.u32 %v6140_v22, %v4846_v20 }
  0x32   :  { %1320 = vmatpush.bf16.msrb.mxu3 %v4747_v25  ;;  %v4899_v25 = vor.u32 %v6146_v14, %v4896_v15  ;;  %v4463_v26 = vor.u32 %v6044_v19, %v4462_v18  ;;  %v4848_v28 = vld [vmem:[%s9564_s2 + $0x580] sm:$0xf0]  ;;  %v6032_v32 = vld [vmem:[%s9564_s2 + $0x21c] sm:$0xf0]  ;;  %v6026_v35 = vld [vmem:[%s9564_s2 + $0x1f4] sm:$0xf] }
  0x33   :  { %v6128_v34 = vld [vmem:[%s9564_s2 + $0x51c] sm:$0xf0]  ;;  %v4416_v36 = vld [vmem:[%s9564_s2 + $0x220] sm:$0xf0]  ;;  %v6122_v39 = vld [vmem:[%s9564_s2 + $0x4f4] sm:$0xf] }
  0x34   :  { %1279 = vmatpush.bf16.msrb.mxu0 %v4311_v30  ;;  %v4467_v30 = vor.u32 %v6038_v23, %v4464_v24  ;;  %v4800_v40 = vld [vmem:[%s9564_s2 + $0x520] sm:$0xf0]  ;;  %v6020_v44 = vld [vmem:[%s9564_s2 + $0x1bc] sm:$0xf0]  ;;  %v6014_v47 = vld [vmem:[%s9564_s2 + $0x194] sm:$0xf] }
  0x35   :  { %1293 = vmatpush.bf16.msrb.mxu1 %v4695_v31  ;;  %1307 = vmatpush.bf16.msrb.mxu2 %v4315_v33  ;;  %v4414_v31 = vld [vmem:[%s9564_s2 + $0x1f0] sm:$0xf]  ;;  %v6116_v46 = vld [vmem:[%s9564_s2 + $0x4bc] sm:$0xf0]  ;;  %v4368_v48 = vld [vmem:[%s9564_s2 + $0x1c0] sm:$0xf0] }
  0x36   :  { %1321 = vmatpush.bf16.msrb.mxu3 %v4699_v37  ;;  %v4798_v33 = vld [vmem:[%s9564_s2 + $0x4f0] sm:$0xf]  ;;  %v4851_v37 = vor.u32 %v6134_v27, %v4848_v28  ;;  %v4415_v38 = vor.u32 %v6032_v32, %v4414_v31  ;;  %v6110_v51 = vld [vmem:[%s9564_s2 + $0x494] sm:$0xf]  ;;  %v4752_v52 = vld [vmem:[%s9564_s2 + $0x4c0] sm:$0xf0] }
  0x37   :  { %v4799_v41 = vor.u32 %v6128_v34, %v4798_v33  ;;  %v6008_v57 = vld [vmem:[%s9564_s2 + $0x15c] sm:$0xf0]  ;;  %v4702_v58 = vld [vmem:[%s9564_s2 + $0x430] sm:$0xf]  ;;  %v4320_v61 = vld [vmem:[%s9564_s2 + $0x160] sm:$0xf0]  ;;  %v4755_v62 = vor.u32 %v6110_v51, %v4752_v52 }
  0x38   :  { %1280 = vmatpush.bf16.msrb.mxu0 %v4263_v42  ;;  %v4419_v42 = vor.u32 %v6026_v35, %v4416_v36  ;;  %v6104_v59 = vld [vmem:[%s9564_s2 + $0x45c] sm:$0xf0]  ;;  %v4704_v2 = vld [vmem:[%s9564_s2 + $0x460] sm:$0xf0]  ;;  %v4270_v5 = vld [vmem:[%s9564_s2 + $0xd0] sm:$0xf] }
  0x39   :  { %1294 = vmatpush.bf16.msrb.mxu1 %v4647_v43  ;;  %1308 = vmatpush.bf16.msrb.mxu2 %v4267_v45  ;;  %v4366_v43 = vld [vmem:[%s9564_s2 + $0x190] sm:$0xf]  ;;  %v4703_v3 = vor.u32 %v6104_v59, %v4702_v58  ;;  %v5996_v6 = vld [vmem:[%s9564_s2 + $0xfc] sm:$0xf0]  ;;  %v4272_v10 = vld [vmem:[%s9564_s2 + $0x100] sm:$0xf0] }
  0x3a   :  { %1322 = vmatpush.bf16.msrb.mxu3 %v4651_v49  ;;  %v4750_v45 = vld [vmem:[%s9564_s2 + $0x490] sm:$0xf]  ;;  %v4803_v49 = vor.u32 %v6122_v39, %v4800_v40  ;;  %v4367_v50 = vor.u32 %v6020_v44, %v4366_v43  ;;  %v4656_v14 = vld [vmem:[%s9564_s2 + $0x400] sm:$0xf0]  ;;  %v5984_v18 = vld [vmem:[%s9564_s2 + $0x9c] sm:$0xf0] }
  0x3b   :  { %v4751_v54 = vor.u32 %v6116_v46, %v4750_v45  ;;  %v4654_v7 = vld [vmem:[%s9564_s2 + $0x3d0] sm:$0xf]  ;;  %v6080_v20 = vld [vmem:[%s9564_s2 + $0x39c] sm:$0xf0]  ;;  %v4224_v22 = vld [vmem:[%s9564_s2 + $0xa0] sm:$0xf0] }
  0x3c   :  { %1281 = vmatpush.bf16.msrb.mxu0 %v4215_v55  ;;  %v4371_v55 = vor.u32 %v6014_v47, %v4368_v48  ;;  %v4606_v19 = vld [vmem:[%s9564_s2 + $0x370] sm:$0xf]  ;;  %v6074_v24 = vld [vmem:[%s9564_s2 + $0x374] sm:$0xf] }
  0x3d   :  { %1295 = vmatpush.bf16.msrb.mxu1 %v4599_v56  ;;  %1309 = vmatpush.bf16.msrb.mxu2 %v4219_v60  ;;  %v4318_v56 = vld [vmem:[%s9564_s2 + $0x130] sm:$0xf]  ;;  %v6002_v60 = vld [vmem:[%s9564_s2 + $0x134] sm:$0xf] }
  0x3e   :  { %1323 = vmatpush.bf16.msrb.mxu3 %v4603_v1  ;;  %v4319_v63 = vor.u32 %v6008_v57, %v4318_v56  ;;  %v6098_v1 = vld [vmem:[%s9564_s2 + $0x434] sm:$0xf]  ;;  %v4323_v4 = vor.u32 %v6002_v60, %v4320_v61 }
  0x3f   :  { %v4707_v11 = vor.u32 %v6098_v1, %v4704_v2 }
  0x40   :  { %1282 = vmatpush.bf16.msrb.mxu0 %v4167_v8  ;;  %v6092_v8 = vld [vmem:[%s9564_s2 + $0x3fc] sm:$0xf0] }
  0x41   :  { %1296 = vmatpush.bf16.msrb.mxu1 %v4551_v9  ;;  %1310 = vmatpush.bf16.msrb.mxu2 %v4171_v12  ;;  %v5990_v9 = vld [vmem:[%s9564_s2 + $0xd4] sm:$0xf]  ;;  %v4271_v12 = vor.u32 %v5996_v6, %v4270_v5  ;;  %v4655_v15 = vor.u32 %v6092_v8, %v4654_v7 }
  0x42   :  { %1324 = vmatpush.bf16.msrb.mxu3 %v4555_v21  ;;  %v5978_v21 = vld [vmem:[%s9564_s2 + $0x74] sm:$0xf] }
  0x43   :  { %1283 = vmatmul.bf16.vlgmr.msrb.gmra.mxu0 %v6800_v53 }
  0x44   :  { %1331 = vmatpush.bf16.msra.mxu0 %v4511_v13  ;;  %1297 = vmatmul.bf16.vlgmr.msrb.gmra.mxu1 %v6823_v0  ;;  %v6086_v13 = vld [vmem:[%s9564_s2 + $0x3d4] sm:$0xf] }
  0x45   :  { %1345 = vmatpush.bf16.msra.mxu1 %v4895_v16  ;;  %1359 = vmatpush.bf16.msra.mxu2 %v4515_v17  ;;  %v4275_v16 = vor.u32 %v5990_v9, %v4272_v10  ;;  %v4222_v17 = vld [vmem:[%s9564_s2 + $0x70] sm:$0xf]  ;;  %v4659_v23 = vor.u32 %v6086_v13, %v4656_v14 }
  0x46   :  { %1373 = vmatpush.bf16.msra.mxu3 %v4899_v25  ;;  %1311 = vmatmul.bf16.vlgmr.msrb.gmra.mxu2 %v6800_v53 }
  0x47   :  { %1325 = vmatmul.bf16.vlgmr.msrb.gmra.mxu3 %v6823_v0 }
  0x48   :  { %1332 = vmatpush.bf16.msra.mxu0 %v4463_v26 }
  0x49   :  { %1346 = vmatpush.bf16.msra.mxu1 %v4847_v29  ;;  %1360 = vmatpush.bf16.msra.mxu2 %v4467_v30 }
  0x4a   :  { %1374 = vmatpush.bf16.msra.mxu3 %v4851_v37 }
  0x4c   :  { %1333 = vmatpush.bf16.msra.mxu0 %v4415_v38 }
  0x4d   :  { %1347 = vmatpush.bf16.msra.mxu1 %v4799_v41  ;;  %1361 = vmatpush.bf16.msra.mxu2 %v4419_v42 }
  0x4e   :  { %1375 = vmatpush.bf16.msra.mxu3 %v4803_v49 }
  0x50   :  { %1334 = vmatpush.bf16.msra.mxu0 %v4367_v50 }
  0x51   :  { %1348 = vmatpush.bf16.msra.mxu1 %v4751_v54  ;;  %1362 = vmatpush.bf16.msra.mxu2 %v4371_v55 }
  0x52   :  { %1376 = vmatpush.bf16.msra.mxu3 %v4755_v62 }
  0x54   :  { %1335 = vmatpush.bf16.msra.mxu0 %v4319_v63 }
  0x55   :  { %1349 = vmatpush.bf16.msra.mxu1 %v4703_v3  ;;  %1363 = vmatpush.bf16.msra.mxu2 %v4323_v4 }
  0x56   :  { %1377 = vmatpush.bf16.msra.mxu3 %v4707_v11 }
  0x57   :  { %12 = vsyncpa [#allocation3], 0  ;;  %v4223_v25 = vor.u32 %v5984_v18, %v4222_v17  ;;  %v4608_v26 = vld [vmem:[%s9564_s2 + $0x3a0] sm:$0xf0]  ;;  %v4174_v27 = vld [vmem:[%s9564_s2 + $0x10] sm:$0xf]  ;;  %v4607_v29 = vor.u32 %v6080_v20, %v4606_v19  ;;  %v4227_v30 = vor.u32 %v5978_v21, %v4224_v22 }
  0x58   :  { %1336 = vmatpush.bf16.msra.mxu0 %v4271_v12  ;;  %v5972_v28 = vld [vmem:[%s9564_s2 + $0x3c] sm:$0xf0]  ;;  %v4558_v31 = vld [vmem:[%s9564_s2 + $0x310] sm:$0xf]  ;;  %v5966_v33 = vld [vmem:[%s9564_s2 + $0x14] sm:$0xf]  ;;  %v4611_v37 = vor.u32 %v6074_v24, %v4608_v26 }
  0x59   :  { %1350 = vmatpush.bf16.msra.mxu1 %v4655_v15  ;;  %1364 = vmatpush.bf16.msra.mxu2 %v4275_v16  ;;  %v6068_v32 = vld [vmem:[%s9564_s2 + $0x33c] sm:$0xf0]  ;;  %v4176_v34 = vld [vmem:[%s9564_s2 + $0x40] sm:$0xf0]  ;;  %v4518_v35 = vld [vmem:[%s9564_s2 + $0x2b8] sm:$0xf]  ;;  %v4175_v41 = vor.u32 %v5972_v28, %v4174_v27 }
  0x5a   :  { %v6057_v36 = vld [vmem:[%s9564_s2 + $0x2e4] sm:$0xf0]  ;;  %1378 = vmatpush.bf16.msra.mxu3 %v4659_v23  ;;  %v4902_v38 = vld [vmem:[%s9564_s2 + $0x5b8] sm:$0xf]  ;;  %v6051_v40 = vld [vmem:[%s9564_s2 + $0x2bc] sm:$0xf]  ;;  %v4559_v45 = vor.u32 %v6068_v32, %v4558_v31  ;;  %v4179_v46 = vor.u32 %v5966_v33, %v4176_v34 }
  0x5b   :  { %v6153_v39 = vld [vmem:[%s9564_s2 + $0x5e4] sm:$0xf0]  ;;  %v4520_v42 = vld [vmem:[%s9564_s2 + $0x2e8] sm:$0xf0]  ;;  %v6062_v43 = vld [vmem:[%s9564_s2 + $0x314] sm:$0xf]  ;;  %v4519_v49 = vor.u32 %v6057_v36, %v4518_v35 }
  0x5c   :  { %1337 = vmatpush.bf16.msra.mxu0 %v4223_v25  ;;  %v4560_v44 = vld [vmem:[%s9564_s2 + $0x340] sm:$0xf0]  ;;  %v6147_v47 = vld [vmem:[%s9564_s2 + $0x5bc] sm:$0xf]  ;;  %v4904_v48 = vld [vmem:[%s9564_s2 + $0x5e8] sm:$0xf0]  ;;  %v4903_v50 = vor.u32 %v6153_v39, %v4902_v38  ;;  %v4523_v52 = vor.u32 %v6051_v40, %v4520_v42 }
  0x5d   :  { %1351 = vmatpush.bf16.msra.mxu1 %v4607_v29  ;;  %1365 = vmatpush.bf16.msra.mxu2 %v4227_v30  ;;  %v4470_v51 = vld [vmem:[%s9564_s2 + $0x258] sm:$0xf]  ;;  %v4563_v54 = vor.u32 %v6062_v43, %v4560_v44  ;;  %v6045_v55 = vld [vmem:[%s9564_s2 + $0x284] sm:$0xf0]  ;;  %v4907_v58 = vor.u32 %v6147_v47, %v4904_v48  ;;  %v6039_v59 = vld [vmem:[%s9564_s2 + $0x25c] sm:$0xf] }
  0x5e   :  { %1379 = vmatpush.bf16.msra.mxu3 %v4611_v37  ;;  %v4854_v56 = vld [vmem:[%s9564_s2 + $0x558] sm:$0xf]  ;;  %v6141_v57 = vld [vmem:[%s9564_s2 + $0x584] sm:$0xf0]  ;;  %v4472_v60 = vld [vmem:[%s9564_s2 + $0x288] sm:$0xf0]  ;;  %v4471_v63 = vor.u32 %v6045_v55, %v4470_v51 }
  0x5f   :  { %v6135_v61 = vld [vmem:[%s9564_s2 + $0x55c] sm:$0xf]  ;;  %v4856_v62 = vld [vmem:[%s9564_s2 + $0x588] sm:$0xf0]  ;;  %v4855_v1 = vor.u32 %v6141_v57, %v4854_v56  ;;  %v4422_v2 = vld [vmem:[%s9564_s2 + $0x1f8] sm:$0xf]  ;;  %v4475_v3 = vor.u32 %v6039_v59, %v4472_v60 }
  0x60   :  { %1338 = vmatpush.bf16.msra.mxu0 %v4175_v41  ;;  %v6033_v4 = vld [vmem:[%s9564_s2 + $0x224] sm:$0xf0]  ;;  %v4806_v5 = vld [vmem:[%s9564_s2 + $0x4f8] sm:$0xf]  ;;  %v4859_v7 = vor.u32 %v6135_v61, %v4856_v62  ;;  %v6027_v8 = vld [vmem:[%s9564_s2 + $0x1fc] sm:$0xf] }
  0x61   :  { %1352 = vmatpush.bf16.msra.mxu1 %v4559_v45  ;;  %1366 = vmatpush.bf16.msra.mxu2 %v4179_v46  ;;  %v6129_v6 = vld [vmem:[%s9564_s2 + $0x524] sm:$0xf0]  ;;  %v4424_v9 = vld [vmem:[%s9564_s2 + $0x228] sm:$0xf0]  ;;  %v6123_v10 = vld [vmem:[%s9564_s2 + $0x4fc] sm:$0xf]  ;;  %v4423_v12 = vor.u32 %v6033_v4, %v4422_v2 }
  0x62   :  { %1380 = vmatpush.bf16.msra.mxu3 %v4563_v54  ;;  %v4808_v11 = vld [vmem:[%s9564_s2 + $0x528] sm:$0xf0]  ;;  %v4807_v13 = vor.u32 %v6129_v6, %v4806_v5  ;;  %v4374_v14 = vld [vmem:[%s9564_s2 + $0x198] sm:$0xf]  ;;  %v4427_v15 = vor.u32 %v6027_v8, %v4424_v9  ;;  %v6021_v16 = vld [vmem:[%s9564_s2 + $0x1c4] sm:$0xf0] }
  0x63   :  { %1339 = vmatmul.bf16.vlgmr.msra.gmra.mxu0 %v6800_v53  ;;  %v4758_v17 = vld [vmem:[%s9564_s2 + $0x498] sm:$0xf]  ;;  %v6117_v18 = vld [vmem:[%s9564_s2 + $0x4c4] sm:$0xf0]  ;;  %v4811_v19 = vor.u32 %v6123_v10, %v4808_v11  ;;  %v6015_v20 = vld [vmem:[%s9564_s2 + $0x19c] sm:$0xf]  ;;  %v4375_v24 = vor.u32 %v6021_v16, %v4374_v14 }
  0x64   :  { %1387 = vmatpush.bf16.msrb.mxu0 %v4519_v49  ;;  %1353 = vmatmul.bf16.vlgmr.msra.gmra.mxu1 %v6823_v0  ;;  %v4376_v21 = vld [vmem:[%s9564_s2 + $0x1c8] sm:$0xf0]  ;;  %v6111_v22 = vld [vmem:[%s9564_s2 + $0x49c] sm:$0xf]  ;;  %v4759_v25 = vor.u32 %v6117_v18, %v4758_v17  ;;  %v4326_v26 = vld [vmem:[%s9564_s2 + $0x138] sm:$0xf] }
  0x65   :  { %1401 = vmatpush.bf16.msrb.mxu1 %v4903_v50  ;;  %1415 = vmatpush.bf16.msrb.mxu2 %v4523_v52  ;;  %v4760_v23 = vld [vmem:[%s9564_s2 + $0x4c8] sm:$0xf0]  ;;  %v4379_v27 = vor.u32 %v6015_v20, %v4376_v21  ;;  %v6009_v28 = vld [vmem:[%s9564_s2 + $0x164] sm:$0xf0]  ;;  %v4710_v29 = vld [vmem:[%s9564_s2 + $0x438] sm:$0xf] }
  0x66   :  { %1429 = vmatpush.bf16.msrb.mxu3 %v4907_v58  ;;  %1367 = vmatmul.bf16.vlgmr.msra.gmra.mxu2 %v6800_v53  ;;  %v6105_v30 = vld [vmem:[%s9564_s2 + $0x464] sm:$0xf0]  ;;  %v4763_v31 = vor.u32 %v6111_v22, %v4760_v23  ;;  %v6003_v32 = vld [vmem:[%s9564_s2 + $0x13c] sm:$0xf]  ;;  %v4328_v33 = vld [vmem:[%s9564_s2 + $0x168] sm:$0xf0]  ;;  %v4327_v36 = vor.u32 %v6009_v28, %v4326_v26 }
  0x67   :  { %1381 = vmatmul.bf16.vlgmr.msra.gmra.mxu3 %v6823_v0  ;;  %v6099_v34 = vld [vmem:[%s9564_s2 + $0x43c] sm:$0xf]  ;;  %v4712_v35 = vld [vmem:[%s9564_s2 + $0x468] sm:$0xf0]  ;;  %v4711_v37 = vor.u32 %v6105_v30, %v4710_v29  ;;  %v4278_v38 = vld [vmem:[%s9564_s2 + $0xd8] sm:$0xf]  ;;  %v4331_v39 = vor.u32 %v6003_v32, %v4328_v33 }
  0x68   :  { %1388 = vmatpush.bf16.msrb.mxu0 %v4471_v63  ;;  %v5997_v40 = vld [vmem:[%s9564_s2 + $0x104] sm:$0xf0]  ;;  %v4662_v41 = vld [vmem:[%s9564_s2 + $0x3d8] sm:$0xf]  ;;  %v4715_v43 = vor.u32 %v6099_v34, %v4712_v35  ;;  %v5991_v44 = vld [vmem:[%s9564_s2 + $0xdc] sm:$0xf] }
  0x69   :  { %1402 = vmatpush.bf16.msrb.mxu1 %v4855_v1  ;;  %1416 = vmatpush.bf16.msrb.mxu2 %v4475_v3  ;;  %v6093_v42 = vld [vmem:[%s9564_s2 + $0x404] sm:$0xf0]  ;;  %v4280_v45 = vld [vmem:[%s9564_s2 + $0x108] sm:$0xf0]  ;;  %v6087_v46 = vld [vmem:[%s9564_s2 + $0x3dc] sm:$0xf]  ;;  %v4279_v48 = vor.u32 %v5997_v40, %v4278_v38 }
  0x6a   :  { %1430 = vmatpush.bf16.msrb.mxu3 %v4859_v7  ;;  %v4664_v47 = vld [vmem:[%s9564_s2 + $0x408] sm:$0xf0]  ;;  %v4663_v49 = vor.u32 %v6093_v42, %v4662_v41  ;;  %v4230_v50 = vld [vmem:[%s9564_s2 + $0x78] sm:$0xf]  ;;  %v4283_v51 = vor.u32 %v5991_v44, %v4280_v45  ;;  %v5985_v52 = vld [vmem:[%s9564_s2 + $0xa4] sm:$0xf0] }
  0x6b   :  { %v4614_v54 = vld [vmem:[%s9564_s2 + $0x378] sm:$0xf]  ;;  %v6081_v55 = vld [vmem:[%s9564_s2 + $0x3a4] sm:$0xf0]  ;;  %v4667_v56 = vor.u32 %v6087_v46, %v4664_v47  ;;  %v5979_v57 = vld [vmem:[%s9564_s2 + $0x7c] sm:$0xf]  ;;  %v4231_v61 = vor.u32 %v5985_v52, %v4230_v50 }
  0x6c   :  { %1389 = vmatpush.bf16.msrb.mxu0 %v4423_v12  ;;  %v4232_v58 = vld [vmem:[%s9564_s2 + $0xa8] sm:$0xf0]  ;;  %v6075_v59 = vld [vmem:[%s9564_s2 + $0x37c] sm:$0xf]  ;;  %v4615_v62 = vor.u32 %v6081_v55, %v4614_v54  ;;  %v4182_v63 = vld [vmem:[%s9564_s2 + $0x18] sm:$0xf] }
  0x6d   :  { %1403 = vmatpush.bf16.msrb.mxu1 %v4807_v13  ;;  %1417 = vmatpush.bf16.msrb.mxu2 %v4427_v15  ;;  %v4616_v60 = vld [vmem:[%s9564_s2 + $0x3a8] sm:$0xf0]  ;;  %v5973_v1 = vld [vmem:[%s9564_s2 + $0x44] sm:$0xf0]  ;;  %v4566_v2 = vld [vmem:[%s9564_s2 + $0x318] sm:$0xf]  ;;  %v4235_v3 = vor.u32 %v5979_v57, %v4232_v58 }
  0x6e   :  { %1431 = vmatpush.bf16.msrb.mxu3 %v4811_v19  ;;  %v6069_v4 = vld [vmem:[%s9564_s2 + $0x344] sm:$0xf0]  ;;  %v5967_v5 = vld [vmem:[%s9564_s2 + $0x1c] sm:$0xf]  ;;  %v4184_v6 = vld [vmem:[%s9564_s2 + $0x48] sm:$0xf0]  ;;  %v4619_v7 = vor.u32 %v6075_v59, %v4616_v60  ;;  %v4183_v14 = vor.u32 %v5973_v1, %v4182_v63 }
  0x6f   :  { %v4526_v8 = vld [vmem:[%s9564_s2 + $0x2c0] sm:$0xf]  ;;  %v6058_v9 = vld [vmem:[%s9564_s2 + $0x2ec] sm:$0xf0]  ;;  %v6063_v12 = vld [vmem:[%s9564_s2 + $0x31c] sm:$0xf]  ;;  %v4567_v15 = vor.u32 %v6069_v4, %v4566_v2  ;;  %v4187_v16 = vor.u32 %v5967_v5, %v4184_v6 }
  0x70   :  { %1390 = vmatpush.bf16.msrb.mxu0 %v4375_v24  ;;  %v4910_v10 = vld [vmem:[%s9564_s2 + $0x5c0] sm:$0xf]  ;;  %v6154_v11 = vld [vmem:[%s9564_s2 + $0x5ec] sm:$0xf0]  ;;  %v4568_v13 = vld [vmem:[%s9564_s2 + $0x348] sm:$0xf0]  ;;  %v4527_v17 = vor.u32 %v6058_v9, %v4526_v8 }
  0x71   :  { %1404 = vmatpush.bf16.msrb.mxu1 %v4759_v25  ;;  %1418 = vmatpush.bf16.msrb.mxu2 %v4379_v27  ;;  %v4478_v18 = vld [vmem:[%s9564_s2 + $0x260] sm:$0xf]  ;;  %v6046_v19 = vld [vmem:[%s9564_s2 + $0x28c] sm:$0xf0]  ;;  %v4911_v20 = vor.u32 %v6154_v11, %v4910_v10  ;;  %v4571_v21 = vor.u32 %v6063_v12, %v4568_v13  ;;  %v6052_v24 = vld [vmem:[%s9564_s2 + $0x2c4] sm:$0xf] }
  0x72   :  { %1432 = vmatpush.bf16.msrb.mxu3 %v4763_v31  ;;  %v4862_v22 = vld [vmem:[%s9564_s2 + $0x560] sm:$0xf]  ;;  %v6142_v23 = vld [vmem:[%s9564_s2 + $0x58c] sm:$0xf0]  ;;  %v4528_v25 = vld [vmem:[%s9564_s2 + $0x2f0] sm:$0xf0]  ;;  %v4479_v29 = vor.u32 %v6046_v19, %v4478_v18 }
  0x73   :  { %v6148_v26 = vld [vmem:[%s9564_s2 + $0x5c4] sm:$0xf]  ;;  %v4912_v27 = vld [vmem:[%s9564_s2 + $0x5f0] sm:$0xf0]  ;;  %v4430_v30 = vld [vmem:[%s9564_s2 + $0x200] sm:$0xf]  ;;  %v4863_v32 = vor.u32 %v6142_v23, %v4862_v22  ;;  %v4531_v35 = vor.u32 %v6052_v24, %v4528_v25 }
  0x74   :  { %1391 = vmatpush.bf16.msrb.mxu0 %v4327_v36  ;;  %v4915_v28 = vor.u32 %v6148_v26, %v4912_v27  ;;  %v6034_v31 = vld [vmem:[%s9564_s2 + $0x22c] sm:$0xf0]  ;;  %v4814_v33 = vld [vmem:[%s9564_s2 + $0x500] sm:$0xf]  ;;  %v6040_v36 = vld [vmem:[%s9564_s2 + $0x264] sm:$0xf] }
  0x75   :  { %1405 = vmatpush.bf16.msrb.mxu1 %v4711_v37  ;;  %1419 = vmatpush.bf16.msrb.mxu2 %v4331_v39  ;;  %v6130_v34 = vld [vmem:[%s9564_s2 + $0x52c] sm:$0xf0]  ;;  %v4480_v37 = vld [vmem:[%s9564_s2 + $0x290] sm:$0xf0]  ;;  %v6136_v38 = vld [vmem:[%s9564_s2 + $0x564] sm:$0xf]  ;;  %v4431_v41 = vor.u32 %v6034_v31, %v4430_v30 }
  0x76   :  { %1433 = vmatpush.bf16.msrb.mxu3 %v4715_v43  ;;  %v4864_v39 = vld [vmem:[%s9564_s2 + $0x590] sm:$0xf0]  ;;  %v4382_v42 = vld [vmem:[%s9564_s2 + $0x1a0] sm:$0xf]  ;;  %v6022_v43 = vld [vmem:[%s9564_s2 + $0x1cc] sm:$0xf0]  ;;  %v4815_v44 = vor.u32 %v6130_v34, %v4814_v33  ;;  %v4483_v47 = vor.u32 %v6040_v36, %v4480_v37 }
  0x77   :  { %v4867_v40 = vor.u32 %v6136_v38, %v4864_v39  ;;  %v4766_v45 = vld [vmem:[%s9564_s2 + $0x4a0] sm:$0xf]  ;;  %v6118_v46 = vld [vmem:[%s9564_s2 + $0x4cc] sm:$0xf0]  ;;  %v6124_v50 = vld [vmem:[%s9564_s2 + $0x504] sm:$0xf]  ;;  %v4383_v54 = vor.u32 %v6022_v43, %v4382_v42 }
  0x78   :  { %1392 = vmatpush.bf16.msrb.mxu0 %v4279_v48  ;;  %v6028_v48 = vld [vmem:[%s9564_s2 + $0x204] sm:$0xf]  ;;  %v4334_v55 = vld [vmem:[%s9564_s2 + $0x140] sm:$0xf]  ;;  %v4767_v57 = vor.u32 %v6118_v46, %v4766_v45  ;;  %v6106_v59 = vld [vmem:[%s9564_s2 + $0x46c] sm:$0xf0] }
  0x79   :  { %1406 = vmatpush.bf16.msrb.mxu1 %v4663_v49  ;;  %1420 = vmatpush.bf16.msrb.mxu2 %v4283_v51  ;;  %v4432_v49 = vld [vmem:[%s9564_s2 + $0x230] sm:$0xf0]  ;;  %v4718_v58 = vld [vmem:[%s9564_s2 + $0x440] sm:$0xf]  ;;  %v6112_v63 = vld [vmem:[%s9564_s2 + $0x4a4] sm:$0xf] }
  0x7a   :  { %1434 = vmatpush.bf16.msrb.mxu3 %v4667_v56  ;;  %v4816_v51 = vld [vmem:[%s9564_s2 + $0x530] sm:$0xf0]  ;;  %v6010_v56 = vld [vmem:[%s9564_s2 + $0x16c] sm:$0xf0]  ;;  %v4435_v60 = vor.u32 %v6028_v48, %v4432_v49  ;;  %v4286_v4 = vld [vmem:[%s9564_s2 + $0xe0] sm:$0xf]  ;;  %v4719_v6 = vor.u32 %v6106_v59, %v4718_v58 }
  0x7b   :  { %v4819_v52 = vor.u32 %v6124_v50, %v4816_v51  ;;  %v4768_v1 = vld [vmem:[%s9564_s2 + $0x4d0] sm:$0xf0]  ;;  %v5998_v5 = vld [vmem:[%s9564_s2 + $0x10c] sm:$0xf0]  ;;  %v6004_v10 = vld [vmem:[%s9564_s2 + $0x144] sm:$0xf] }
  0x7c   :  { %1393 = vmatpush.bf16.msrb.mxu0 %v4231_v61  ;;  %v6016_v61 = vld [vmem:[%s9564_s2 + $0x1a4] sm:$0xf]  ;;  %v4771_v2 = vor.u32 %v6112_v63, %v4768_v1  ;;  %v6094_v8 = vld [vmem:[%s9564_s2 + $0x40c] sm:$0xf0]  ;;  %v4336_v11 = vld [vmem:[%s9564_s2 + $0x170] sm:$0xf0] }
  0x7d   :  { %1407 = vmatpush.bf16.msrb.mxu1 %v4615_v62  ;;  %1421 = vmatpush.bf16.msrb.mxu2 %v4235_v3  ;;  %v4384_v62 = vld [vmem:[%s9564_s2 + $0x1d0] sm:$0xf0]  ;;  %v4335_v3 = vor.u32 %v6010_v56, %v4334_v55  ;;  %v6100_v12 = vld [vmem:[%s9564_s2 + $0x444] sm:$0xf]  ;;  %v4622_v19 = vld [vmem:[%s9564_s2 + $0x380] sm:$0xf] }
  0x7e   :  { %1435 = vmatpush.bf16.msrb.mxu3 %v4619_v7  ;;  %v4670_v7 = vld [vmem:[%s9564_s2 + $0x3e0] sm:$0xf]  ;;  %v4387_v9 = vor.u32 %v6016_v61, %v4384_v62  ;;  %v4720_v13 = vld [vmem:[%s9564_s2 + $0x470] sm:$0xf0]  ;;  %v5992_v22 = vld [vmem:[%s9564_s2 + $0xe4] sm:$0xf] }
  0x7f   :  { %v4671_v18 = vor.u32 %v6094_v8, %v4670_v7  ;;  %v4288_v23 = vld [vmem:[%s9564_s2 + $0x110] sm:$0xf0]  ;;  %v6088_v24 = vld [vmem:[%s9564_s2 + $0x3e4] sm:$0xf]  ;;  %v4574_v30 = vld [vmem:[%s9564_s2 + $0x320] sm:$0xf] }
  0x80   :  { %1394 = vmatpush.bf16.msrb.mxu0 %v4183_v14  ;;  %v4723_v14 = vor.u32 %v6100_v12, %v4720_v13  ;;  %v4672_v25 = vld [vmem:[%s9564_s2 + $0x410] sm:$0xf0]  ;;  %v4534_v33 = vld [vmem:[%s9564_s2 + $0x2c8] sm:$0xf]  ;;  %v6059_v34 = vld [vmem:[%s9564_s2 + $0x2f4] sm:$0xf0] }
  0x81   :  { %1408 = vmatpush.bf16.msrb.mxu1 %v4567_v15  ;;  %1422 = vmatpush.bf16.msrb.mxu2 %v4187_v16  ;;  %v4287_v15 = vor.u32 %v5998_v5, %v4286_v4  ;;  %v4238_v16 = vld [vmem:[%s9564_s2 + $0x80] sm:$0xf]  ;;  %v4675_v26 = vor.u32 %v6088_v24, %v4672_v25  ;;  %v4918_v36 = vld [vmem:[%s9564_s2 + $0x5c8] sm:$0xf]  ;;  %v6076_v37 = vld [vmem:[%s9564_s2 + $0x384] sm:$0xf]  ;;  %v4535_v45 = vor.u32 %v6059_v34, %v4534_v33 }
  0x82   :  { %1436 = vmatpush.bf16.msrb.mxu3 %v4571_v21  ;;  %v4339_v21 = vor.u32 %v6004_v10, %v4336_v11  ;;  %v4624_v38 = vld [vmem:[%s9564_s2 + $0x3b0] sm:$0xf0]  ;;  %v6155_v39 = vld [vmem:[%s9564_s2 + $0x5f4] sm:$0xf0]  ;;  %v4486_v46 = vld [vmem:[%s9564_s2 + $0x268] sm:$0xf] }
  0x83   :  { %1395 = vmatmul.bf16.vlgmr.msrb.gmra.mxu0 %v6800_v53  ;;  %v4627_v42 = vor.u32 %v6076_v37, %v4624_v38  ;;  %v4919_v48 = vor.u32 %v6155_v39, %v4918_v36  ;;  %v4870_v49 = vld [vmem:[%s9564_s2 + $0x568] sm:$0xf]  ;;  %v6064_v51 = vld [vmem:[%s9564_s2 + $0x324] sm:$0xf]  ;;  %v4192_v56 = vld [vmem:[%s9564_s2 + $0x50] sm:$0xf0] }
  0x84   :  { %1443 = vmatpush.bf16.msra.mxu0 %v4527_v17  ;;  %1409 = vmatmul.bf16.vlgmr.msrb.gmra.mxu1 %v6823_v0  ;;  %v5986_v17 = vld [vmem:[%s9564_s2 + $0xac] sm:$0xf0]  ;;  %v5968_v55 = vld [vmem:[%s9564_s2 + $0x24] sm:$0xf]  ;;  %v6053_v59 = vld [vmem:[%s9564_s2 + $0x2cc] sm:$0xf] }
  0x85   :  { %1457 = vmatpush.bf16.msra.mxu1 %v4911_v20  ;;  %1423 = vmatmul.bf16.vlgmr.msrb.gmra.mxu2 %v6800_v53  ;;  %v6082_v20 = vld [vmem:[%s9564_s2 + $0x3ac] sm:$0xf0]  ;;  %v4239_v27 = vor.u32 %v5986_v17, %v4238_v16  ;;  %v4438_v62 = vld [vmem:[%s9564_s2 + $0x208] sm:$0xf]  ;;  %v6035_v63 = vld [vmem:[%s9564_s2 + $0x234] sm:$0xf0]  ;;  %v4195_v1 = vor.u32 %v5968_v55, %v4192_v56 }
  0x86   :  { %1485 = vmatpush.bf16.msra.mxu3 %v4915_v28  ;;  %1471 = vmatpush.bf16.msra.mxu2 %v4531_v35  ;;  %v4190_v28 = vld [vmem:[%s9564_s2 + $0x20] sm:$0xf]  ;;  %v4623_v31 = vor.u32 %v6082_v20, %v4622_v19  ;;  %v4291_v35 = vor.u32 %v5992_v22, %v4288_v23  ;;  %v6041_v5 = vld [vmem:[%s9564_s2 + $0x26c] sm:$0xf]  ;;  %v4439_v7 = vor.u32 %v6035_v63, %v4438_v62  ;;  %v6023_v10 = vld [vmem:[%s9564_s2 + $0x1d4] sm:$0xf0] }
  0x87   :  { %1437 = vmatmul.bf16.vlgmr.msrb.gmra.mxu3 %v6823_v0  ;;  %v4774_v11 = vld [vmem:[%s9564_s2 + $0x4a8] sm:$0xf]  ;;  %v6119_v12 = vld [vmem:[%s9564_s2 + $0x4d4] sm:$0xf0]  ;;  %v7664_v38 = vld [vmem:[%s9565_s3] sm:$0xff]  ;;  %vm1586_vm0 = vcmask 130048  }
  0x88   :  { %1444 = vmatpush.bf16.msra.mxu0 %v4479_v29  ;;  %v5974_v29 = vld [vmem:[%s9564_s2 + $0x4c] sm:$0xf0]  ;;  %v4342_v16 = vld [vmem:[%s9564_s2 + $0x148] sm:$0xf]  ;;  %v6011_v17 = vld [vmem:[%s9564_s2 + $0x174] sm:$0xf0] }
  0x89   :  { %1458 = vmatpush.bf16.msra.mxu1 %v4863_v32  ;;  %v6070_v32 = vld [vmem:[%s9564_s2 + $0x34c] sm:$0xf0]  ;;  %v4191_v43 = vor.u32 %v5974_v29, %v4190_v28  ;;  %v6107_v19 = vld [vmem:[%s9564_s2 + $0x474] sm:$0xf0]  ;;  %v4343_v20 = vor.u32 %v6011_v17, %v4342_v16  ;;  %v4294_v22 = vld [vmem:[%s9564_s2 + $0xe8] sm:$0xf] }
  0x8a   :  { %1486 = vmatpush.bf16.msra.mxu3 %v4867_v40  ;;  %1472 = vmatpush.bf16.msra.mxu2 %v4483_v47  ;;  %v5980_v40 = vld [vmem:[%s9564_s2 + $0x84] sm:$0xf]  ;;  %v6047_v47 = vld [vmem:[%s9564_s2 + $0x294] sm:$0xf0]  ;;  %v4678_v24 = vld [vmem:[%s9564_s2 + $0x3e8] sm:$0xf] }
  0x8b   :  { %v4487_v58 = vor.u32 %v6047_v47, %v4486_v46  ;;  %v5999_v23 = vld [vmem:[%s9564_s2 + $0x114] sm:$0xf0]  ;;  %v4246_v34 = vld [vmem:[%s9564_s2 + $0x88] sm:$0xf]  ;;  %v5981_v63 = vld [vmem:[%s9564_s2 + $0x8c] sm:$0xf] }
  0x8c   :  { %1445 = vmatpush.bf16.msra.mxu0 %v4431_v41  ;;  %v4240_v41 = vld [vmem:[%s9564_s2 + $0xb0] sm:$0xf0]  ;;  %v6095_v25 = vld [vmem:[%s9564_s2 + $0x414] sm:$0xf0]  ;;  %v4295_v28 = vor.u32 %v5999_v23, %v4294_v22  ;;  %v4630_v36 = vld [vmem:[%s9564_s2 + $0x388] sm:$0xf] }
  0x8d   :  { %1459 = vmatpush.bf16.msra.mxu1 %v4815_v44  ;;  %v4575_v44 = vor.u32 %v6070_v32, %v4574_v30  ;;  %v4243_v50 = vor.u32 %v5980_v40, %v4240_v41  ;;  %v4392_v32 = vld [vmem:[%s9564_s2 + $0x1d8] sm:$0xf0]  ;;  %v4679_v33 = vor.u32 %v6095_v25, %v4678_v24  ;;  %v6083_v37 = vld [vmem:[%s9564_s2 + $0x3b4] sm:$0xf0]  ;;  %v4582_v47 = vld [vmem:[%s9564_s2 + $0x328] sm:$0xf] }
  0x8e   :  { %1487 = vmatpush.bf16.msra.mxu3 %v4819_v52  ;;  %1473 = vmatpush.bf16.msra.mxu2 %v4435_v60  ;;  %v4576_v52 = vld [vmem:[%s9564_s2 + $0x350] sm:$0xf0]  ;;  %v4536_v60 = vld [vmem:[%s9564_s2 + $0x2f8] sm:$0xf0]  ;;  %s4136_s9 = sshll.u32 %s9569_s7, 4  ;;  %s6515_s10 = smov 512   ;;  %s4137_s9 = int_to_ptr.hbm [resolvable:$true] %s4136_s9 }
  0x8f   :  { %v4539_v4 = vor.u32 %v6053_v59, %v4536_v60 }
  0x90   :  { %1446 = vmatpush.bf16.msra.mxu0 %v4383_v54  ;;  %v6143_v54 = vld [vmem:[%s9564_s2 + $0x594] sm:$0xf0] }
  0x91   :  { %1460 = vmatpush.bf16.msra.mxu1 %v4767_v57  ;;  %v4579_v57 = vor.u32 %v6064_v51, %v4576_v52  ;;  %v4871_v61 = vor.u32 %v6143_v54, %v4870_v49  ;;  %v4344_v51 = vld [vmem:[%s9564_s2 + $0x178] sm:$0xf0]  ;;  %v5993_v52 = vld [vmem:[%s9564_s2 + $0xec] sm:$0xf] }
  0x92   :  { %1488 = vmatpush.bf16.msra.mxu3 %v4771_v2  ;;  %1474 = vmatpush.bf16.msra.mxu2 %v4387_v9  ;;  %v4822_v2 = vld [vmem:[%s9564_s2 + $0x508] sm:$0xf] }
  0x93   :  { %v4390_v9 = vld [vmem:[%s9564_s2 + $0x1a8] sm:$0xf] }
  0x94   :  { %1447 = vmatpush.bf16.msra.mxu0 %v4335_v3  ;;  %v6131_v3 = vld [vmem:[%s9564_s2 + $0x534] sm:$0xf0] }
  0x95   :  { %1461 = vmatpush.bf16.msra.mxu1 %v4719_v6  ;;  %v4488_v6 = vld [vmem:[%s9564_s2 + $0x298] sm:$0xf0]  ;;  %v4823_v8 = vor.u32 %v6131_v3, %v4822_v2 }
  0x96   :  { %1489 = vmatpush.bf16.msra.mxu3 %v4723_v14  ;;  %1475 = vmatpush.bf16.msra.mxu2 %v4339_v21  ;;  %v4491_v13 = vor.u32 %v6041_v5, %v4488_v6  ;;  %v4391_v14 = vor.u32 %v6023_v10, %v4390_v9  ;;  %v225_v9 = vperm.slane %v7664_v38, 0 }
  0x98   :  { %1448 = vmatpush.bf16.msra.mxu0 %v4287_v15  ;;  %v4775_v15 = vor.u32 %v6119_v12, %v4774_v11 }
  0x99   :  { %1462 = vmatpush.bf16.msra.mxu1 %v4671_v18  ;;  %v4726_v18 = vld [vmem:[%s9564_s2 + $0x448] sm:$0xf] }
  0x9a   :  { %1490 = vmatpush.bf16.msra.mxu3 %v4675_v26  ;;  %1476 = vmatpush.bf16.msra.mxu2 %v4291_v35  ;;  %v4727_v21 = vor.u32 %v6107_v19, %v4726_v18  ;;  %v6029_v26 = vld [vmem:[%s9564_s2 + $0x20c] sm:$0xf]  ;;  %v5987_v35 = vld [vmem:[%s9564_s2 + $0xb4] sm:$0xf0] }
  0x9b   :  { %v4247_v41 = vor.u32 %v5987_v35, %v4246_v34 }
  0x9c   :  { %1449 = vmatpush.bf16.msra.mxu0 %v4239_v27  ;;  %v4440_v27 = vld [vmem:[%s9564_s2 + $0x238] sm:$0xf0] }
  0x9d   :  { %1463 = vmatpush.bf16.msra.mxu1 %v4623_v31  ;;  %v4443_v30 = vor.u32 %v6029_v26, %v4440_v27  ;;  %v6017_v31 = vld [vmem:[%s9564_s2 + $0x1ac] sm:$0xf] }
  0x9e   :  { %1491 = vmatpush.bf16.msra.mxu3 %v4627_v42  ;;  %1477 = vmatpush.bf16.msra.mxu2 %v4243_v50  ;;  %v4395_v39 = vor.u32 %v6017_v31, %v4392_v32  ;;  %v4631_v42 = vor.u32 %v6083_v37, %v4630_v36  ;;  %v6005_v50 = vld [vmem:[%s9564_s2 + $0x14c] sm:$0xf]  ;;  %v228_v36 = vperm.slane %v7664_v38, 3 }
  0x9f   :  { %v4347_v56 = vor.u32 %v6005_v50, %v4344_v51  ;;  %v6137_v32 = vld [vmem:[%s9564_s2 + $0x56c] sm:$0xf] }
  0xa0   :  { %1450 = vmatpush.bf16.msra.mxu0 %v4191_v43  ;;  %v226_v43 = vperm.slane %v7664_v38, 1  ;;  %v1228_v46 = vpop.f32.mrf.mxu0 }
  0xa1   :  { %1464 = vmatpush.bf16.msra.mxu1 %v4575_v44  ;;  %v4198_v44 = vld [vmem:[%s9564_s2 + $0x28] sm:$0xf] }
  0xa2   :  { %1492 = vmatpush.bf16.msra.mxu3 %v4579_v57  ;;  %1478 = vmatpush.bf16.msra.mxu2 %v4195_v1  ;;  %v4296_v57 = vld [vmem:[%s9564_s2 + $0x118] sm:$0xf0] }
  0xa3   :  { %1451 = vmatmul.bf16.vlgmr.msra.gmra.mxu0 %v6800_v53  ;;  %v1242_v49 = vpop.f32.mrf.mxu1  ;;  %v4248_v1 = vld [vmem:[%s9564_s2 + $0xb8] sm:$0xf0] }
  0xa4   :  { %1499 = vmatpush.bf16.msrb.mxu0 %v4535_v45  ;;  %1465 = vmatmul.bf16.vlgmr.msra.gmra.mxu1 %v6823_v0  ;;  %v5975_v45 = vld [vmem:[%s9564_s2 + $0x54] sm:$0xf0] }
  0xa5   :  { %1513 = vmatpush.bf16.msrb.mxu1 %v4919_v48  ;;  %1493 = vmatmul.bf16.vlgmr.msra.gmra.mxu3 %v6823_v0  ;;  %v6071_v48 = vld [vmem:[%s9564_s2 + $0x354] sm:$0xf0]  ;;  %v4199_v54 = vor.u32 %v5975_v45, %v4198_v44 }
  0xa6   :  { %1527 = vmatpush.bf16.msrb.mxu2 %v4539_v4  ;;  %v4251_v4 = vor.u32 %v5981_v63, %v4248_v1  ;;  %v6077_v1 = vld [vmem:[%s9564_s2 + $0x38c] sm:$0xf] }
  0xa7   :  { %1479 = vmatmul.bf16.vlgmr.msra.gmra.mxu2 %v6800_v53  ;;  %v1256_v29 = vpop.f32.mrf.mxu2 }
  0xa8   :  { %1500 = vmatpush.bf16.msrb.mxu0 %v4487_v58  ;;  %v4583_v58 = vor.u32 %v6071_v48, %v4582_v47  ;;  %v1257_v60 = vadd.f32 %v1256_v29, %v226_v43  ;;  %v1230_v5 = vpop.f32.mrf.mxu0  ;;  %v6113_v48 = vld [vmem:[%s9564_s2 + $0x4ac] sm:$0xf] }
  0xa9   :  { %1514 = vmatpush.bf16.msrb.mxu1 %v4871_v61  ;;  %v4299_v61 = vor.u32 %v5993_v52, %v4296_v57  ;;  %v1231_v19 = vadd.f32 %v1230_v5, %v225_v9 }
  0xaa   :  { %1528 = vmatpush.bf16.msrb.mxu2 %v4491_v13  ;;  %v1270_v40 = vpop.f32.mrf.mxu3  ;;  %v1229_v13 = vadd.f32 %v1228_v46, %v225_v9  ;;  %v6065_v9 = vld [vmem:[%s9564_s2 + $0x32c] sm:$0xf] }
  0xab   :  { %v1271_v3 = vadd.f32 %v1270_v40, %v1257_v60  ;;  %v1244_v6 = vpop.f32.mrf.mxu1  ;;  %v6089_v60 = vld [vmem:[%s9564_s2 + $0x3ec] sm:$0xf] }
  0xac   :  { %1501 = vmatpush.bf16.msrb.mxu0 %v4439_v7  ;;  %v5969_v7 = vld [vmem:[%s9564_s2 + $0x2c] sm:$0xf]  ;;  %v1245_v23 = vadd.f32 %v1244_v6, %v1231_v19  ;;  %v231_v19 = vperm.slane %v7664_v38, 6 }
  0xad   :  { %1515 = vmatpush.bf16.msrb.mxu1 %v4823_v8  ;;  %v4200_v8 = vld [vmem:[%s9564_s2 + $0x58] sm:$0xf0] }
  0xae   :  { %1529 = vmatpush.bf16.msrb.mxu2 %v4443_v30  ;;  %v4203_v10 = vor.u32 %v5969_v7, %v4200_v8  ;;  %v229_v30 = vperm.slane %v7664_v38, 4 }
  0xaf   :  { %v1258_v55 = vpop.f32.mrf.mxu2 }
  0xb0   :  { %1502 = vmatpush.bf16.msrb.mxu0 %v4391_v14  ;;  %v1259_v59 = vadd.f32 %v1258_v55, %v226_v43  ;;  %v227_v14 = vperm.slane %v7664_v38, 2  ;;  %v4824_v43 = vld [vmem:[%s9564_s2 + $0x538] sm:$0xf0]  ;;  %v6101_v55 = vld [vmem:[%s9564_s2 + $0x44c] sm:$0xf] }
  0xb1   :  { %1516 = vmatpush.bf16.msrb.mxu1 %v4775_v15  ;;  %v1243_v15 = vadd.f32 %v1242_v49, %v1229_v13  ;;  %v4776_v49 = vld [vmem:[%s9564_s2 + $0x4d8] sm:$0xf0] }
  0xb2   :  { %1530 = vmatpush.bf16.msrb.mxu2 %v4395_v39  ;;  %v1272_v62 = vpop.f32.mrf.mxu3  ;;  %v4779_v51 = vor.u32 %v6113_v48, %v4776_v49 }
  0xb3   :  { %v1273_v2 = vadd.f32 %v1272_v62, %v1259_v59  ;;  %v230_v59 = vperm.slane %v7664_v38, 5 }
  0xb4   :  { %1503 = vmatpush.bf16.msrb.mxu0 %v4343_v20 }
  0xb5   :  { %1517 = vmatpush.bf16.msrb.mxu1 %v4727_v21 }
  0xb6   :  { %1531 = vmatpush.bf16.msrb.mxu2 %v4347_v56  ;;  %v4728_v56 = vld [vmem:[%s9564_s2 + $0x478] sm:$0xf0] }
  0xb7   :  { %v4731_v57 = vor.u32 %v6101_v55, %v4728_v56 }
  0xb8   :  { %1504 = vmatpush.bf16.msrb.mxu0 %v4295_v28  ;;  %v4920_v28 = vld [vmem:[%s9564_s2 + $0x5f8] sm:$0xf0] }
  0xb9   :  { %1518 = vmatpush.bf16.msrb.mxu1 %v4679_v33  ;;  %v4872_v33 = vld [vmem:[%s9564_s2 + $0x598] sm:$0xf0] }
  0xba   :  { %1532 = vmatpush.bf16.msrb.mxu2 %v4299_v61  ;;  %v4875_v35 = vor.u32 %v6137_v32, %v4872_v33  ;;  %v4680_v61 = vld [vmem:[%s9564_s2 + $0x418] sm:$0xf0] }
  0xbb   :  { %v4683_v62 = vor.u32 %v6089_v60, %v4680_v61  ;;  %v6428_v60 = vld [vmem:[%s9563_s1 + $0x8] sm:$0xff]  }
  0xbc   :  { %1505 = vmatpush.bf16.msrb.mxu0 %v4247_v41  ;;  %v6418_v61 = vunpack.c.l.bf16 %v6428_v60 }
  0xbd   :  { %1519 = vmatpush.bf16.msrb.mxu1 %v4631_v42  ;;  %v6125_v42 = vld [vmem:[%s9564_s2 + $0x50c] sm:$0xf] }
  0xbe   :  { %1533 = vmatpush.bf16.msrb.mxu2 %v4251_v4  ;;  %v4827_v45 = vor.u32 %v6125_v42, %v4824_v43 }
  0xc0   :  { %1506 = vmatpush.bf16.msrb.mxu0 %v4199_v54  ;;  %v1284_v11 = vpop.f32.mrf.mxu0 }
  0xc1   :  { %1520 = vmatpush.bf16.msrb.mxu1 %v4583_v58  ;;  %v1298_v12 = vpop.f32.mrf.mxu1  ;;  %v1285_v16 = vadd.f32 %v1284_v11, %v227_v14 }
  0xc2   :  { %1534 = vmatpush.bf16.msrb.mxu2 %v4203_v10  ;;  %v4584_v10 = vld [vmem:[%s9564_s2 + $0x358] sm:$0xf0] }
  0xc3   :  { %1507 = vmatmul.bf16.vlgmr.msrb.gmra.mxu0 %v6800_v53  ;;  %v1299_v21 = vadd.f32 %v1298_v12, %v1285_v16  ;;  %v4587_v11 = vor.u32 %v6065_v9, %v4584_v10 }
  0xc4   :  { %1569 = vmatpush.xpose.msra.mxu0 %v1273_v2  ;;  %1521 = vmatmul.bf16.vlgmr.msrb.gmra.mxu1 %v6823_v0  ;;  %v4632_v2 = vld [vmem:[%s9564_s2 + $0x3b8] sm:$0xf0] }
  0xc5   :  { %1535 = vmatmul.bf16.vlgmr.msrb.gmra.mxu2 %v6800_v53  ;;  %v6149_v53 = vld [vmem:[%s9564_s2 + $0x5cc] sm:$0xf]  ;;  %v4635_v4 = vor.u32 %v6077_v1, %v4632_v2  ;;  %v6413_v2 = vld [vmem:[%s9563_s1] sm:$0xff]  }
  0xc6   :  { %v4923_v29 = vor.u32 %v6149_v53, %v4920_v28 }
  0xc8   :  { %1570 = vmatpush.xpose.msra.mxu0 %v1271_v3  ;;  %v1286_v17 = vpop.f32.mrf.mxu0  ;;  %1541 = vmatpush.bf16.msrb.mxu3 %v4923_v29 }
  0xc9   :  { %v1287_v18 = vadd.f32 %v1286_v17, %v227_v14  ;;  %v1300_v20 = vpop.f32.mrf.mxu1  ;;  %v1312_v24 = vpop.f32.mrf.mxu2  ;;  %v232_v17 = vperm.slane %v7664_v38, 7 }
  0xca   :  { %v1326_v25 = vpop.f32.mrf.mxu3  ;;  %v1313_v46 = vadd.f32 %v1312_v24, %v228_v36 }
  0xcb   :  { %v1301_v22 = vadd.f32 %v1300_v20, %v1287_v18 }
  0xcc   :  { %1542 = vmatpush.bf16.msrb.mxu3 %v4875_v35  ;;  %v1327_v52 = vadd.f32 %v1326_v25, %v1313_v46 }
  0xcd   :  { %1629 = vmatpush.msra.mxu1 %v1301_v22 }
  0xcf   :  { %1630 = vmatpush.msra.mxu1 %v1299_v21 }
  0xd0   :  { %1543 = vmatpush.bf16.msrb.mxu3 %v4827_v45 }
  0xd1   :  { %v1314_v31 = vpop.f32.mrf.mxu2 }
  0xd2   :  { %v1328_v34 = vpop.f32.mrf.mxu3  ;;  %v1315_v58 = vadd.f32 %v1314_v31, %v228_v36 }
  0xd3   :  { %1571 = vmatmul.f32.vlgmr.msra.gmra.mxu0 %v1243_v15 }
  0xd4   :  { %1544 = vmatpush.bf16.msrb.mxu3 %v4779_v51  ;;  %v1329_v63 = vadd.f32 %v1328_v34, %v1315_v58 }
  0xd8   :  { %1545 = vmatpush.bf16.msrb.mxu3 %v4731_v57 }
  0xdb   :  { %1574 = vmatmul.f32.gmra.mxu0 %v1245_v23 }
  0xdc   :  { %1546 = vmatpush.bf16.msrb.mxu3 %v4683_v62 }
  0xe0   :  { %v1340_v26 = vpop.f32.mrf.mxu0  ;;  %1547 = vmatpush.bf16.msrb.mxu3 %v4635_v4 }
  0xe1   :  { %v1354_v27 = vpop.f32.mrf.mxu1  ;;  %v1341_v39 = vadd.f32 %v1340_v26, %v229_v30 }
  0xe3   :  { %v1355_v47 = vadd.f32 %v1354_v27, %v1341_v39 }
  0xe4   :  { %1548 = vmatpush.bf16.msrb.mxu3 %v4587_v11 }
  0xe7   :  { %1549 = vmatmul.bf16.vlgmr.msrb.gmra.mxu3 %v6823_v0 }
  0xe8   :  { %v1342_v37 = vpop.f32.mrf.mxu0 }
  0xe9   :  { %v1343_v40 = vadd.f32 %v1342_v37, %v229_v30  ;;  %v1356_v41 = vpop.f32.mrf.mxu1  ;;  %v1368_v50 = vpop.f32.mrf.mxu2  ;;  %v7765_v30 = vld [vmem:[%s9565_s3 + $0x8] sm:$0xf] }
  0xea   :  { %v1382_v54 = vpop.f32.mrf.mxu3  ;;  %v1369_v7 = vadd.f32 %v1368_v50, %v230_v59  ;;  %v233_v31 = vperm.slane %v7765_v30, 0  ;;  %v234_v42 = vperm.slane %v7765_v30, 1 }
  0xeb   :  { %v1357_v44 = vadd.f32 %v1356_v41, %v1343_v40  ;;  %v235_v41 = vperm.slane %v7765_v30, 2 }
  0xec   :  { %v1383_v12 = vadd.f32 %v1382_v54, %v1369_v7  ;;  %v6419_v7 = vunpack.c.h.bf16 %v6428_v60 }
  0xed   :  { %1699 = vmatpush.xpose.msra.mxu2 %v1357_v44 }
  0xf1   :  { %1700 = vmatpush.xpose.msra.mxu2 %v1355_v47  ;;  %v1370_v3 = vpop.f32.mrf.mxu2 }
  0xf2   :  { %v1371_v5 = vadd.f32 %v1370_v3, %v230_v59  ;;  %v1384_v6 = vpop.f32.mrf.mxu3 }
  0xf4   :  { %1701 = vmatmul.f32.vlgmr.msra.gmra.mxu2 %v1327_v52  ;;  %v1385_v8 = vadd.f32 %v1384_v6, %v1371_v5  ;;  %v6414_v6 = vunpack.c.l.bf16 %v6413_v2 }
  0xf6   :  { %1759 = vmatpush.msra.mxu3 %v1385_v8 }
  0xf8   :  { %1760 = vmatpush.msra.mxu3 %v1383_v12 }
  0xfc   :  { %1704 = vmatmul.f32.gmra.mxu2 %v1329_v63 }
 0x100   :  { %v1396_v15 = vpop.f32.mrf.mxu0 }
 0x101   :  { %v1410_v16 = vpop.f32.mrf.mxu1  ;;  %v1397_v24 = vadd.f32 %v1396_v15, %v231_v19 }
 0x103   :  { %v1411_v53 = vadd.f32 %v1410_v16, %v1397_v24  ;;  %v6415_v16 = vunpack.c.h.bf16 %v6413_v2 }
 0x108   :  { %v1424_v13 = vpop.f32.mrf.mxu2  ;;  %v1398_v25 = vpop.f32.mrf.mxu0 }
 0x109   :  { %v1425_v20 = vadd.f32 %v1424_v13, %v232_v17  ;;  %v1412_v27 = vpop.f32.mrf.mxu1  ;;  %v1399_v0 = vadd.f32 %v1398_v25, %v231_v19 }
 0x10a   :  { %v1438_v14 = vpop.f32.mrf.mxu3 }
 0x10b   :  { %v1439_v26 = vadd.f32 %v1438_v14, %v1425_v20  ;;  %v1413_v38 = vadd.f32 %v1412_v27, %v1399_v0  ;;  %v6429_v27 = vld [vmem:[%s9563_s1 + $0x10] sm:$0xff]  }
 0x110   :  { %v1426_v18 = vpop.f32.mrf.mxu2 }
 0x111   :  { %v1427_v21 = vadd.f32 %v1426_v18, %v232_v17  ;;  %v236_v18 = vperm.slane %v7765_v30, 3 }
 0x112   :  { %v1440_v22 = vpop.f32.mrf.mxu3 }
 0x113   :  { %v1441_v23 = vadd.f32 %v1440_v22, %v1427_v21 }
 0x115   :  { %1822 = vmatpush.xpose.msrb.mxu0 %v1441_v23 }
 0x119   :  { %1823 = vmatpush.xpose.msrb.mxu0 %v1439_v26 }
 0x11c   :  { %1824 = vmatmul.f32.vlgmr.msrb.gmra.mxu0 %v1411_v53  ;;  %v6423_v53 = vunpack.c.h.bf16 %v6429_v27 }
 0x120   :  { %v1452_v28 = vpop.f32.mrf.mxu0 }
 0x121   :  { %v1466_v29 = vpop.f32.mrf.mxu1  ;;  %v1453_v32 = vadd.f32 %v1452_v28, %v233_v31 }
 0x123   :  { %v1467_v36 = vadd.f32 %v1466_v29, %v1453_v32 }
 0x124   :  { %1827 = vmatmul.f32.gmra.mxu0 %v1413_v38  ;;  %v6430_v38 = vld [vmem:[%s9563_s1 + $0x18] sm:$0xff]  }
 0x128   :  { %v1454_v33 = vpop.f32.mrf.mxu0  ;;  %v1494_v50 = vpop.f32.mrf.mxu3 }
 0x129   :  { %v1455_v34 = vadd.f32 %v1454_v33, %v233_v31  ;;  %v1468_v35 = vpop.f32.mrf.mxu1  ;;  %v6426_v31 = vunpack.c.l.bf16 %v6430_v38 }
 0x12a   :  { %v1480_v44 = vpop.f32.mrf.mxu2 }
 0x12b   :  { %v1469_v37 = vadd.f32 %v1468_v35, %v1455_v34  ;;  %v1481_v49 = vadd.f32 %v1480_v44, %v234_v42 }
 0x12d   :  { %1882 = vmatpush.msrb.mxu1 %v1469_v37  ;;  %v1495_v52 = vadd.f32 %v1494_v50, %v1481_v49  ;;  %v6422_v37 = vunpack.c.l.bf16 %v6429_v27 }
 0x12f   :  { %1883 = vmatpush.msrb.mxu1 %v1467_v36 }
 0x130   :  { %v1496_v56 = vpop.f32.mrf.mxu3 }
 0x132   :  { %v1482_v54 = vpop.f32.mrf.mxu2 }
 0x133   :  { %v1483_v55 = vadd.f32 %v1482_v54, %v234_v42 }
 0x135   :  { %v1497_v57 = vadd.f32 %v1496_v56, %v1483_v55 }
 0x140   :  { %v1508_v39 = vpop.f32.mrf.mxu0 }
 0x141   :  { %v1522_v40 = vpop.f32.mrf.mxu1  ;;  %v1509_v47 = vadd.f32 %v1508_v39, %v235_v41  ;;  %v6427_v39 = vunpack.c.h.bf16 %v6430_v38 }
 0x143   :  { %v1523_v51 = vadd.f32 %v1522_v40, %v1509_v47 }
 0x148   :  { %v1510_v43 = vpop.f32.mrf.mxu0  ;;  %v1536_v58 = vpop.f32.mrf.mxu2 }
 0x149   :  { %v1511_v45 = vadd.f32 %v1510_v43, %v235_v41  ;;  %v1524_v46 = vpop.f32.mrf.mxu1  ;;  %v1537_v20 = vadd.f32 %v1536_v58, %v236_v18 }
 0x14b   :  { %v1525_v48 = vadd.f32 %v1524_v46, %v1511_v45 }
 0x14d   :  { %1945 = vmatpush.xpose.msrb.mxu2 %v1525_v48 }
 0x150   :  { %v1538_v59 = vpop.f32.mrf.mxu2  ;;  %v1572_v62 = vpop.f32.mrf.mxu0 }
 0x151   :  { %1946 = vmatpush.xpose.msrb.mxu2 %v1523_v51  ;;  %v1578_v4 = vmul.f32 0.088388346, %v1572_v62  ;;  %v1539_v21 = vadd.f32 %v1538_v59, %v236_v18 }
 0x153   :  { %v1584_v10 = vadd.f32 %v6414_v6, %v1578_v4 }
 0x154   :  { %1947 = vmatmul.f32.vlgmr.msrb.gmra.mxu2 %v1495_v52 }
 0x155   :  { %v1587_v15 = vsel %vm1586_vm0, %v1584_v10, -inf }
 0x158   :  { %v1575_v11 = vpop.f32.mrf.mxu0 }
 0x159   :  { %v1579_v13 = vmul.f32 0.088388346, %v1575_v11 }
 0x15b   :  { %v1585_v19 = vadd.f32 %v6415_v16, %v1579_v13 }
 0x15c   :  { %1950 = vmatmul.f32.gmra.mxu2 %v1497_v57 }
 0x15d   :  { %v1590_v22 = vsel %vm1586_vm0, %v1585_v19, -inf }
 0x16a   :  { %v1550_v17 = vpop.f32.mrf.mxu3 }
 0x16b   :  { %v1551_v24 = vadd.f32 %v1550_v17, %v1537_v20 }
 0x172   :  { %v1552_v23 = vpop.f32.mrf.mxu3 }
 0x173   :  { %v1553_v25 = vadd.f32 %v1552_v23, %v1539_v21 }
 0x175   :  { %2005 = vmatpush.msrb.mxu3 %v1553_v25 }
 0x177   :  { %v1702_v63 = vpop.f32.mrf.mxu2  ;;  %2006 = vmatpush.msrb.mxu3 %v1551_v24 }
 0x178   :  { %v1708_v1 = vmul.f32 0.088388346, %v1702_v63 }
 0x17a   :  { %v1715_v3 = vadd.f32 %v6418_v61, %v1708_v1 }
 0x17c   :  { %v1717_v5 = vsel %vm1586_vm0, %v1715_v3, -inf }
 0x17d   :  { %1718 = vmax.xlane.f32.xlu0 %v1717_v5 }
 0x17f   :  { %v1705_v8 = vpop.f32.mrf.mxu2 }
 0x180   :  { %v1709_v9 = vmul.f32 0.088388346, %v1705_v8 }
 0x182   :  { %v1716_v12 = vadd.f32 %v6419_v7, %v1709_v9 }
 0x184   :  { %v1720_v14 = vsel %vm1586_vm0, %v1716_v12, -inf }
 0x185   :  { %1721 = vmax.xlane.f32.xlu1 %v1720_v14  ;;  %1588 = vmax.xlane.f32.xlu0 %v1587_v15 }
 0x18d   :  { %1591 = vmax.xlane.f32.xlu1 %v1590_v22 }
 0x199   :  { %v1825_v26 = vpop.f32.mrf.mxu0 }
 0x19a   :  { %v1831_v35 = vmul.f32 0.088388346, %v1825_v26 }
 0x19c   :  { %v1838_v42 = vadd.f32 %v6422_v37, %v1831_v35 }
 0x19e   :  { %v1840_v45 = vsel %vm1586_vm0, %v1838_v42, -inf }
 0x1a1   :  { %v1828_v0 = vpop.f32.mrf.mxu0 }
 0x1a2   :  { %v1832_v28 = vmul.f32 0.088388346, %v1828_v0 }
 0x1a4   :  { %v1839_v29 = vadd.f32 %v6423_v53, %v1832_v28 }
 0x1a6   :  { %v1843_v30 = vsel %vm1586_vm0, %v1839_v29, -inf }
 0x1a7   :  { %1844 = vmax.xlane.f32.xlu1 %v1843_v30 }
 0x1d7   :  { %v1948_v32 = vpop.f32.mrf.mxu2 }
 0x1d8   :  { %v1954_v33 = vmul.f32 0.088388346, %v1948_v32 }
 0x1da   :  { %v1961_v34 = vadd.f32 %v6426_v31, %v1954_v33 }
 0x1dc   :  { %v1963_v36 = vsel %vm1586_vm0, %v1961_v34, -inf }
 0x1dd   :  { %1964 = vmax.xlane.f32.xlu2 %v1963_v36 }
 0x1df   :  { %v1951_v40 = vpop.f32.mrf.mxu2 }
 0x1e0   :  { %v1955_v41 = vmul.f32 0.088388346, %v1951_v40 }
 0x1e2   :  { %v1962_v43 = vadd.f32 %v6427_v39, %v1955_v41 }
 0x1e4   :  { %v1966_v44 = vsel %vm1586_vm0, %v1962_v43, -inf }
 0x1e5   :  { %1967 = vmax.xlane.f32.xlu0 %v1966_v44  ;;  %1841 = vmax.xlane.f32.xlu2 %v1840_v45 }
 0x1f0   :  { %v1719_v46 = vpop.xlane.xlu0 %1718 }
 0x1f1   :  { %v1723_v47 = vsub.f32 %v1715_v3, %v1719_v46 }
 0x1f3   :  { %v1725_v48 = vmul.f32 1.442695, %v1723_v47 }
 0x1f5   :  { %6435 = vpow2.f32 %v1725_v48 }
 0x1f8   :  { %v1722_v49 = vpop.xlane.xlu1 %1721  ;;  %v1589_v50 = vpop.xlane.xlu0 %1588 }
 0x1f9   :  { %v1724_v51 = vsub.f32 %v1716_v12, %v1722_v49  ;;  %v1593_v52 = vsub.f32 %v1584_v10, %v1589_v50 }
 0x1fb   :  { %v6436_v54 = vpop.eup %6435  ;;  %v1727_v55 = vmul.f32 1.442695, %v1724_v51  ;;  %v1595_v56 = vmul.f32 1.442695, %v1593_v52  ;;  %v6513_v52 = vmov 128.0  }
 0x1fc   :  { %v1729_v57 = vsel %vm1586_vm0, %v6436_v54, 0.0 }
 0x1fd   :  { %6437 = vpow2.f32 %v1727_v55  ;;  %1730 = vadd.xlane.f32.xlu2 %v1729_v57 }
 0x1fe   :  { %6439 = vpow2.f32 %v1595_v56 }
 0x200   :  { %v1592_v58 = vpop.xlane.xlu1 %1591 }
 0x201   :  { %v1594_v59 = vsub.f32 %v1585_v19, %v1592_v58 }
 0x203   :  { %v6438_v60 = vpop.eup %6437  ;;  %v1597_v61 = vmul.f32 1.442695, %v1594_v59 }
 0x204   :  { %v6440_v62 = vpop.eup %6439  ;;  %v1732_v63 = vsel %vm1586_vm0, %v6438_v60, 0.0 }
 0x205   :  { %6441 = vpow2.f32 %v1597_v61  ;;  %v1599_v1 = vsel %vm1586_vm0, %v6440_v62, 0.0  ;;  %1733 = vadd.xlane.f32.xlu1 %v1732_v63 }
 0x206   :  { %1600 = vadd.xlane.f32.xlu0 %v1599_v1 }
 0x20b   :  { %v6442_v2 = vpop.eup %6441 }
 0x20c   :  { %v1602_v3 = vsel %vm1586_vm0, %v6442_v2, 0.0 }
 0x20d   :  { %1603 = vadd.xlane.f32.xlu2 %v1602_v3 }
 0x21a   :  { %v1845_v4 = vpop.xlane.xlu1 %1844 }
 0x21b   :  { %v1847_v7 = vsub.f32 %v1839_v29, %v1845_v4 }
 0x21d   :  { %v1850_v9 = vmul.f32 1.442695, %v1847_v7  ;;  %v5052_v7 = vld [vmem:[%s9567_s5 + $0xe0] sm:$0xf] }
 0x250   :  { %v1965_v5 = vpop.xlane.xlu2 %1964 }
 0x251   :  { %v1969_v6 = vsub.f32 %v1961_v34, %v1965_v5 }
 0x253   :  { %v1971_v8 = vmul.f32 1.442695, %v1969_v6 }
 0x255   :  { %6443 = vpow2.f32 %v1971_v8  ;;  %v6186_v8 = vld [vmem:[%s9567_s5 + $0xec] sm:$0xf0] }
 0x256   :  { %6445 = vpow2.f32 %v1850_v9  ;;  %v5053_v9 = vor.u32 %v6186_v8, %v5052_v7 }
 0x258   :  { %v1968_v10 = vpop.xlane.xlu0 %1967  ;;  %v1842_v11 = vpop.xlane.xlu2 %1841  ;;  %2882 = vmatpush.bf16.msra.mxu0 %v5053_v9 }
 0x259   :  { %v1970_v12 = vsub.f32 %v1962_v43, %v1968_v10  ;;  %v1846_v13 = vsub.f32 %v1838_v42, %v1842_v11  ;;  %v5036_v10 = vld [vmem:[%s9567_s5 + $0xc0] sm:$0xf]  ;;  %v6182_v11 = vld [vmem:[%s9567_s5 + $0xcc] sm:$0xf0] }
 0x25b   :  { %v6444_v14 = vpop.eup %6443  ;;  %v1973_v15 = vmul.f32 1.442695, %v1970_v12  ;;  %v1848_v16 = vmul.f32 1.442695, %v1846_v13  ;;  %v5037_v12 = vor.u32 %v6182_v11, %v5036_v10  ;;  %v5020_v13 = vld [vmem:[%s9567_s5 + $0xa0] sm:$0xf] }
 0x25c   :  { %v1975_v17 = vsel %vm1586_vm0, %v6444_v14, 0.0  ;;  %v6446_v18 = vpop.eup %6445  ;;  %v6164_v10 = vld [vmem:[%s9567_s5 + $0x44] sm:$0xf]  ;;  %v4974_v11 = vld [vmem:[%s9567_s5 + $0x50] sm:$0xf0] }
 0x25d   :  { %6447 = vpow2.f32 %v1973_v15  ;;  %1976 = vadd.xlane.f32.xlu0 %v1975_v17  ;;  %v1855_v22 = vsel %vm1586_vm0, %v6446_v18, 0.0  ;;  %2883 = vmatpush.bf16.msra.mxu0 %v5037_v12  ;;  %v6174_v17 = vld [vmem:[%s9567_s5 + $0x8c] sm:$0xf0]  ;;  %v4977_v12 = vor.u32 %v6164_v10, %v4974_v11  ;;  %v5436_v10 = vld [vmem:[%s9567_s5 + $0x3e0] sm:$0xf] }
 0x25e   :  { %6449 = vpow2.f32 %v1848_v16  ;;  %v5004_v16 = vld [vmem:[%s9567_s5 + $0x80] sm:$0xf] }
 0x263   :  { %v6448_v19 = vpop.eup %6447 }
 0x264   :  { %v6450_v20 = vpop.eup %6449  ;;  %v1978_v21 = vsel %vm1586_vm0, %v6448_v19, 0.0 }
 0x265   :  { %v1852_v23 = vsel %vm1586_vm0, %v6450_v20, 0.0  ;;  %1979 = vadd.xlane.f32.xlu2 %v1978_v21  ;;  %1856 = vadd.xlane.f32.xlu0 %v1855_v22 }
 0x266   :  { %1853 = vadd.xlane.f32.xlu1 %v1852_v23 }
 0x270   :  { %v1731_v24 = vpop.xlane.xlu2 %1730 }
 0x271   :  { %6451 = vrcp.f32 %v1731_v24  ;;  %v4972_v24 = vld [vmem:[%s9567_s5 + $0x40] sm:$0xf] }
 0x277   :  { %v6452_v25 = vpop.eup %6451 }
 0x278   :  { %v1737_v26 = vmul.f32 %v6452_v25, %v6436_v54  ;;  %v1734_v27 = vpop.xlane.xlu1 %1733  ;;  %v6166_v25 = vld [vmem:[%s9567_s5 + $0x4c] sm:$0xf0] }
 0x279   :  { %v1601_v53 = vpop.xlane.xlu0 %1600  ;;  %6453 = vrcp.f32 %v1734_v27 }
 0x27a   :  { %6455 = vrcp.f32 %v1601_v53  ;;  %4928 = vmatmul.msk.f32.vlgmr.msra.gmra.mxu3 %vm1586_vm0, %v1737_v26  ;;  %v4973_v26 = vor.u32 %v6166_v25, %v4972_v24 }
 0x27f   :  { %v6454_v0 = vpop.eup %6453 }
 0x280   :  { %v6456_v28 = vpop.eup %6455  ;;  %v1604_v29 = vpop.xlane.xlu2 %1603  ;;  %v1738_v30 = vmul.f32 %v6454_v0, %v6438_v60 }
 0x281   :  { %v1607_v38 = vmul.f32 %v6456_v28, %v6440_v62  ;;  %6457 = vrcp.f32 %v1604_v29  ;;  %v4956_v29 = vld [vmem:[%s9567_s5 + $0x20] sm:$0xf] }
 0x282   :  { %4929 = vmatmul.msk.f32.gmra.mxu3 %vm1586_vm0, %v1738_v30  ;;  %v6162_v30 = vld [vmem:[%s9567_s5 + $0x2c] sm:$0xf0] }
 0x283   :  { %4924 = vmatmul.msk.f32.vlgmr.msra.gmra.mxu1 %vm1586_vm0, %v1607_v38  ;;  %v4957_v38 = vor.u32 %v6162_v30, %v4956_v29 }
 0x287   :  { %v6458_v31 = vpop.eup %6457 }
 0x288   :  { %v1608_v32 = vmul.f32 %v6458_v31, %v6442_v2 }
 0x28b   :  { %4925 = vmatmul.msk.f32.gmra.mxu1 %vm1586_vm0, %v1608_v32 }
 0x2d0   :  { %v1977_v33 = vpop.xlane.xlu0 %1976 }
 0x2d1   :  { %6459 = vrcp.f32 %v1977_v33 }
 0x2d7   :  { %v6460_v34 = vpop.eup %6459 }
 0x2d8   :  { %v1983_v35 = vmul.f32 %v6460_v34, %v6444_v14  ;;  %v1980_v36 = vpop.xlane.xlu2 %1979  ;;  %v1857_v39 = vpop.xlane.xlu0 %1856  ;;  %v6178_v14 = vld [vmem:[%s9567_s5 + $0xac] sm:$0xf0] }
 0x2d9   :  { %6461 = vrcp.f32 %v1980_v36  ;;  %v1854_v37 = vpop.xlane.xlu1 %1853  ;;  %v5021_v15 = vor.u32 %v6178_v14, %v5020_v13  ;;  %v4958_v13 = vld [vmem:[%s9567_s5 + $0x30] sm:$0xf0] }
 0x2da   :  { %4936 = vmatmul.msk.f32.vlgmr.msrb.gmra.mxu3 %vm1586_vm0, %v1983_v35  ;;  %6463 = vrcp.f32 %v1854_v37  ;;  %v4940_v37 = vld [vmem:[%s9567_s5] sm:$0xf] }
 0x2db   :  { %6465 = vrcp.f32 %v1857_v39  ;;  %2884 = vmatpush.bf16.msra.mxu0 %v5021_v15  ;;  %v6158_v39 = vld [vmem:[%s9567_s5 + $0xc] sm:$0xf0] }
 0x2dc   :  { %6467 = vrcp.f32 %v6513_v52  ;;  %v5038_v52 = vld [vmem:[%s9567_s5 + $0xd0] sm:$0xf0] }
 0x2df   :  { %v6462_v40 = vpop.eup %6461 }
 0x2e0   :  { %v1984_v41 = vmul.f32 %v6462_v40, %v6448_v19  ;;  %v6464_v42 = vpop.eup %6463  ;;  %v4988_v19 = vld [vmem:[%s9567_s5 + $0x60] sm:$0xf]  ;;  %v4941_v40 = vor.u32 %v6158_v39, %v4940_v37 }
 0x2e1   :  { %v1860_v43 = vmul.f32 %v6464_v42, %v6450_v20  ;;  %v6466_v44 = vpop.eup %6465  ;;  %v6170_v20 = vld [vmem:[%s9567_s5 + $0x6c] sm:$0xf0]  ;;  %v5054_v42 = vld [vmem:[%s9567_s5 + $0xf0] sm:$0xf0] }
 0x2e2   :  { %4937 = vmatmul.msk.f32.gmra.mxu3 %vm1586_vm0, %v1984_v41  ;;  %v1861_v45 = vmul.f32 %v6466_v44, %v6446_v18  ;;  %v6468_v55 = vpop.eup %6467  ;;  %v5005_v18 = vor.u32 %v6174_v17, %v5004_v16  ;;  %v4989_v21 = vor.u32 %v6170_v20, %v4988_v19  ;;  %v6184_v41 = vld [vmem:[%s9567_s5 + $0xe4] sm:$0xf]  ;;  %v4942_v17 = vld [vmem:[%s9567_s5 + $0x10] sm:$0xf0] }
 0x2e3   :  { %4932 = vmatmul.msk.f32.vlgmr.msrb.gmra.mxu1 %vm1586_vm0, %v1860_v43  ;;  %v1643_v57 = vmul.f32 128.0, %v6468_v55  ;;  %vm1647_vm1 = vweird.f32 %v6468_v55  ;;  %v6156_v16 = vld [vmem:[%s9567_s5 + $0x4] sm:$0xf] }
 0x2e4   :  { %2885 = vmatpush.bf16.msra.mxu0 %v5005_v18  ;;  %v4945_v20 = vor.u32 %v6156_v16, %v4942_v17  ;;  %v5260_v16 = vld [vmem:[%s9567_s5 + $0x280] sm:$0xf]  ;;  %v6238_v17 = vld [vmem:[%s9567_s5 + $0x28c] sm:$0xf0] }
 0x2e5   :  { %v1644_v58 = vsub.f32 1.0, %v1643_v57  ;;  %v5022_v57 = vld [vmem:[%s9567_s5 + $0xb0] sm:$0xf0] }
 0x2e7   :  { %v1645_v59 = vmul.f32 %v6468_v55, %v1644_v58 }
 0x2e8   :  { %2886 = vmatpush.bf16.msra.mxu0 %v4989_v21 }
 0x2e9   :  { %v1646_v60 = vadd.f32 %v6468_v55, %v1645_v59 }
 0x2eb   :  { %4933 = vmatmul.msk.f32.gmra.mxu1 %vm1586_vm0, %v1861_v45  ;;  %v7819_v61 = vsel %vm1647_vm1, %v6468_v55, %v1646_v60  ;;  %v5057_v45 = vor.u32 %v6184_v41, %v5054_v42 }
 0x2ec   :  { %2887 = vmatpush.bf16.msra.mxu0 %v4973_v26 }
 0x2f0   :  { %2888 = vmatpush.bf16.msra.mxu0 %v4957_v38  ;;  %v7966_v38 = vld [vmem:[%s9566_s4] sm:$0xff] }
 0x2f4   :  { %2889 = vmatpush.bf16.msra.mxu0 %v4941_v40  ;;  %v2078_v40 = vperm.slane %v7966_v38, 1 }
 0x2f8   :  { %2938 = vmatpush.bf16.msrb.mxu0 %v5057_v45 }
 0x2fd   :  { %v7807_v48 = vpop.f32.mrf.mxu3 }
 0x300   :  { %v1632_v46 = vpop.f32.mrf.mxu1 }
 0x301   :  { %1638 = vadd.xlane.f32.xlu0 %v1632_v46 }
 0x305   :  { %v7809_v49 = vpop.f32.mrf.mxu3 }
 0x308   :  { %v1635_v47 = vpop.f32.mrf.mxu1 }
 0x309   :  { %1640 = vadd.xlane.f32.xlu1 %v1635_v47 }
 0x35d   :  { %v7811_v50 = vpop.f32.mrf.mxu3 }
 0x360   :  { %v1885_v51 = vpop.f32.mrf.mxu1 }
 0x361   :  { %1891 = vadd.xlane.f32.xlu1 %v1885_v51 }
 0x365   :  { %v2011_v54 = vpop.f32.mrf.mxu3 }
 0x366   :  { %2016 = vadd.xlane.f32.xlu0 %v2011_v54 }
 0x368   :  { %v7813_v56 = vpop.f32.mrf.mxu1 }
 0x369   :  { %1768 = vadd.xlane.f32.xlu1 %v7807_v48  ;;  %1893 = vadd.xlane.f32.xlu2 %v7813_v56 }
 0x371   :  { %2014 = vadd.xlane.f32.xlu2 %v7811_v50 }
 0x374   :  { %v1639_v62 = vpop.xlane.xlu0 %1638 }
 0x375   :  { %v1649_v63 = vmul.f32 %v7819_v61, %v1639_v62  ;;  %v6172_v62 = vld [vmem:[%s9567_s5 + $0x84] sm:$0xf] }
 0x377   :  { %v7822_v1 = vsub.f32 %v1632_v46, %v1649_v63  ;;  %v5006_v63 = vld [vmem:[%s9567_s5 + $0x90] sm:$0xf0] }
 0x379   :  { %1770 = vadd.xlane.f32.xlu2 %v7809_v49  ;;  %v1653_v2 = vmul.f32 %v7822_v1, %v7822_v1 }
 0x37c   :  { %v1641_v3 = vpop.xlane.xlu1 %1640 }
 0x37d   :  { %v1650_v4 = vmul.f32 %v7819_v61, %v1641_v3 }
 0x37f   :  { %v7827_v5 = vsub.f32 %v1635_v47, %v1650_v4 }
 0x381   :  { %1655 = vadd.xlane.f32.xlu2 %v1653_v2  ;;  %v1654_v6 = vmul.f32 %v7827_v5, %v7827_v5  ;;  %v5009_v2 = vor.u32 %v6172_v62, %v5006_v63  ;;  %v6183_v62 = vld [vmem:[%s9567_s5 + $0xd4] sm:$0xf0]  ;;  %v5292_v63 = vld [vmem:[%s9567_s5 + $0x2c0] sm:$0xf] }
 0x383   :  { %1657 = vadd.xlane.f32.xlu0 %v1654_v6  ;;  %v4990_v6 = vld [vmem:[%s9567_s5 + $0x70] sm:$0xf0] }
 0x3d4   :  { %v1892_v22 = vpop.xlane.xlu1 %1891 }
 0x3d5   :  { %v1895_v23 = vmul.f32 %v1892_v22, %v7819_v61 }
 0x3d7   :  { %v7868_v27 = vsub.f32 %v1885_v51, %v1895_v23  ;;  %v6180_v51 = vld [vmem:[%s9567_s5 + $0xc4] sm:$0xf] }
 0x3d9   :  { %v2017_v53 = vpop.xlane.xlu0 %2016  ;;  %v1899_v28 = vmul.f32 %v7868_v27, %v7868_v27 }
 0x3da   :  { %v2019_v0 = vmul.f32 %v2017_v53, %v7819_v61 }
 0x3db   :  { %1901 = vadd.xlane.f32.xlu0 %v1899_v28 }
 0x3dc   :  { %v7879_v31 = vsub.f32 %v2011_v54, %v2019_v0  ;;  %v1894_v32 = vpop.xlane.xlu2 %1893  ;;  %v1769_v33 = vpop.xlane.xlu1 %1768 }
 0x3dd   :  { %v1896_v34 = vmul.f32 %v1894_v32, %v7819_v61  ;;  %v1772_v35 = vmul.f32 %v1769_v33, %v7819_v61  ;;  %v2058_v33 = vperm.slane %v7966_v38, 0 }
 0x3de   :  { %v2023_v36 = vmul.f32 %v7879_v31, %v7879_v31 }
 0x3df   :  { %v7898_v43 = vsub.f32 %v7813_v56, %v1896_v34  ;;  %v7901_v44 = vsub.f32 %v7807_v48, %v1772_v35  ;;  %v5041_v48 = vor.u32 %v6180_v51, %v5038_v52  ;;  %v6176_v56 = vld [vmem:[%s9567_s5 + $0xa4] sm:$0xf]  ;;  %v2066_v39 = vperm.slane %v2058_v33, 0  ;;  %v5060_v52 = vld [vmem:[%s9567_s5 + $0xe8] sm:$0xf] }
 0x3e0   :  { %2026 = vadd.xlane.f32.xlu2 %v2023_v36  ;;  %v5025_v59 = vor.u32 %v6176_v56, %v5022_v57 }
 0x3e1   :  { %v1900_v46 = vmul.f32 %v7898_v43, %v7898_v43  ;;  %v1776_v47 = vmul.f32 %v7901_v44, %v7901_v44  ;;  %2939 = vmatpush.bf16.msrb.mxu0 %v5041_v48  ;;  %v5308_v48 = vld [vmem:[%s9567_s5 + $0x2e0] sm:$0xf] }
 0x3e3   :  { %1903 = vadd.xlane.f32.xlu1 %v1900_v46  ;;  %1778 = vadd.xlane.f32.xlu0 %v1776_v47  ;;  %v2086_v47 = vperm.slane %v2078_v40, 1  ;;  %v5228_v40 = vld [vmem:[%s9567_s5 + $0x240] sm:$0xf] }
 0x3e4   :  { %v2015_v54 = vpop.xlane.xlu2 %2014 }
 0x3e5   :  { %v2018_v55 = vmul.f32 %v2015_v54, %v7819_v61  ;;  %2940 = vmatpush.bf16.msrb.mxu0 %v5025_v59  ;;  %v6250_v54 = vld [vmem:[%s9567_s5 + $0x2ec] sm:$0xf0] }
 0x3e6   :  { %v5309_v56 = vor.u32 %v6250_v54, %v5308_v48  ;;  %v6163_v48 = vld [vmem:[%s9567_s5 + $0x34] sm:$0xf0]  ;;  %v5148_v54 = vld [vmem:[%s9567_s5 + $0x1a0] sm:$0xf] }
 0x3e7   :  { %v7921_v58 = vsub.f32 %v7811_v50, %v2018_v55  ;;  %v6168_v50 = vld [vmem:[%s9567_s5 + $0x64] sm:$0xf] }
 0x3e8   :  { %v4993_v8 = vor.u32 %v6168_v50, %v4990_v6  ;;  %2910 = vmatpush.bf16.msra.mxu2 %v5309_v56  ;;  %v5028_v50 = vld [vmem:[%s9567_s5 + $0xa8] sm:$0xf]  ;;  %v6179_v6 = vld [vmem:[%s9567_s5 + $0xb4] sm:$0xf0] }
 0x3e9   :  { %v2022_v60 = vmul.f32 %v7921_v58, %v7921_v58  ;;  %2941 = vmatpush.bf16.msrb.mxu0 %v5009_v2  ;;  %v6246_v2 = vld [vmem:[%s9567_s5 + $0x2cc] sm:$0xf0] }
 0x3eb   :  { %2024 = vadd.xlane.f32.xlu1 %v2022_v60  ;;  %v5044_v60 = vld [vmem:[%s9567_s5 + $0xc8] sm:$0xf] }
 0x3ec   :  { %v1771_v3 = vpop.xlane.xlu2 %1770 }
 0x3ed   :  { %v1773_v4 = vmul.f32 %v1771_v3, %v7819_v61  ;;  %2942 = vmatpush.bf16.msrb.mxu0 %v4993_v8  ;;  %v5293_v3 = vor.u32 %v6246_v2, %v5292_v63  ;;  %v5276_v8 = vld [vmem:[%s9567_s5 + $0x2a0] sm:$0xf] }
 0x3ef   :  { %v7939_v7 = vsub.f32 %v7809_v49, %v1773_v4  ;;  %v6160_v49 = vld [vmem:[%s9567_s5 + $0x24] sm:$0xf]  ;;  %v5045_v4 = vor.u32 %v6183_v62, %v5044_v60  ;;  %2911 = vmatpush.bf16.msra.mxu2 %v5293_v3  ;;  %v5372_v60 = vld [vmem:[%s9567_s5 + $0x360] sm:$0xf]  ;;  %v6266_v62 = vld [vmem:[%s9567_s5 + $0x36c] sm:$0xf0] }
 0x3f0   :  { %v4961_v15 = vor.u32 %v6160_v49, %v4958_v13  ;;  %v5029_v13 = vor.u32 %v6179_v6, %v5028_v50  ;;  %v5373_v3 = vor.u32 %v6266_v62, %v5372_v60  ;;  %v6159_v50 = vld [vmem:[%s9567_s5 + $0x14] sm:$0xf0]  ;;  %v6185_v6 = vld [vmem:[%s9567_s5 + $0xec] sm:$0xf]  ;;  %v6236_v60 = vld [vmem:[%s9567_s5 + $0x284] sm:$0xf] }
 0x3f1   :  { %v1777_v9 = vmul.f32 %v7939_v7, %v7939_v7  ;;  %2943 = vmatpush.bf16.msrb.mxu0 %v4977_v12  ;;  %v6282_v12 = vld [vmem:[%s9567_s5 + $0x3ec] sm:$0xf0]  ;;  %v5262_v62 = vld [vmem:[%s9567_s5 + $0x290] sm:$0xf0] }
 0x3f2   :  { %v5437_v49 = vor.u32 %v6282_v12, %v5436_v10  ;;  %v6206_v10 = vld [vmem:[%s9567_s5 + $0x18c] sm:$0xf0] }
 0x3f3   :  { %1780 = vadd.xlane.f32.xlu1 %v1777_v9  ;;  %v6242_v9 = vld [vmem:[%s9567_s5 + $0x2ac] sm:$0xf0] }
 0x3f4   :  { %v1656_v14 = vpop.xlane.xlu2 %1655  ;;  %v5277_v11 = vor.u32 %v6242_v9, %v5276_v8  ;;  %2924 = vmatpush.bf16.msra.mxu3 %v5437_v49  ;;  %v5062_v8 = vld [vmem:[%s9567_s5 + $0xf8] sm:$0xf0]  ;;  %v5132_v9 = vld [vmem:[%s9567_s5 + $0x180] sm:$0xf] }
 0x3f5   :  { %v1659_v18 = vmul.f32 %v1656_v14, %v7819_v61  ;;  %2944 = vmatpush.bf16.msrb.mxu0 %v4961_v15  ;;  %v5012_v14 = vld [vmem:[%s9567_s5 + $0x88] sm:$0xf]  ;;  %v6175_v15 = vld [vmem:[%s9567_s5 + $0x94] sm:$0xf0]  ;;  %v5133_v49 = vor.u32 %v6206_v10, %v5132_v9  ;;  %v5068_v9 = vld [vmem:[%s9567_s5 + $0x100] sm:$0xf] }
 0x3f6   :  { %v1658_v21 = vpop.xlane.xlu0 %1657  ;;  %2912 = vmatpush.bf16.msra.mxu2 %v5277_v11  ;;  %v5196_v11 = vld [vmem:[%s9567_s5 + $0x200] sm:$0xf]  ;;  %v6190_v10 = vld [vmem:[%s9567_s5 + $0x10c] sm:$0xf0] }
 0x3f7   :  { %v1661_v19 = vadd.f32 1e-06, %v1659_v18  ;;  %v1660_v22 = vmul.f32 %v1658_v21, %v7819_v61  ;;  %v5420_v18 = vld [vmem:[%s9567_s5 + $0x3c0] sm:$0xf] }
 0x3f9   :  { %6469 = vrsqrt.f32 %v1661_v19  ;;  %2945 = vmatpush.bf16.msrb.mxu0 %v4945_v20  ;;  %v1662_v24 = vadd.f32 1e-06, %v1660_v22  ;;  %vm1669_vm3 = vweird.f32 %v1661_v19  ;;  %v6278_v20 = vld [vmem:[%s9567_s5 + $0x3cc] sm:$0xf0]  ;;  %v5013_v22 = vor.u32 %v6175_v15, %v5012_v14  ;;  %v5356_v14 = vld [vmem:[%s9567_s5 + $0x340] sm:$0xf] }
 0x3fa   :  { %v5421_v21 = vor.u32 %v6278_v20, %v5420_v18  ;;  %v6262_v15 = vld [vmem:[%s9567_s5 + $0x34c] sm:$0xf0]  ;;  %v6181_v20 = vld [vmem:[%s9567_s5 + $0xcc] sm:$0xf] }
 0x3fb   :  { %6471 = vrsqrt.f32 %v1662_v24  ;;  %vm1679_vm6 = vweird.f32 %v1662_v24  ;;  %v5357_v18 = vor.u32 %v6262_v15, %v5356_v14 }
 0x3fc   :  { %2925 = vmatpush.bf16.msra.mxu3 %v5421_v21  ;;  %v5046_v21 = vld [vmem:[%s9567_s5 + $0xd8] sm:$0xf0] }
 0x3ff   :  { %v6470_v23 = vpop.eup %6469 }
 0x400   :  { %v1664_v25 = vmul.f32 %v6470_v23, %v1661_v19  ;;  %vm1670_vm2 = vweird.f32 %v6470_v23  ;;  %v5261_v19 = vor.u32 %v6238_v17, %v5260_v16  ;;  %v5065_v16 = vor.u32 %v6185_v6, %v5062_v8  ;;  %v4998_v6 = vld [vmem:[%s9567_s5 + $0x78] sm:$0xf0] }
 0x401   :  { %v6472_v28 = vpop.eup %6471  ;;  %vm1671_vm4 = vmor %vm1669_vm3, %vm1670_vm2 }
 0x402   :  { %v1665_v26 = vmul.f32 %v6470_v23, %v1664_v25  ;;  %v1674_v30 = vmul.f32 %v6472_v28, %v1662_v24  ;;  %vm1680_vm5 = vweird.f32 %v6472_v28  ;;  %v6171_v24 = vld [vmem:[%s9567_s5 + $0x74] sm:$0xf0]  ;;  %2913 = vmatpush.bf16.msra.mxu2 %v5261_v19  ;;  %v5180_v25 = vld [vmem:[%s9567_s5 + $0x1e0] sm:$0xf]  ;;  %v6248_v19 = vld [vmem:[%s9567_s5 + $0x2e4] sm:$0xf] }
 0x403   :  { %vm1681_vm7 = vmor %vm1679_vm6, %vm1680_vm5 }
 0x404   :  { %v1666_v53 = vmul.f32 0.5, %v1665_v26  ;;  %v1675_v32 = vmul.f32 %v6472_v28, %v1674_v30  ;;  %v6218_v26 = vld [vmem:[%s9567_s5 + $0x1ec] sm:$0xf0] }
 0x405   :  { %v6274_v30 = vld [vmem:[%s9567_s5 + $0x3ac] sm:$0xf0] }
 0x406   :  { %v1667_v0 = vsub.f32 1.5, %v1666_v53  ;;  %v1676_v35 = vmul.f32 0.5, %v1675_v32  ;;  %v5244_v53 = vld [vmem:[%s9567_s5 + $0x260] sm:$0xf] }
 0x408   :  { %v1668_v29 = vmul.f32 %v6470_v23, %v1667_v0  ;;  %v1677_v36 = vsub.f32 1.5, %v1676_v35  ;;  %v5181_v0 = vor.u32 %v6218_v26, %v5180_v25  ;;  %v4980_v35 = vld [vmem:[%s9567_s5 + $0x48] sm:$0xf]  ;;  %v6202_v25 = vld [vmem:[%s9567_s5 + $0x16c] sm:$0xf0] }
 0x409   :  { %v5340_v26 = vld [vmem:[%s9567_s5 + $0x320] sm:$0xf] }
 0x40a   :  { %v1672_v34 = vsel %vm1671_vm4, %v6470_v23, %v1668_v29  ;;  %v1678_v41 = vmul.f32 %v6472_v28, %v1677_v36  ;;  %v4996_v23 = vld [vmem:[%s9567_s5 + $0x68] sm:$0xf]  ;;  %v5404_v29 = vld [vmem:[%s9567_s5 + $0x3a0] sm:$0xf]  ;;  %2896 = vmatpush.bf16.msra.mxu1 %v5181_v0  ;;  %v6167_v36 = vld [vmem:[%s9567_s5 + $0x54] sm:$0xf0] }
 0x40b   :  { %v1683_v37 = vmul.f32 %v1672_v34, %v7822_v1  ;;  %v6187_v1 = vld [vmem:[%s9567_s5 + $0xf4] sm:$0xf0]  ;;  %v5405_v33 = vor.u32 %v6274_v30, %v5404_v29  ;;  %v4997_v34 = vor.u32 %v6171_v24, %v4996_v23  ;;  %v5116_v24 = vld [vmem:[%s9567_s5 + $0x160] sm:$0xf]  ;;  %v6258_v0 = vld [vmem:[%s9567_s5 + $0x32c] sm:$0xf0]  ;;  %v5049_v30 = vor.u32 %v6181_v20, %v5046_v21 }
 0x40c   :  { %v1682_v42 = vsel %vm1681_vm7, %v6472_v28, %v1678_v41  ;;  %v5061_v57 = vor.u32 %v6187_v1, %v5060_v52  ;;  %v6234_v28 = vld [vmem:[%s9567_s5 + $0x26c] sm:$0xf0]  ;;  %v4964_v1 = vld [vmem:[%s9567_s5 + $0x28] sm:$0xf]  ;;  %v5294_v29 = vld [vmem:[%s9567_s5 + $0x2d0] sm:$0xf0] }
 0x40d   :  { %v1684_v45 = vmul.f32 %v1682_v42, %v7827_v5  ;;  %v2070_v46 = vmul.f32 %v2066_v39, %v1683_v37  ;;  %v5245_v32 = vor.u32 %v6234_v28, %v5244_v53  ;;  %2926 = vmatpush.bf16.msra.mxu3 %v5405_v33  ;;  %v5164_v37 = vld [vmem:[%s9567_s5 + $0x1c0] sm:$0xf]  ;;  %v6230_v42 = vld [vmem:[%s9567_s5 + $0x24c] sm:$0xf0]  ;;  %v4965_v63 = vor.u32 %v6163_v48, %v4964_v1  ;;  %v6244_v28 = vld [vmem:[%s9567_s5 + $0x2c4] sm:$0xf] }
 0x40e   :  { %v5117_v53 = vor.u32 %v6202_v25, %v5116_v24  ;;  %v5297_v33 = vor.u32 %v6244_v28, %v5294_v29  ;;  %v5438_v1 = vld [vmem:[%s9567_s5 + $0x3f0] sm:$0xf0]  ;;  %v6173_v48 = vld [vmem:[%s9567_s5 + $0x8c] sm:$0xf]  ;;  %v4982_v20 = vld [vmem:[%s9567_s5 + $0x58] sm:$0xf0] }
 0x40f   :  { %v2074_v51 = vmul.f32 %v2066_v39, %v1684_v45  ;;  %v2090_v5 = vadd.f32 %v2086_v47, %v2070_v46  ;;  %2914 = vmatpush.bf16.msra.mxu2 %v5245_v32  ;;  %v6214_v39 = vld [vmem:[%s9567_s5 + $0x1cc] sm:$0xf0]  ;;  %v5388_v45 = vld [vmem:[%s9567_s5 + $0x380] sm:$0xf]  ;;  %v5341_v32 = vor.u32 %v6258_v0, %v5340_v26  ;;  %v5166_v24 = vld [vmem:[%s9567_s5 + $0x1d0] sm:$0xf0] }
 0x410   :  { %v5165_v41 = vor.u32 %v6214_v39, %v5164_v37  ;;  %v6270_v46 = vld [vmem:[%s9567_s5 + $0x38c] sm:$0xf0]  ;;  %v5324_v39 = vld [vmem:[%s9567_s5 + $0x300] sm:$0xf]  ;;  %v6228_v25 = vld [vmem:[%s9567_s5 + $0x244] sm:$0xf] }
 0x411   :  { %v2094_v55 = vadd.f32 %v2086_v47, %v2074_v51  ;;  %v4981_v47 = vor.u32 %v6167_v36, %v4980_v35  ;;  %v5229_v51 = vor.u32 %v6230_v42, %v5228_v40  ;;  %v5389_v52 = vor.u32 %v6270_v46, %v5388_v45  ;;  %v5030_v35 = vld [vmem:[%s9567_s5 + $0xb8] sm:$0xf0]  ;;  %v5100_v36 = vld [vmem:[%s9567_s5 + $0x140] sm:$0xf]  ;;  %v6198_v37 = vld [vmem:[%s9567_s5 + $0x14c] sm:$0xf0] }
 0x412   :  { %2897 = vmatpush.bf16.msra.mxu1 %v5165_v41  ;;  %v5101_v40 = vor.u32 %v6198_v37, %v5100_v36  ;;  %v6254_v41 = vld [vmem:[%s9567_s5 + $0x30c] sm:$0xf0]  ;;  %v6240_v42 = vld [vmem:[%s9567_s5 + $0x2a4] sm:$0xf]  ;;  %v5278_v45 = vld [vmem:[%s9567_s5 + $0x2b0] sm:$0xf0] }
 0x413   :  { %v7984_v59 = vpack.c.bf16 %v2094_v55, %v2090_v5  ;;  %2915 = vmatpush.bf16.msra.mxu2 %v5229_v51  ;;  %2927 = vmatpush.bf16.msra.mxu3 %v5389_v52  ;;  %v6210_v5 = vld [vmem:[%s9567_s5 + $0x1ac] sm:$0xf0]  ;;  %v5212_v55 = vld [vmem:[%s9567_s5 + $0x220] sm:$0xf]  ;;  %v5281_v51 = vor.u32 %v6240_v42, %v5278_v45  ;;  %v6280_v52 = vld [vmem:[%s9567_s5 + $0x3e4] sm:$0xf] }
 0x414   :  { %v5149_v56 = vor.u32 %v6210_v5, %v5148_v54  ;;  %v5014_v54 = vld [vmem:[%s9567_s5 + $0x98] sm:$0xf0]  ;;  %v5441_v5 = vor.u32 %v6280_v52, %v5438_v1  ;;  %v5230_v0 = vld [vmem:[%s9567_s5 + $0x250] sm:$0xf0]  ;;  %v6268_v28 = vld [vmem:[%s9567_s5 + $0x384] sm:$0xf] }
 0x415   :  { %2890 = vmatmul.bf16.vlgmr.msra.gmra.mxu0 %v7984_v59  ;;  %v5390_v29 = vld [vmem:[%s9567_s5 + $0x390] sm:$0xf0]  ;;  %v6208_v36 = vld [vmem:[%s9567_s5 + $0x1a4] sm:$0xf]  ;;  %v4950_v52 = vld [vmem:[%s9567_s5 + $0x18] sm:$0xf0] }
 0x416   :  { %2994 = vmatpush.bf16.msra.mxu0 %v5061_v57  ;;  %v6226_v57 = vld [vmem:[%s9567_s5 + $0x22c] sm:$0xf0]  ;;  %2898 = vmatpush.bf16.msra.mxu1 %v5149_v56  ;;  %v5150_v37 = vld [vmem:[%s9567_s5 + $0x1b0] sm:$0xf0] }
 0x417   :  { %v5213_v2 = vor.u32 %v6226_v57, %v5212_v55  ;;  %2928 = vmatpush.bf16.msra.mxu3 %v5373_v3  ;;  %v5084_v55 = vld [vmem:[%s9567_s5 + $0x120] sm:$0xf]  ;;  %v6194_v56 = vld [vmem:[%s9567_s5 + $0x12c] sm:$0xf0]  ;;  %v5265_v3 = vor.u32 %v6236_v60, %v5262_v62  ;;  %v5153_v42 = vor.u32 %v6208_v36, %v5150_v37  ;;  %v5214_v45 = vld [vmem:[%s9567_s5 + $0x230] sm:$0xf0] }
 0x418   :  { %v5085_v57 = vor.u32 %v6194_v56, %v5084_v55  ;;  %v6204_v55 = vld [vmem:[%s9567_s5 + $0x184] sm:$0xf]  ;;  %v5134_v56 = vld [vmem:[%s9567_s5 + $0x190] sm:$0xf0] }
 0x419   :  { %2916 = vmatpush.bf16.msra.mxu2 %v5213_v2  ;;  %v5017_v2 = vor.u32 %v6173_v48, %v5014_v54 }
 0x41a   :  { %2995 = vmatpush.bf16.msra.mxu0 %v5045_v4  ;;  %v4948_v4 = vld [vmem:[%s9567_s5 + $0x8] sm:$0xf]  ;;  %2899 = vmatpush.bf16.msra.mxu1 %v5133_v49  ;;  %v5182_v49 = vld [vmem:[%s9567_s5 + $0x1f0] sm:$0xf0] }
 0x41b   :  { %v4949_v12 = vor.u32 %v6159_v50, %v4948_v4  ;;  %2929 = vmatpush.bf16.msra.mxu3 %v5357_v18  ;;  %v5422_v4 = vld [vmem:[%s9567_s5 + $0x3d0] sm:$0xf0]  ;;  %v6169_v50 = vld [vmem:[%s9567_s5 + $0x6c] sm:$0xf] }
 0x41c   :  { %v5001_v14 = vor.u32 %v6169_v50, %v4998_v6  ;;  %v5406_v18 = vld [vmem:[%s9567_s5 + $0x3b0] sm:$0xf0] }
 0x41e   :  { %2996 = vmatpush.bf16.msra.mxu0 %v5029_v13  ;;  %v6222_v13 = vld [vmem:[%s9567_s5 + $0x20c] sm:$0xf0]  ;;  %2900 = vmatpush.bf16.msra.mxu1 %v5117_v53 }
 0x41f   :  { %v5197_v17 = vor.u32 %v6222_v13, %v5196_v11  ;;  %2930 = vmatpush.bf16.msra.mxu3 %v5341_v32  ;;  %v5069_v11 = vor.u32 %v6190_v10, %v5068_v9  ;;  %v6232_v13 = vld [vmem:[%s9567_s5 + $0x264] sm:$0xf]  ;;  %v4966_v32 = vld [vmem:[%s9567_s5 + $0x38] sm:$0xf0] }
 0x421   :  { %2917 = vmatpush.bf16.msra.mxu2 %v5197_v17  ;;  %v6272_v17 = vld [vmem:[%s9567_s5 + $0x3a4] sm:$0xf] }
 0x422   :  { %2997 = vmatpush.bf16.msra.mxu0 %v5013_v22  ;;  %v5310_v22 = vld [vmem:[%s9567_s5 + $0x2f0] sm:$0xf0]  ;;  %2901 = vmatpush.bf16.msra.mxu1 %v5101_v40 }
 0x423   :  { %v5313_v23 = vor.u32 %v6248_v19, %v5310_v22  ;;  %v6165_v19 = vld [vmem:[%s9567_s5 + $0x4c] sm:$0xf]  ;;  %v5409_v22 = vor.u32 %v6272_v17, %v5406_v18 }
 0x424   :  { %v4985_v26 = vor.u32 %v6165_v19, %v4982_v20 }
 0x425   :  { %2946 = vmatmul.bf16.vlgmr.msrb.gmra.mxu0 %v7984_v59  ;;  %2966 = vmatpush.bf16.msrb.mxu2 %v5313_v23  ;;  %v6212_v23 = vld [vmem:[%s9567_s5 + $0x1c4] sm:$0xf] }
 0x426   :  { %2998 = vmatpush.bf16.msra.mxu0 %v4997_v34  ;;  %v6177_v34 = vld [vmem:[%s9567_s5 + $0xac] sm:$0xf]  ;;  %2902 = vmatpush.bf16.msra.mxu1 %v5085_v57  ;;  %v5169_v53 = vor.u32 %v6212_v23, %v5166_v24  ;;  %v6220_v57 = vld [vmem:[%s9567_s5 + $0x204] sm:$0xf]  ;;  %v5102_v23 = vld [vmem:[%s9567_s5 + $0x150] sm:$0xf0] }
 0x427   :  { %v5033_v46 = vor.u32 %v6177_v34, %v5030_v35  ;;  %v5393_v34 = vor.u32 %v6268_v28, %v5390_v29 }
 0x429   :  { %2967 = vmatpush.bf16.msrb.mxu2 %v5297_v33  ;;  %v5233_v33 = vor.u32 %v6228_v25, %v5230_v0 }
 0x42a   :  { %2999 = vmatpush.bf16.msra.mxu0 %v4981_v47  ;;  %v5325_v47 = vor.u32 %v6254_v41, %v5324_v39  ;;  %2903 = vmatpush.bf16.msra.mxu1 %v5069_v11  ;;  %v6224_v39 = vld [vmem:[%s9567_s5 + $0x224] sm:$0xf] }
 0x42b   :  { %v5217_v1 = vor.u32 %v6224_v39, %v5214_v45 }
 0x42c   :  { %2931 = vmatpush.bf16.msra.mxu3 %v5325_v47  ;;  %v5374_v47 = vld [vmem:[%s9567_s5 + $0x370] sm:$0xf0] }
 0x42d   :  { %2968 = vmatpush.bf16.msrb.mxu2 %v5281_v51  ;;  %v6157_v51 = vld [vmem:[%s9567_s5 + $0xc] sm:$0xf] }
 0x42e   :  { %3000 = vmatpush.bf16.msra.mxu0 %v4965_v63  ;;  %v6276_v63 = vld [vmem:[%s9567_s5 + $0x3c4] sm:$0xf]  ;;  %v4953_v62 = vor.u32 %v6157_v51, %v4950_v52 }
 0x42f   :  { %v5425_v8 = vor.u32 %v6276_v63, %v5422_v4  ;;  %v5137_v63 = vor.u32 %v6204_v55, %v5134_v56  ;;  %v5358_v4 = vld [vmem:[%s9567_s5 + $0x350] sm:$0xf0]  ;;  %v6188_v52 = vld [vmem:[%s9567_s5 + $0x104] sm:$0xf] }
 0x430   :  { %2980 = vmatpush.bf16.msrb.mxu3 %v5441_v5 }
 0x431   :  { %2969 = vmatpush.bf16.msrb.mxu2 %v5265_v3  ;;  %v6260_v3 = vld [vmem:[%s9567_s5 + $0x344] sm:$0xf] }
 0x432   :  { %3001 = vmatpush.bf16.msra.mxu0 %v4949_v12  ;;  %v6216_v12 = vld [vmem:[%s9567_s5 + $0x1e4] sm:$0xf]  ;;  %v5361_v6 = vor.u32 %v6260_v3, %v5358_v4 }
 0x433   :  { %v5185_v15 = vor.u32 %v6216_v12, %v5182_v49  ;;  %v6200_v49 = vld [vmem:[%s9567_s5 + $0x164] sm:$0xf] }
 0x434   :  { %2981 = vmatpush.bf16.msrb.mxu3 %v5425_v8 }
 0x435   :  { %3002 = vmatmul.bf16.vlgmr.msra.gmra.mxu0 %v7984_v59  ;;  %2952 = vmatpush.bf16.msrb.mxu1 %v5185_v15 }
 0x436   :  { %3050 = vmatpush.bf16.msrb.mxu0 %v5065_v16  ;;  %v5246_v16 = vld [vmem:[%s9567_s5 + $0x270] sm:$0xf0] }
 0x437   :  { %v5249_v21 = vor.u32 %v6232_v13, %v5246_v16  ;;  %v5118_v13 = vld [vmem:[%s9567_s5 + $0x170] sm:$0xf0] }
 0x438   :  { %2982 = vmatpush.bf16.msrb.mxu3 %v5409_v22  ;;  %v5121_v15 = vor.u32 %v6200_v49, %v5118_v13  ;;  %v5342_v16 = vld [vmem:[%s9567_s5 + $0x330] sm:$0xf0]  ;;  %v6196_v22 = vld [vmem:[%s9567_s5 + $0x144] sm:$0xf]  ;;  %v6235_v13 = vld [vmem:[%s9567_s5 + $0x274] sm:$0xf0] }
 0x439   :  { %2970 = vmatpush.bf16.msrb.mxu2 %v5249_v21  ;;  %2953 = vmatpush.bf16.msrb.mxu1 %v5169_v53  ;;  %v5105_v25 = vor.u32 %v6196_v22, %v5102_v23 }
 0x43a   :  { %3051 = vmatpush.bf16.msrb.mxu0 %v5049_v30  ;;  %v6161_v30 = vld [vmem:[%s9567_s5 + $0x2c] sm:$0xf] }
 0x43b   :  { %v4969_v41 = vor.u32 %v6161_v30, %v4966_v32 }
 0x43c   :  { %2983 = vmatpush.bf16.msrb.mxu3 %v5393_v34  ;;  %v5086_v34 = vld [vmem:[%s9567_s5 + $0x130] sm:$0xf0] }
 0x43d   :  { %2971 = vmatpush.bf16.msrb.mxu2 %v5233_v33  ;;  %2954 = vmatpush.bf16.msrb.mxu1 %v5153_v42  ;;  %v6192_v33 = vld [vmem:[%s9567_s5 + $0x124] sm:$0xf] }
 0x43e   :  { %3052 = vmatpush.bf16.msrb.mxu0 %v5033_v46  ;;  %v6264_v46 = vld [vmem:[%s9567_s5 + $0x364] sm:$0xf]  ;;  %v5089_v37 = vor.u32 %v6192_v33, %v5086_v34  ;;  %v2059_v33 = vperm.slane %v7966_v38, 4 }
 0x43f   :  { %v5377_v48 = vor.u32 %v6264_v46, %v5374_v47 }
 0x441   :  { %2984 = vmatpush.bf16.msrb.mxu3 %v5377_v48  ;;  %2972 = vmatpush.bf16.msrb.mxu2 %v5217_v1  ;;  %v5070_v1 = vld [vmem:[%s9567_s5 + $0x110] sm:$0xf0] }
 0x442   :  { %3053 = vmatpush.bf16.msrb.mxu0 %v5017_v2  ;;  %v5198_v2 = vld [vmem:[%s9567_s5 + $0x210] sm:$0xf0]  ;;  %2955 = vmatpush.bf16.msrb.mxu1 %v5137_v63  ;;  %v5073_v55 = vor.u32 %v6188_v52, %v5070_v1  ;;  %v5444_v52 = vld [vmem:[%s9567_s5 + $0x3e8] sm:$0xf] }
 0x443   :  { %v5201_v50 = vor.u32 %v6220_v57, %v5198_v2 }
 0x445   :  { %2985 = vmatpush.bf16.msrb.mxu3 %v5361_v6  ;;  %2973 = vmatpush.bf16.msrb.mxu2 %v5201_v50 }
 0x446   :  { %3054 = vmatpush.bf16.msrb.mxu0 %v5001_v14  ;;  %v6256_v14 = vld [vmem:[%s9567_s5 + $0x324] sm:$0xf]  ;;  %2956 = vmatpush.bf16.msrb.mxu1 %v5121_v15 }
 0x447   :  { %v5345_v20 = vor.u32 %v6256_v14, %v5342_v16 }
 0x449   :  { %2986 = vmatpush.bf16.msrb.mxu3 %v5345_v20 }
 0x44a   :  { %3055 = vmatpush.bf16.msrb.mxu0 %v4985_v26  ;;  %v5326_v26 = vld [vmem:[%s9567_s5 + $0x310] sm:$0xf0]  ;;  %2957 = vmatpush.bf16.msrb.mxu1 %v5105_v25  ;;  %v6251_v25 = vld [vmem:[%s9567_s5 + $0x2f4] sm:$0xf0] }
 0x44e   :  { %v1902_v35 = vpop.xlane.xlu0 %1901  ;;  %3056 = vmatpush.bf16.msrb.mxu0 %v4969_v41  ;;  %v8386_v41 = vld [vmem:[%s9566_s4 + $0x8] sm:$0xff]  ;;  %2958 = vmatpush.bf16.msrb.mxu1 %v5089_v37  ;;  %v6247_v37 = vld [vmem:[%s9567_s5 + $0x2d4] sm:$0xf0] }
 0x44f   :  { %v1905_v40 = vmul.f32 %v1902_v35, %v7819_v61  ;;  %v2060_v48 = vperm.slane %v8386_v41, 0  ;;  %v2080_v4 = vperm.slane %v8386_v41, 1 }
 0x451   :  { %v8308_v54 = vadd.f32 1e-06, %v1905_v40  ;;  %v2068_v3 = vperm.slane %v2060_v48, 0  ;;  %v2088_v16 = vperm.slane %v2080_v4, 1  ;;  %v6243_v48 = vld [vmem:[%s9567_s5 + $0x2b4] sm:$0xf0] }
 0x452   :  { %3057 = vmatpush.bf16.msrb.mxu0 %v4953_v62  ;;  %2959 = vmatpush.bf16.msrb.mxu1 %v5073_v55  ;;  %v5428_v4 = vld [vmem:[%s9567_s5 + $0x3c8] sm:$0xf] }
 0x453   :  { %v2027_v5 = vpop.xlane.xlu2 %2026  ;;  %6473 = vrsqrt.f32 %v8308_v54  ;;  %vm1915_vm9 = vweird.f32 %v8308_v54 }
 0x454   :  { %v2029_v60 = vmul.f32 %v2027_v5, %v7819_v61 }
 0x455   :  { %3058 = vmatmul.bf16.vlgmr.msrb.gmra.mxu0 %v7984_v59  ;;  %v6252_v59 = vld [vmem:[%s9567_s5 + $0x304] sm:$0xf] }
 0x456   :  { %v8330_v8 = vadd.f32 1e-06, %v2029_v60  ;;  %v1779_v9 = vpop.xlane.xlu0 %1778  ;;  %v1904_v10 = vpop.xlane.xlu1 %1903  ;;  %v5329_v0 = vor.u32 %v6252_v59, %v5326_v26 }
 0x457   :  { %v1782_v11 = vmul.f32 %v1779_v9, %v7819_v61  ;;  %v1906_v12 = vmul.f32 %v1904_v10, %v7819_v61 }
 0x458   :  { %6475 = vrsqrt.f32 %v8330_v8  ;;  %2987 = vmatpush.bf16.msrb.mxu3 %v5329_v0  ;;  %vm2048_vm14 = vweird.f32 %v8330_v8 }
 0x459   :  { %v6474_v17 = vpop.eup %6473  ;;  %v8347_v18 = vadd.f32 1e-06, %v1782_v11  ;;  %v8349_v19 = vadd.f32 1e-06, %v1906_v12 }
 0x45a   :  { %v1910_v21 = vmul.f32 %v6474_v17, %v8308_v54  ;;  %vm1916_vm8 = vweird.f32 %v6474_v17 }
 0x45b   :  { %6477 = vrsqrt.f32 %v8347_v18  ;;  %vm1917_vm10 = vmor %vm1915_vm9, %vm1916_vm8  ;;  %vm1925_vm13 = vweird.f32 %v8349_v19  ;;  %vm1792_vm5 = vweird.f32 %v8347_v18 }
 0x45c   :  { %v1911_v24 = vmul.f32 %v6474_v17, %v1910_v21  ;;  %6479 = vrsqrt.f32 %v8349_v19 }
 0x45e   :  { %v8367_v53 = vpop.eup %6475  ;;  %v1912_v28 = vmul.f32 0.5, %v1911_v24  ;;  %v2025_v30 = vpop.xlane.xlu1 %2024  ;;  %v5316_v24 = vld [vmem:[%s9567_s5 + $0x2e8] sm:$0xf] }
 0x45f   :  { %v2043_v29 = vmul.f32 %v8367_v53, %v8330_v8  ;;  %v2028_v32 = vmul.f32 %v2025_v30, %v7819_v61  ;;  %vm2049_vm12 = vweird.f32 %v8367_v53  ;;  %v2081_v8 = vperm.slane %v8386_v41, 5 }
 0x460   :  { %v1913_v35 = vsub.f32 1.5, %v1912_v28  ;;  %vm8413_vm0 = vmor %vm2048_vm14, %vm2049_vm12 }
 0x461   :  { %v2044_v36 = vmul.f32 %v8367_v53, %v2043_v29  ;;  %v8379_v39 = vpop.eup %6477  ;;  %v8381_v40 = vadd.f32 1e-06, %v2028_v32  ;;  %v5317_v32 = vor.u32 %v6251_v25, %v5316_v24  ;;  %v5236_v24 = vld [vmem:[%s9567_s5 + $0x248] sm:$0xf]  ;;  %v6231_v25 = vld [vmem:[%s9567_s5 + $0x254] sm:$0xf0] }
 0x462   :  { %v6480_v42 = vpop.eup %6479  ;;  %v1914_v45 = vmul.f32 %v6474_v17, %v1913_v35  ;;  %v1787_v47 = vmul.f32 %v8379_v39, %v8347_v18  ;;  %vm1793_vm2 = vweird.f32 %v8379_v39 }
 0x463   :  { %v2045_v46 = vmul.f32 0.5, %v2044_v36  ;;  %v1920_v51 = vmul.f32 %v6480_v42, %v8349_v19  ;;  %6481 = vrsqrt.f32 %v8381_v40  ;;  %vm1926_vm11 = vweird.f32 %v6480_v42  ;;  %v5300_v36 = vld [vmem:[%s9567_s5 + $0x2c8] sm:$0xf]  ;;  %vm8445_vm6 = vmor %vm1792_vm5, %vm1793_vm2 }
 0x464   :  { %v1918_v56 = vsel %vm1917_vm10, %v6474_v17, %v1914_v45  ;;  %v1788_v60 = vmul.f32 %v8379_v39, %v1787_v47  ;;  %vm1927_vm15 = vmor %vm1925_vm13, %vm1926_vm11  ;;  %vm2038_vm3 = vweird.f32 %v8381_v40  ;;  %v5301_v47 = vor.u32 %v6247_v37, %v5300_v36 }
 0x465   :  { %v1921_v5 = vmul.f32 %v6480_v42, %v1920_v51  ;;  %v2046_v57 = vsub.f32 1.5, %v2045_v46  ;;  %v1929_v54 = vmul.f32 %v1918_v56, %v7868_v27  ;;  %v2061_v27 = vperm.slane %v8386_v41, 4 }
 0x466   :  { %v1781_v62 = vpop.xlane.xlu1 %1780  ;;  %v1789_v11 = vmul.f32 0.5, %v1788_v60  ;;  %v2079_v60 = vperm.slane %v7966_v38, 5  ;;  %v5268_v38 = vld [vmem:[%s9567_s5 + $0x288] sm:$0xf] }
 0x467   :  { %v1922_v63 = vmul.f32 0.5, %v1921_v5  ;;  %v1783_v2 = vmul.f32 %v1781_v62, %v7819_v61  ;;  %v2047_v10 = vmul.f32 %v8367_v53, %v2046_v57  ;;  %v2072_v15 = vmul.f32 %v2068_v3, %v1929_v54  ;;  %v6239_v54 = vld [vmem:[%s9567_s5 + $0x294] sm:$0xf0] }
 0x468   :  { %v1790_v19 = vsub.f32 1.5, %v1789_v11  ;;  %v2069_v59 = vperm.slane %v2061_v27, 0  ;;  %v2067_v5 = vperm.slane %v2059_v33, 0  ;;  %v6219_v27 = vld [vmem:[%s9567_s5 + $0x1f4] sm:$0xf0] }
 0x469   :  { %v6482_v50 = vpop.eup %6481  ;;  %v1923_v6 = vsub.f32 1.5, %v1922_v63  ;;  %v8404_v9 = vadd.f32 1e-06, %v1783_v2  ;;  %v2051_v17 = vsel %vm8413_vm0, %v8367_v53, %v2047_v10  ;;  %v2087_v10 = vperm.slane %v2079_v60, 1  ;;  %v5380_v33 = vld [vmem:[%s9567_s5 + $0x368] sm:$0xf] }
 0x46a   :  { %v2033_v12 = vmul.f32 %v6482_v50, %v8381_v40  ;;  %vm2039_vm1 = vweird.f32 %v6482_v50  ;;  %v2053_v53 = vmul.f32 %v2051_v17, %v7879_v31  ;;  %v1791_v0 = vmul.f32 %v8379_v39, %v1790_v19  ;;  %v5140_v40 = vld [vmem:[%s9567_s5 + $0x188] sm:$0xf]  ;;  %v5302_v60 = vld [vmem:[%s9567_s5 + $0x2d8] sm:$0xf0] }
 0x46b   :  { %v1924_v49 = vmul.f32 %v6480_v42, %v1923_v6  ;;  %6483 = vrsqrt.f32 %v8404_v9  ;;  %vm2040_vm4 = vmor %vm2038_vm3, %vm2039_vm1  ;;  %vm1802_vm8 = vweird.f32 %v8404_v9 }
 0x46c   :  { %v2034_v61 = vmul.f32 %v6482_v50, %v2033_v12  ;;  %v2077_v41 = vmul.f32 %v2069_v59, %v2053_v53  ;;  %v1795_v45 = vsel %vm8445_vm6, %v8379_v39, %v1791_v0  ;;  %v5284_v39 = vld [vmem:[%s9567_s5 + $0x2a8] sm:$0xf]  ;;  %v5269_v12 = vor.u32 %v6239_v54, %v5268_v38  ;;  %v6255_v38 = vld [vmem:[%s9567_s5 + $0x314] sm:$0xf0]  ;;  %v6241_v54 = vld [vmem:[%s9567_s5 + $0x2ac] sm:$0xf] }
 0x46d   :  { %v1928_v14 = vsel %vm1927_vm15, %v6480_v42, %v1924_v49  ;;  %v2089_v42 = vperm.slane %v2081_v8, 1  ;;  %v1806_v55 = vmul.f32 %v1795_v45, %v7901_v44  ;;  %v6279_v44 = vld [vmem:[%s9567_s5 + $0x3d4] sm:$0xf0]  ;;  %v5364_v45 = vld [vmem:[%s9567_s5 + $0x348] sm:$0xf] }
 0x46e   :  { %v1930_v20 = vmul.f32 %v1928_v14, %v7898_v43  ;;  %v2035_v21 = vmul.f32 0.5, %v2034_v61  ;;  %v2092_v43 = vadd.f32 %v2088_v16, %v2072_v15  ;;  %v5429_v11 = vor.u32 %v6279_v44, %v5428_v4  ;;  %v5188_v61 = vld [vmem:[%s9567_s5 + $0x1e8] sm:$0xf]  ;;  %v6275_v15 = vld [vmem:[%s9567_s5 + $0x3b4] sm:$0xf0] }
 0x46f   :  { %v2097_v57 = vadd.f32 %v2089_v42, %v2077_v41  ;;  %v5412_v14 = vld [vmem:[%s9567_s5 + $0x3a8] sm:$0xf]  ;;  %v5189_v19 = vor.u32 %v6219_v27, %v5188_v61  ;;  %v6199_v4 = vld [vmem:[%s9567_s5 + $0x154] sm:$0xf0] }
 0x470   :  { %v2036_v22 = vsub.f32 1.5, %v2035_v21  ;;  %v2076_v23 = vmul.f32 %v2068_v3, %v1930_v20  ;;  %v5285_v3 = vor.u32 %v6243_v48, %v5284_v39  ;;  %v5413_v8 = vor.u32 %v6275_v15, %v5412_v14  ;;  %v5204_v41 = vld [vmem:[%s9567_s5 + $0x208] sm:$0xf]  ;;  %v6203_v48 = vld [vmem:[%s9567_s5 + $0x174] sm:$0xf0] }
 0x471   :  { %v6484_v26 = vpop.eup %6483  ;;  %v5124_v39 = vld [vmem:[%s9567_s5 + $0x168] sm:$0xf]  ;;  %v6195_v61 = vld [vmem:[%s9567_s5 + $0x134] sm:$0xf0]  ;;  %v5270_v14 = vld [vmem:[%s9567_s5 + $0x298] sm:$0xf0] }
 0x472   :  { %v2037_v28 = vmul.f32 %v6482_v50, %v2036_v22  ;;  %v1797_v29 = vmul.f32 %v6484_v26, %v8404_v9  ;;  %v2096_v30 = vadd.f32 %v2088_v16, %v2076_v23  ;;  %vm1803_vm7 = vweird.f32 %v6484_v26  ;;  %v5172_v22 = vld [vmem:[%s9567_s5 + $0x1c8] sm:$0xf]  ;;  %v6215_v23 = vld [vmem:[%s9567_s5 + $0x1d4] sm:$0xf0]  ;;  %v6277_v15 = vld [vmem:[%s9567_s5 + $0x3cc] sm:$0xf] }
 0x473   :  { %vm1804_vm9 = vmor %vm1802_vm8, %vm1803_vm7  ;;  %v2071_v9 = vmul.f32 %v2067_v5, %v1806_v55  ;;  %v5173_v53 = vor.u32 %v6215_v23, %v5172_v22  ;;  %v5348_v55 = vld [vmem:[%s9567_s5 + $0x328] sm:$0xf]  ;;  %v6217_v23 = vld [vmem:[%s9567_s5 + $0x1ec] sm:$0xf] }
 0x474   :  { %v2041_v34 = vsel %vm2040_vm4, %v6482_v50, %v2037_v28  ;;  %v1798_v35 = vmul.f32 %v6484_v26, %v1797_v29  ;;  %v8435_v31 = vpack.c.bf16 %v2096_v30, %v2092_v43  ;;  %v5237_v43 = vor.u32 %v6231_v25, %v5236_v24  ;;  %v5156_v28 = vld [vmem:[%s9567_s5 + $0x1a8] sm:$0xf]  ;;  %v6211_v29 = vld [vmem:[%s9567_s5 + $0x1b4] sm:$0xf0]  ;;  %v5190_v24 = vld [vmem:[%s9567_s5 + $0x1f8] sm:$0xf0] }
 0x475   :  { %v2052_v18 = vmul.f32 %v2041_v34, %v7921_v58  ;;  %v6283_v58 = vld [vmem:[%s9567_s5 + $0x3f4] sm:$0xf0]  ;;  %v2091_v16 = vadd.f32 %v2087_v10, %v2071_v9  ;;  %v5220_v30 = vld [vmem:[%s9567_s5 + $0x228] sm:$0xf]  ;;  %v6281_v9 = vld [vmem:[%s9567_s5 + $0x3ec] sm:$0xf] }
 0x476   :  { %v1799_v46 = vmul.f32 0.5, %v1798_v35  ;;  %2918 = vmatmul.bf16.vlgmr.msra.gmra.mxu2 %v8435_v31  ;;  %v5445_v63 = vor.u32 %v6283_v58, %v5444_v52  ;;  %v6267_v34 = vld [vmem:[%s9567_s5 + $0x374] sm:$0xf0]  ;;  %v5157_v35 = vor.u32 %v6211_v29, %v5156_v28  ;;  %v6233_v25 = vld [vmem:[%s9567_s5 + $0x26c] sm:$0xf] }
 0x477   :  { %3022 = vmatpush.bf16.msra.mxu2 %v5317_v32  ;;  %v2073_v51 = vmul.f32 %v2069_v59, %v2052_v18  ;;  %v5396_v59 = vld [vmem:[%s9567_s5 + $0x388] sm:$0xf]  ;;  %v6227_v32 = vld [vmem:[%s9567_s5 + $0x234] sm:$0xf0]  ;;  %v5381_v37 = vor.u32 %v6267_v34, %v5380_v33  ;;  %v6229_v33 = vld [vmem:[%s9567_s5 + $0x24c] sm:$0xf] }
 0x478   :  { %v1800_v1 = vsub.f32 1.5, %v1799_v46  ;;  %v5221_v36 = vor.u32 %v6227_v32, %v5220_v30  ;;  %v6207_v18 = vld [vmem:[%s9567_s5 + $0x194] sm:$0xf0]  ;;  %v6213_v30 = vld [vmem:[%s9567_s5 + $0x1cc] sm:$0xf] }
 0x479   :  { %v2093_v56 = vadd.f32 %v2089_v42, %v2073_v51  ;;  %v6223_v42 = vld [vmem:[%s9567_s5 + $0x214] sm:$0xf0]  ;;  %v5318_v51 = vld [vmem:[%s9567_s5 + $0x2f8] sm:$0xf0]  ;;  %v5141_v52 = vor.u32 %v6207_v18, %v5140_v40 }
 0x47a   :  { %v1801_v62 = vmul.f32 %v6484_v26, %v1800_v1  ;;  %v6263_v46 = vld [vmem:[%s9567_s5 + $0x354] sm:$0xf0]  ;;  %v5205_v58 = vor.u32 %v6223_v42, %v5204_v41  ;;  %v5174_v32 = vld [vmem:[%s9567_s5 + $0x1d8] sm:$0xf0]  ;;  %v6209_v41 = vld [vmem:[%s9567_s5 + $0x1ac] sm:$0xf] }
 0x47b   :  { %3023 = vmatpush.bf16.msra.mxu2 %v5301_v47  ;;  %v8469_v2 = vpack.c.bf16 %v2097_v57, %v2093_v56  ;;  %v6249_v47 = vld [vmem:[%s9567_s5 + $0x2ec] sm:$0xf]  ;;  %v5365_v1 = vor.u32 %v6263_v46, %v5364_v45  ;;  %v6259_v56 = vld [vmem:[%s9567_s5 + $0x334] sm:$0xf0]  ;;  %v5238_v34 = vld [vmem:[%s9567_s5 + $0x258] sm:$0xf0] }
 0x47c   :  { %v1805_v50 = vsel %vm1804_vm9, %v6484_v26, %v1801_v62  ;;  %v6271_v26 = vld [vmem:[%s9567_s5 + $0x394] sm:$0xf0]  ;;  %v6245_v57 = vld [vmem:[%s9567_s5 + $0x2cc] sm:$0xf]  ;;  %v5125_v62 = vor.u32 %v6203_v48, %v5124_v39  ;;  %v5241_v40 = vor.u32 %v6229_v33, %v5238_v34  ;;  %v5158_v42 = vld [vmem:[%s9567_s5 + $0x1b8] sm:$0xf0] }
 0x47d   :  { %v1807_v6 = vmul.f32 %v1805_v50, %v7939_v7  ;;  %2932 = vmatmul.bf16.vlgmr.msra.gmra.mxu3 %v8469_v2  ;;  %v5252_v7 = vld [vmem:[%s9567_s5 + $0x268] sm:$0xf]  ;;  %v5397_v0 = vor.u32 %v6271_v26, %v5396_v59  ;;  %v5305_v44 = vor.u32 %v6245_v57, %v5302_v60  ;;  %v5254_v59 = vld [vmem:[%s9567_s5 + $0x278] sm:$0xf0]  ;;  %v6273_v26 = vld [vmem:[%s9567_s5 + $0x3ac] sm:$0xf] }
 0x47e   :  { %3036 = vmatpush.bf16.msra.mxu3 %v5445_v63  ;;  %v5253_v21 = vor.u32 %v6235_v13, %v5252_v7  ;;  %v5349_v63 = vor.u32 %v6259_v56, %v5348_v55  ;;  %v5332_v50 = vld [vmem:[%s9567_s5 + $0x308] sm:$0xf]  ;;  %v6237_v13 = vld [vmem:[%s9567_s5 + $0x28c] sm:$0xf]  ;;  %v5257_v28 = vor.u32 %v6233_v25, %v5254_v59  ;;  %v5222_v46 = vld [vmem:[%s9567_s5 + $0x238] sm:$0xf0] }
 0x47f   :  { %3024 = vmatpush.bf16.msra.mxu2 %v5285_v3  ;;  %v2075_v49 = vmul.f32 %v2067_v5, %v1807_v6  ;;  %v5321_v5 = vor.u32 %v6249_v47, %v5318_v51  ;;  %v5108_v3 = vld [vmem:[%s9567_s5 + $0x148] sm:$0xf]  ;;  %v5286_v6 = vld [vmem:[%s9567_s5 + $0x2b8] sm:$0xf0]  ;;  %v6225_v45 = vld [vmem:[%s9567_s5 + $0x22c] sm:$0xf] }
 0x480   :  { %v5289_v27 = vor.u32 %v6241_v54, %v5286_v6  ;;  %v6265_v47 = vld [vmem:[%s9567_s5 + $0x36c] sm:$0xf]  ;;  %v5382_v51 = vld [vmem:[%s9567_s5 + $0x378] sm:$0xf0]  ;;  %v6302_v25 = vld [vmem:[%s9568_s6 + $0x8c] sm:$0xf0] }
 0x481   :  { %v2095_v17 = vadd.f32 %v2087_v10, %v2075_v49  ;;  %v5446_v10 = vld [vmem:[%s9567_s5 + $0x3f8] sm:$0xf0]  ;;  %v5092_v49 = vld [vmem:[%s9567_s5 + $0x128] sm:$0xf]  ;;  %v6205_v39 = vld [vmem:[%s9567_s5 + $0x18c] sm:$0xf] }
 0x482   :  { %3037 = vmatpush.bf16.msra.mxu3 %v5429_v11  ;;  %v5109_v11 = vor.u32 %v6199_v4, %v5108_v3  ;;  %v5449_v7 = vor.u32 %v6281_v9, %v5446_v10  ;;  %v5142_v48 = vld [vmem:[%s9567_s5 + $0x198] sm:$0xf0]  ;;  %v6261_v56 = vld [vmem:[%s9567_s5 + $0x34c] sm:$0xf]  ;;  %v5692_v59 = vld [vmem:[%s9568_s6 + $0x1e0] sm:$0xf] }
 0x483   :  { %3025 = vmatpush.bf16.msra.mxu2 %v5269_v12  ;;  %v8503_v20 = vpack.c.bf16 %v2095_v17, %v2091_v16  ;;  %v5333_v12 = vor.u32 %v6255_v38, %v5332_v50  ;;  %v5430_v16 = vld [vmem:[%s9567_s5 + $0x3d8] sm:$0xf0]  ;;  %v5093_v17 = vor.u32 %v6195_v61, %v5092_v49  ;;  %v5145_v60 = vor.u32 %v6205_v39, %v5142_v48  ;;  %v6201_v3 = vld [vmem:[%s9567_s5 + $0x16c] sm:$0xf]  ;;  %v6338_v33 = vld [vmem:[%s9568_s6 + $0x1ac] sm:$0xf0] }
 0x484   :  { %v5433_v22 = vor.u32 %v6277_v15, %v5430_v16  ;;  %v5206_v55 = vld [vmem:[%s9567_s5 + $0x218] sm:$0xf0]  ;;  %v6197_v6 = vld [vmem:[%s9567_s5 + $0x14c] sm:$0xf]  ;;  %v6314_v15 = vld [vmem:[%s9568_s6 + $0xec] sm:$0xf0] }
 0x485   :  { %2904 = vmatmul.bf16.vlgmr.msra.gmra.mxu1 %v8503_v20  ;;  %v5366_v57 = vld [vmem:[%s9567_s5 + $0x358] sm:$0xf0]  ;;  %v6253_v10 = vld [vmem:[%s9567_s5 + $0x30c] sm:$0xf]  ;;  %v5566_v39 = vld [vmem:[%s9568_s6 + $0xf0] sm:$0xf0] }
 0x486   :  { %2974 = vmatmul.bf16.vlgmr.msrb.gmra.mxu2 %v8435_v31  ;;  %3008 = vmatpush.bf16.msra.mxu1 %v5189_v19  ;;  %v5076_v19 = vld [vmem:[%s9567_s5 + $0x108] sm:$0xf]  ;;  %v5126_v4 = vld [vmem:[%s9567_s5 + $0x178] sm:$0xf0]  ;;  %v6193_v61 = vld [vmem:[%s9567_s5 + $0x12c] sm:$0xf] }
 0x487   :  { %3026 = vmatpush.bf16.msra.mxu2 %v5253_v21  ;;  %3038 = vmatpush.bf16.msra.mxu3 %v5413_v8  ;;  %v6191_v21 = vld [vmem:[%s9567_s5 + $0x114] sm:$0xf0]  ;;  %v5273_v8 = vor.u32 %v6237_v13, %v5270_v14  ;;  %v5350_v50 = vld [vmem:[%s9567_s5 + $0x338] sm:$0xf0]  ;;  %v5129_v38 = vor.u32 %v6201_v3, %v5126_v4  ;;  %v6189_v13 = vld [vmem:[%s9567_s5 + $0x10c] sm:$0xf] }
 0x488   :  { %v5110_v9 = vld [vmem:[%s9567_s5 + $0x158] sm:$0xf0]  ;;  %v5564_v14 = vld [vmem:[%s9568_s6 + $0xe0] sm:$0xf] }
 0x489   :  { %v5565_v16 = vor.u32 %v6314_v15, %v5564_v14  ;;  %v5518_v14 = vld [vmem:[%s9568_s6 + $0x90] sm:$0xf0] }
 0x48a   :  { %3009 = vmatpush.bf16.msra.mxu1 %v5173_v53  ;;  %v5414_v53 = vld [vmem:[%s9567_s5 + $0x3b8] sm:$0xf0] }
 0x48b   :  { %3027 = vmatpush.bf16.msra.mxu2 %v5237_v43  ;;  %3039 = vmatpush.bf16.msra.mxu3 %v5397_v0  ;;  %v5077_v43 = vor.u32 %v6191_v21, %v5076_v19  ;;  %v5193_v0 = vor.u32 %v6217_v23, %v5190_v24  ;;  %v5417_v29 = vor.u32 %v6273_v26, %v5414_v53  ;;  %v5548_v19 = vld [vmem:[%s9568_s6 + $0xc0] sm:$0xf]  ;;  %v6310_v21 = vld [vmem:[%s9568_s6 + $0xcc] sm:$0xf0] }
 0x48c   :  { %3898 = vmatpush.bf16.msra.mxu0 %v5565_v16  ;;  %v5516_v24 = vld [vmem:[%s9568_s6 + $0x80] sm:$0xf]  ;;  %v6346_v26 = vld [vmem:[%s9568_s6 + $0x1ec] sm:$0xf0] }
 0x48d   :  { %2988 = vmatmul.bf16.vlgmr.msrb.gmra.mxu3 %v8469_v2  ;;  %v5693_v53 = vor.u32 %v6346_v26, %v5692_v59  ;;  %v6344_v59 = vld [vmem:[%s9568_s6 + $0x1e4] sm:$0xf]  ;;  %v5694_v26 = vld [vmem:[%s9568_s6 + $0x1f0] sm:$0xf0] }
 0x48e   :  { %3010 = vmatpush.bf16.msra.mxu1 %v5157_v35  ;;  %v6269_v35 = vld [vmem:[%s9567_s5 + $0x38c] sm:$0xf] }
 0x48f   :  { %3028 = vmatpush.bf16.msra.mxu2 %v5221_v36  ;;  %3040 = vmatpush.bf16.msra.mxu3 %v5381_v37  ;;  %v5398_v36 = vld [vmem:[%s9567_s5 + $0x398] sm:$0xf0]  ;;  %v5177_v37 = vor.u32 %v6213_v30, %v5174_v32  ;;  %v6298_v30 = vld [vmem:[%s9568_s6 + $0x6c] sm:$0xf0]  ;;  %v5660_v32 = vld [vmem:[%s9568_s6 + $0x1a0] sm:$0xf] }
 0x490   :  { %v5401_v18 = vor.u32 %v6269_v35, %v5398_v36  ;;  %v5484_v35 = vld [vmem:[%s9568_s6 + $0x40] sm:$0xf]  ;;  %v5661_v36 = vor.u32 %v6338_v33, %v5660_v32  ;;  %v5678_v33 = vld [vmem:[%s9568_s6 + $0x1d0] sm:$0xf0] }
 0x492   :  { %3011 = vmatpush.bf16.msra.mxu1 %v5141_v52  ;;  %v5161_v52 = vor.u32 %v6209_v41, %v5158_v42 }
 0x493   :  { %3029 = vmatpush.bf16.msra.mxu2 %v5205_v58  ;;  %3041 = vmatpush.bf16.msra.mxu3 %v5365_v1  ;;  %v5225_v58 = vor.u32 %v6225_v45, %v5222_v46  ;;  %v5385_v1 = vor.u32 %v6265_v47, %v5382_v51  ;;  %v5468_v45 = vld [vmem:[%s9568_s6 + $0x20] sm:$0xf]  ;;  %v6290_v46 = vld [vmem:[%s9568_s6 + $0x2c] sm:$0xf0] }
 0x494   :  { %v5469_v47 = vor.u32 %v6290_v46, %v5468_v45  ;;  %v5452_v51 = vld [vmem:[%s9568_s6] sm:$0xf]  ;;  %v5662_v45 = vld [vmem:[%s9568_s6 + $0x1b0] sm:$0xf0] }
 0x495   :  { %2960 = vmatmul.bf16.vlgmr.msrb.gmra.mxu1 %v8503_v20 }
 0x496   :  { %3012 = vmatpush.bf16.msra.mxu1 %v5125_v62  ;;  %3030 = vmatmul.bf16.vlgmr.msra.gmra.mxu2 %v8435_v31 }
 0x497   :  { %3078 = vmatpush.bf16.msrb.mxu2 %v5321_v5  ;;  %3042 = vmatpush.bf16.msra.mxu3 %v5349_v63  ;;  %v6221_v5 = vld [vmem:[%s9567_s5 + $0x20c] sm:$0xf]  ;;  %v5369_v63 = vor.u32 %v6261_v56, %v5366_v57  ;;  %v5820_v56 = vld [vmem:[%s9568_s6 + $0x2e0] sm:$0xf] }
 0x498   :  { %v5209_v62 = vor.u32 %v6221_v5, %v5206_v55  ;;  %v5628_v5 = vld [vmem:[%s9568_s6 + $0x160] sm:$0xf]  ;;  %v6330_v55 = vld [vmem:[%s9568_s6 + $0x16c] sm:$0xf0] }
 0x499   :  { %v5629_v57 = vor.u32 %v6330_v55, %v5628_v5  ;;  %v5646_v55 = vld [vmem:[%s9568_s6 + $0x190] sm:$0xf0] }
 0x49a   :  { %3013 = vmatpush.bf16.msra.mxu1 %v5109_v11  ;;  %v5334_v11 = vld [vmem:[%s9567_s5 + $0x318] sm:$0xf0] }
 0x49b   :  { %3079 = vmatpush.bf16.msrb.mxu2 %v5305_v44  ;;  %3043 = vmatpush.bf16.msra.mxu3 %v5333_v12  ;;  %v6257_v44 = vld [vmem:[%s9567_s5 + $0x32c] sm:$0xf]  ;;  %v5113_v12 = vor.u32 %v6197_v6, %v5110_v9  ;;  %v5337_v49 = vor.u32 %v6253_v10, %v5334_v11  ;;  %v6374_v6 = vld [vmem:[%s9568_s6 + $0x2cc] sm:$0xf0]  ;;  %v6304_v10 = vld [vmem:[%s9568_s6 + $0xa4] sm:$0xf] }
 0x49c   :  { %v5353_v54 = vor.u32 %v6257_v44, %v5350_v50  ;;  %v5612_v44 = vld [vmem:[%s9568_s6 + $0x140] sm:$0xf]  ;;  %v6326_v50 = vld [vmem:[%s9568_s6 + $0x14c] sm:$0xf0]  ;;  %v5534_v11 = vld [vmem:[%s9568_s6 + $0xb0] sm:$0xf0] }
 0x49e   :  { %3014 = vmatpush.bf16.msra.mxu1 %v5093_v17  ;;  %3044 = vmatmul.bf16.vlgmr.msra.gmra.mxu3 %v8469_v2 }
 0x49f   :  { %3080 = vmatpush.bf16.msrb.mxu2 %v5289_v27  ;;  %3092 = vmatpush.bf16.msrb.mxu3 %v5449_v7  ;;  %v5094_v27 = vld [vmem:[%s9567_s5 + $0x138] sm:$0xf0] }
 0x4a0   :  { %v5097_v7 = vor.u32 %v6193_v61, %v5094_v27  ;;  %v6322_v61 = vld [vmem:[%s9568_s6 + $0x12c] sm:$0xf0]  ;;  %v5788_v27 = vld [vmem:[%s9568_s6 + $0x2a0] sm:$0xf] }
 0x4a2   :  { %3015 = vmatpush.bf16.msra.mxu1 %v5077_v43  ;;  %v5676_v43 = vld [vmem:[%s9568_s6 + $0x1c0] sm:$0xf] }
 0x4a3   :  { %3081 = vmatpush.bf16.msrb.mxu2 %v5273_v8  ;;  %3093 = vmatpush.bf16.msrb.mxu3 %v5433_v22  ;;  %v5549_v8 = vor.u32 %v6310_v21, %v5548_v19  ;;  %v5532_v22 = vld [vmem:[%s9568_s6 + $0xa0] sm:$0xf]  ;;  %v6318_v19 = vld [vmem:[%s9568_s6 + $0x10c] sm:$0xf0] }
 0x4a4   :  { %v5772_v21 = vld [vmem:[%s9568_s6 + $0x280] sm:$0xf] }
 0x4a5   :  { %3016 = vmatmul.bf16.vlgmr.msra.gmra.mxu1 %v8503_v20  ;;  %3899 = vmatpush.bf16.msra.mxu0 %v5549_v8 }
 0x4a6   :  { %3064 = vmatpush.bf16.msrb.mxu1 %v5193_v0  ;;  %v5517_v0 = vor.u32 %v6302_v25, %v5516_v24 }
 0x4a7   :  { %3082 = vmatpush.bf16.msrb.mxu2 %v5257_v28  ;;  %3094 = vmatpush.bf16.msrb.mxu3 %v5417_v29  ;;  %v5500_v28 = vld [vmem:[%s9568_s6 + $0x60] sm:$0xf] }
 0x4a8   :  { %v5501_v34 = vor.u32 %v6298_v30, %v5500_v28  ;;  %v6292_v28 = vld [vmem:[%s9568_s6 + $0x44] sm:$0xf] }
 0x4a9   :  { %v6340_v30 = vld [vmem:[%s9568_s6 + $0x1c4] sm:$0xf] }
 0x4aa   :  { %3065 = vmatpush.bf16.msrb.mxu1 %v5177_v37  ;;  %v6294_v37 = vld [vmem:[%s9568_s6 + $0x4c] sm:$0xf0] }
 0x4ab   :  { %3083 = vmatpush.bf16.msrb.mxu2 %v5241_v40  ;;  %3095 = vmatpush.bf16.msrb.mxu3 %v5401_v18  ;;  %v5644_v40 = vld [vmem:[%s9568_s6 + $0x180] sm:$0xf]  ;;  %v6334_v18 = vld [vmem:[%s9568_s6 + $0x18c] sm:$0xf0]  ;;  %v5485_v41 = vor.u32 %v6294_v37, %v5484_v35 }
 0x4ac   :  { %v5645_v42 = vor.u32 %v6334_v18, %v5644_v40  ;;  %v5740_v35 = vld [vmem:[%s9568_s6 + $0x240] sm:$0xf]  ;;  %v6288_v40 = vld [vmem:[%s9568_s6 + $0x24] sm:$0xf]  ;;  %v5470_v18 = vld [vmem:[%s9568_s6 + $0x30] sm:$0xf0] }
 0x4ae   :  { %3066 = vmatpush.bf16.msrb.mxu1 %v5161_v52  ;;  %v6286_v52 = vld [vmem:[%s9568_s6 + $0xc] sm:$0xf0] }
 0x4af   :  { %3084 = vmatpush.bf16.msrb.mxu2 %v5225_v58  ;;  %3096 = vmatpush.bf16.msrb.mxu3 %v5385_v1  ;;  %v5453_v58 = vor.u32 %v6286_v52, %v5452_v51  ;;  %v6312_v1 = vld [vmem:[%s9568_s6 + $0xe4] sm:$0xf]  ;;  %v6354_v51 = vld [vmem:[%s9568_s6 + $0x22c] sm:$0xf0] }
 0x4b0   :  { %v5569_v48 = vor.u32 %v6312_v1, %v5566_v39  ;;  %v5454_v1 = vld [vmem:[%s9568_s6 + $0x10] sm:$0xf0]  ;;  %v6332_v39 = vld [vmem:[%s9568_s6 + $0x184] sm:$0xf] }
 0x4b2   :  { %3067 = vmatpush.bf16.msrb.mxu1 %v5145_v60  ;;  %v6378_v60 = vld [vmem:[%s9568_s6 + $0x2ec] sm:$0xf0] }
 0x4b3   :  { %3085 = vmatpush.bf16.msrb.mxu2 %v5209_v62  ;;  %3097 = vmatpush.bf16.msrb.mxu3 %v5369_v63  ;;  %v6308_v62 = vld [vmem:[%s9568_s6 + $0xc4] sm:$0xf]  ;;  %v5550_v63 = vld [vmem:[%s9568_s6 + $0xd0] sm:$0xf0]  ;;  %v5821_v3 = vor.u32 %v6378_v60, %v5820_v56  ;;  %v5649_v56 = vor.u32 %v6332_v39, %v5646_v55  ;;  %v6350_v60 = vld [vmem:[%s9568_s6 + $0x20c] sm:$0xf0] }
 0x4b4   :  { %v5553_v4 = vor.u32 %v6308_v62, %v5550_v63  ;;  %v5948_v62 = vld [vmem:[%s9568_s6 + $0x3e0] sm:$0xf]  ;;  %v6390_v55 = vld [vmem:[%s9568_s6 + $0x34c] sm:$0xf0] }
 0x4b6   :  { %3086 = vmatmul.bf16.vlgmr.msrb.gmra.mxu2 %v8435_v31  ;;  %3068 = vmatpush.bf16.msrb.mxu1 %v5129_v38  ;;  %v5078_v31 = vld [vmem:[%s9567_s5 + $0x118] sm:$0xf0]  ;;  %v5804_v38 = vld [vmem:[%s9568_s6 + $0x2c0] sm:$0xf]  ;;  %s6516_s5 = smov 32  }
 0x4b7   :  { %3098 = vmatpush.bf16.msrb.mxu3 %v5353_v54  ;;  %v5081_v17 = vor.u32 %v6189_v13, %v5078_v31  ;;  %v5613_v54 = vor.u32 %v6326_v50, %v5612_v44  ;;  %3926 = vmatpush.bf16.msra.mxu2 %v5821_v3  ;;  %v5805_v9 = vor.u32 %v6374_v6, %v5804_v38  ;;  %v6370_v13 = vld [vmem:[%s9568_s6 + $0x2ac] sm:$0xf0]  ;;  %v6300_v31 = vld [vmem:[%s9568_s6 + $0x84] sm:$0xf]  ;;  %v5630_v44 = vld [vmem:[%s9568_s6 + $0x170] sm:$0xf0] }
 0x4b8   :  { %v5789_v15 = vor.u32 %v6370_v13, %v5788_v27  ;;  %v5521_v16 = vor.u32 %v6300_v31, %v5518_v14  ;;  %v6410_v3 = vld [vmem:[%s9568_s6 + $0x3ec] sm:$0xf0]  ;;  %v5822_v6 = vld [vmem:[%s9568_s6 + $0x2f0] sm:$0xf0]  ;;  %v6372_v31 = vld [vmem:[%s9568_s6 + $0x2c4] sm:$0xf] }
 0x4b9   :  { %v5949_v50 = vor.u32 %v6410_v3, %v5948_v62  ;;  %v5614_v13 = vld [vmem:[%s9568_s6 + $0x150] sm:$0xf0] }
 0x4ba   :  { %3069 = vmatpush.bf16.msrb.mxu1 %v5113_v12  ;;  %v5537_v12 = vor.u32 %v6304_v10, %v5534_v11  ;;  %v8986_v10 = vld [vmem:[%s9566_s4] sm:$0xff]  ;;  %v5742_v62 = vld [vmem:[%s9568_s6 + $0x250] sm:$0xf0] }
 0x4bb   :  { %3099 = vmatpush.bf16.msrb.mxu3 %v5337_v49  ;;  %3927 = vmatpush.bf16.msra.mxu2 %v5805_v9  ;;  %v5596_v49 = vld [vmem:[%s9568_s6 + $0x120] sm:$0xf]  ;;  %v2230_v11 = vperm.slane %v8986_v10, 2 }
 0x4be   :  { %3100 = vmatmul.bf16.vlgmr.msrb.gmra.mxu3 %v8469_v2  ;;  %3070 = vmatpush.bf16.msrb.mxu1 %v5097_v7  ;;  %v6306_v2 = vld [vmem:[%s9568_s6 + $0xac] sm:$0xf0]  ;;  %v5597_v7 = vor.u32 %v6322_v61, %v5596_v49  ;;  %v5932_v49 = vld [vmem:[%s9568_s6 + $0x3c0] sm:$0xf] }
 0x4bf   :  { %v5533_v23 = vor.u32 %v6306_v2, %v5532_v22  ;;  %3928 = vmatpush.bf16.msra.mxu2 %v5789_v15  ;;  %v6366_v22 = vld [vmem:[%s9568_s6 + $0x28c] sm:$0xf0]  ;;  %v6296_v2 = vld [vmem:[%s9568_s6 + $0x64] sm:$0xf]  ;;  %3940 = vmatpush.bf16.msra.mxu3 %v5949_v50  ;;  %v5806_v15 = vld [vmem:[%s9568_s6 + $0x2d0] sm:$0xf0] }
 0x4c0   :  { %v5773_v24 = vor.u32 %v6366_v22, %v5772_v21  ;;  %v6406_v61 = vld [vmem:[%s9568_s6 + $0x3cc] sm:$0xf0]  ;;  %v5916_v21 = vld [vmem:[%s9568_s6 + $0x3a0] sm:$0xf] }
 0x4c1   :  { %3900 = vmatpush.bf16.msra.mxu0 %v5533_v23  ;;  %v5502_v23 = vld [vmem:[%s9568_s6 + $0x70] sm:$0xf0]  ;;  %v5933_v27 = vor.u32 %v6406_v61, %v5932_v49  ;;  %v6352_v49 = vld [vmem:[%s9568_s6 + $0x224] sm:$0xf] }
 0x4c2   :  { %3071 = vmatpush.bf16.msrb.mxu1 %v5081_v17  ;;  %v5580_v17 = vld [vmem:[%s9568_s6 + $0x100] sm:$0xf]  ;;  %v5505_v25 = vor.u32 %v6296_v2, %v5502_v23  ;;  %v6320_v2 = vld [vmem:[%s9568_s6 + $0x124] sm:$0xf]  ;;  %v5598_v23 = vld [vmem:[%s9568_s6 + $0x130] sm:$0xf0] }
 0x4c3   :  { %v5581_v8 = vor.u32 %v6318_v19, %v5580_v17  ;;  %3929 = vmatpush.bf16.msra.mxu2 %v5773_v24  ;;  %v2238_v17 = vperm.slane %v2230_v11, 2  ;;  %3941 = vmatpush.bf16.msra.mxu3 %v5933_v27  ;;  %v6368_v24 = vld [vmem:[%s9568_s6 + $0x2a4] sm:$0xf]  ;;  %v6315_v11 = vld [vmem:[%s9568_s6 + $0xf4] sm:$0xf0] }
 0x4c4   :  { %v5726_v61 = vld [vmem:[%s9568_s6 + $0x230] sm:$0xf0] }
 0x4c5   :  { %3072 = vmatmul.bf16.vlgmr.msrb.gmra.mxu1 %v8503_v20  ;;  %v6342_v20 = vld [vmem:[%s9568_s6 + $0x1cc] sm:$0xf0]  ;;  %3901 = vmatpush.bf16.msra.mxu0 %v5517_v0 }
 0x4c6   :  { %3912 = vmatpush.bf16.msra.mxu1 %v5693_v53  ;;  %v5677_v29 = vor.u32 %v6342_v20, %v5676_v43  ;;  %v5697_v53 = vor.u32 %v6344_v59, %v5694_v26  ;;  %v5756_v43 = vld [vmem:[%s9568_s6 + $0x260] sm:$0xf]  ;;  %v6362_v20 = vld [vmem:[%s9568_s6 + $0x26c] sm:$0xf0]  ;;  %v5601_v59 = vor.u32 %v6320_v2, %v5598_v23  ;;  %v5790_v26 = vld [vmem:[%s9568_s6 + $0x2b0] sm:$0xf0] }
 0x4c7   :  { %v5757_v0 = vor.u32 %v6362_v20, %v5756_v43  ;;  %v5900_v20 = vld [vmem:[%s9568_s6 + $0x380] sm:$0xf] }
 0x4c9   :  { %3902 = vmatpush.bf16.msra.mxu0 %v5501_v34  ;;  %v5681_v34 = vor.u32 %v6340_v30, %v5678_v33  ;;  %3930 = vmatpush.bf16.msra.mxu2 %v5757_v0  ;;  %v6398_v0 = vld [vmem:[%s9568_s6 + $0x38c] sm:$0xf0]  ;;  %v6316_v30 = vld [vmem:[%s9568_s6 + $0x104] sm:$0xf] }
 0x4ca   :  { %3913 = vmatpush.bf16.msra.mxu1 %v5677_v29  ;;  %v5486_v29 = vld [vmem:[%s9568_s6 + $0x50] sm:$0xf0]  ;;  %v6364_v33 = vld [vmem:[%s9568_s6 + $0x284] sm:$0xf] }
 0x4cb   :  { %v5489_v32 = vor.u32 %v6292_v28, %v5486_v29  ;;  %v5901_v29 = vor.u32 %v6398_v0, %v5900_v20 }
 0x4cd   :  { %3903 = vmatpush.bf16.msra.mxu0 %v5485_v41  ;;  %v6336_v41 = vld [vmem:[%s9568_s6 + $0x1a4] sm:$0xf] }
 0x4ce   :  { %3914 = vmatpush.bf16.msra.mxu1 %v5661_v36  ;;  %v6358_v36 = vld [vmem:[%s9568_s6 + $0x24c] sm:$0xf0]  ;;  %v5665_v46 = vor.u32 %v6336_v41, %v5662_v45  ;;  %v6360_v45 = vld [vmem:[%s9568_s6 + $0x264] sm:$0xf] }
 0x4cf   :  { %v5741_v37 = vor.u32 %v6358_v36, %v5740_v35  ;;  %v5774_v36 = vld [vmem:[%s9568_s6 + $0x290] sm:$0xf0]  ;;  %v6394_v41 = vld [vmem:[%s9568_s6 + $0x36c] sm:$0xf0] }
 0x4d1   :  { %3904 = vmatpush.bf16.msra.mxu0 %v5469_v47  ;;  %3931 = vmatpush.bf16.msra.mxu2 %v5741_v37  ;;  %v5724_v47 = vld [vmem:[%s9568_s6 + $0x220] sm:$0xf] }
 0x4d2   :  { %3915 = vmatpush.bf16.msra.mxu1 %v5645_v42  ;;  %v5473_v42 = vor.u32 %v6288_v40, %v5470_v18  ;;  %v5725_v52 = vor.u32 %v6354_v51, %v5724_v47  ;;  %v5777_v40 = vor.u32 %v6364_v33, %v5774_v36  ;;  %v5884_v18 = vld [vmem:[%s9568_s6 + $0x360] sm:$0xf]  ;;  %v9128_v36 = vld [vmem:[%s9566_s4 + $0x8] sm:$0xff] }
 0x4d5   :  { %3905 = vmatpush.bf16.msra.mxu0 %v5453_v58  ;;  %v6284_v58 = vld [vmem:[%s9568_s6 + $0x4] sm:$0xf]  ;;  %3932 = vmatpush.bf16.msra.mxu2 %v5725_v52 }
 0x4d6   :  { %3916 = vmatpush.bf16.msra.mxu1 %v5629_v57  ;;  %v5457_v5 = vor.u32 %v6284_v58, %v5454_v1  ;;  %v5708_v57 = vld [vmem:[%s9568_s6 + $0x200] sm:$0xf]  ;;  %v2231_v1 = vperm.slane %v8986_v10, 6 }
 0x4d7   :  { %v5709_v63 = vor.u32 %v6350_v60, %v5708_v57  ;;  %v6356_v60 = vld [vmem:[%s9568_s6 + $0x244] sm:$0xf] }
 0x4d8   :  { %v2239_v3 = vperm.slane %v2231_v1, 2 }
 0x4d9   :  { %3954 = vmatpush.bf16.msrb.mxu0 %v5569_v48  ;;  %v2891_v48 = vpop.f32.mrf.mxu0  ;;  %3933 = vmatpush.bf16.msra.mxu2 %v5709_v63  ;;  %v5745_v63 = vor.u32 %v6356_v60, %v5742_v62  ;;  %v5700_v60 = vld [vmem:[%s9568_s6 + $0x1e8] sm:$0xf] }
 0x4da   :  { %3917 = vmatpush.bf16.msra.mxu1 %v5613_v54  ;;  %v6376_v54 = vld [vmem:[%s9568_s6 + $0x2e4] sm:$0xf]  ;;  %v2892_v28 = vadd.f32 %v2891_v48, %v2238_v17 }
 0x4db   :  { %v5825_v9 = vor.u32 %v6376_v54, %v5822_v6  ;;  %v5852_v54 = vld [vmem:[%s9568_s6 + $0x320] sm:$0xf]  ;;  %v6386_v6 = vld [vmem:[%s9568_s6 + $0x32c] sm:$0xf0] }
 0x4dd   :  { %3955 = vmatpush.bf16.msrb.mxu0 %v5553_v4  ;;  %v6328_v4 = vld [vmem:[%s9568_s6 + $0x164] sm:$0xf]  ;;  %3982 = vmatpush.bf16.msrb.mxu2 %v5825_v9 }
 0x4de   :  { %3918 = vmatpush.bf16.msra.mxu1 %v5597_v7  ;;  %v5633_v38 = vor.u32 %v6328_v4, %v5630_v44  ;;  %v6324_v7 = vld [vmem:[%s9568_s6 + $0x144] sm:$0xf] }
 0x4df   :  { %v5617_v14 = vor.u32 %v6324_v7, %v5614_v13  ;;  %v5729_v7 = vor.u32 %v6352_v49, %v5726_v61  ;;  %v6295_v49 = vld [vmem:[%s9568_s6 + $0x54] sm:$0xf0]  ;;  %v5684_v61 = vld [vmem:[%s9568_s6 + $0x1c8] sm:$0xf] }
 0x4e1   :  { %3956 = vmatpush.bf16.msrb.mxu0 %v5537_v12  ;;  %v2893_v19 = vpop.f32.mrf.mxu0 }
 0x4e2   :  { %3919 = vmatpush.bf16.msra.mxu1 %v5581_v8  ;;  %v6402_v8 = vld [vmem:[%s9568_s6 + $0x3ac] sm:$0xf0]  ;;  %v2894_v58 = vadd.f32 %v2893_v19, %v2238_v17  ;;  %v6311_v19 = vld [vmem:[%s9568_s6 + $0xd4] sm:$0xf0] }
 0x4e3   :  { %v5917_v22 = vor.u32 %v6402_v8, %v5916_v21  ;;  %v5836_v21 = vld [vmem:[%s9568_s6 + $0x300] sm:$0xf]  ;;  %v6382_v8 = vld [vmem:[%s9568_s6 + $0x30c] sm:$0xf0] }
 0x4e4   :  { %v5837_v23 = vor.u32 %v6382_v8, %v5836_v21 }
 0x4e5   :  { %3957 = vmatpush.bf16.msrb.mxu0 %v5521_v16  ;;  %v5809_v16 = vor.u32 %v6372_v31, %v5806_v15  ;;  %3942 = vmatpush.bf16.msra.mxu3 %v5917_v22 }
 0x4e6   :  { %3968 = vmatpush.bf16.msrb.mxu1 %v5697_v53  ;;  %v5793_v53 = vor.u32 %v6368_v24, %v5790_v26  ;;  %v6348_v24 = vld [vmem:[%s9568_s6 + $0x204] sm:$0xf] }
 0x4e7   :  { %3983 = vmatpush.bf16.msrb.mxu2 %v5809_v16 }
 0x4e9   :  { %3958 = vmatpush.bf16.msrb.mxu0 %v5505_v25  ;;  %3943 = vmatpush.bf16.msra.mxu3 %v5901_v29  ;;  %v2947_v47 = vpop.f32.mrf.mxu0  ;;  %v6307_v29 = vld [vmem:[%s9568_s6 + $0xb4] sm:$0xf0] }
 0x4ea   :  { %3969 = vmatpush.bf16.msrb.mxu1 %v5681_v34  ;;  %v2948_v22 = vadd.f32 %v2947_v47, %v2239_v3  ;;  %v6303_v47 = vld [vmem:[%s9568_s6 + $0x94] sm:$0xf0] }
 0x4eb   :  { %3984 = vmatpush.bf16.msrb.mxu2 %v5793_v53  ;;  %v5950_v53 = vld [vmem:[%s9568_s6 + $0x3f0] sm:$0xf0] }
 0x4ed   :  { %3959 = vmatpush.bf16.msrb.mxu0 %v5489_v32  ;;  %v5582_v32 = vld [vmem:[%s9568_s6 + $0x110] sm:$0xf0] }
 0x4ee   :  { %3970 = vmatpush.bf16.msrb.mxu1 %v5665_v46  ;;  %v5585_v35 = vor.u32 %v6316_v30, %v5582_v32  ;;  %v5758_v46 = vld [vmem:[%s9568_s6 + $0x270] sm:$0xf0]  ;;  %v6404_v30 = vld [vmem:[%s9568_s6 + $0x3c4] sm:$0xf] }
 0x4ef   :  { %3985 = vmatpush.bf16.msrb.mxu2 %v5777_v40  ;;  %v5761_v52 = vor.u32 %v6360_v45, %v5758_v46  ;;  %v5934_v32 = vld [vmem:[%s9568_s6 + $0x3d0] sm:$0xf0]  ;;  %v5524_v45 = vld [vmem:[%s9568_s6 + $0x88] sm:$0xf] }
 0x4f1   :  { %3960 = vmatpush.bf16.msrb.mxu0 %v5473_v42  ;;  %v5885_v42 = vor.u32 %v6394_v41, %v5884_v18  ;;  %v2949_v15 = vpop.f32.mrf.mxu0 }
 0x4f2   :  { %3971 = vmatpush.bf16.msrb.mxu1 %v5649_v56 }
 0x4f3   :  { %3944 = vmatpush.bf16.msra.mxu3 %v5885_v42  ;;  %3986 = vmatpush.bf16.msrb.mxu2 %v5761_v52  ;;  %v5918_v52 = vld [vmem:[%s9568_s6 + $0x3b0] sm:$0xf0] }
 0x4f5   :  { %3961 = vmatpush.bf16.msrb.mxu0 %v5457_v5  ;;  %v5868_v5 = vld [vmem:[%s9568_s6 + $0x340] sm:$0xf] }
 0x4f6   :  { %3972 = vmatpush.bf16.msrb.mxu1 %v5633_v38  ;;  %v5869_v57 = vor.u32 %v6390_v55, %v5868_v5  ;;  %v5572_v38 = vld [vmem:[%s9568_s6 + $0xe8] sm:$0xf]  ;;  %v5525_v55 = vor.u32 %v6303_v47, %v5524_v45 }
 0x4f7   :  { %3987 = vmatpush.bf16.msrb.mxu2 %v5745_v63  ;;  %v5573_v17 = vor.u32 %v6315_v11, %v5572_v38  ;;  %v6347_v63 = vld [vmem:[%s9568_s6 + $0x1f4] sm:$0xf0] }
 0x4f8   :  { %3945 = vmatpush.bf16.msra.mxu3 %v5869_v57  ;;  %v6299_v57 = vld [vmem:[%s9568_s6 + $0x74] sm:$0xf0]  ;;  %v5701_v11 = vor.u32 %v6347_v63, %v5700_v60  ;;  %v5558_v63 = vld [vmem:[%s9568_s6 + $0xd8] sm:$0xf0] }
 0x4f9   :  { %v2919_v12 = vpop.f32.mrf.mxu2  ;;  %v6379_v60 = vld [vmem:[%s9568_s6 + $0x2f4] sm:$0xf0] }
 0x4fa   :  { %3973 = vmatpush.bf16.msrb.mxu1 %v5617_v14  ;;  %v5556_v14 = vld [vmem:[%s9568_s6 + $0xc8] sm:$0xf] }
 0x4fb   :  { %3988 = vmatpush.bf16.msrb.mxu2 %v5729_v7  ;;  %v5557_v0 = vor.u32 %v6311_v19, %v5556_v14  ;;  %v5886_v14 = vld [vmem:[%s9568_s6 + $0x370] sm:$0xf0] }
 0x4fe   :  { %3974 = vmatpush.bf16.msrb.mxu1 %v5601_v59  ;;  %v6408_v59 = vld [vmem:[%s9568_s6 + $0x3e4] sm:$0xf] }
 0x4ff   :  { %v5953_v20 = vor.u32 %v6408_v59, %v5950_v53  ;;  %v6388_v59 = vld [vmem:[%s9568_s6 + $0x344] sm:$0xf] }
 0x500   :  { %v2933_v25 = vpop.f32.mrf.mxu3 }
 0x501   :  { %v2921_v34 = vpop.f32.mrf.mxu2 }
 0x502   :  { %v2905_v43 = vpop.f32.mrf.mxu1  ;;  %3975 = vmatpush.bf16.msrb.mxu1 %v5585_v35  ;;  %v2950_v35 = vadd.f32 %v2949_v15, %v2239_v3  ;;  %v6396_v3 = vld [vmem:[%s9568_s6 + $0x384] sm:$0xf] }
 0x503   :  { %v2906_v37 = vadd.f32 %v2905_v43, %v2892_v28  ;;  %v5540_v28 = vld [vmem:[%s9568_s6 + $0xa8] sm:$0xf] }
 0x504   :  { %v5541_v42 = vor.u32 %v6307_v29, %v5540_v28 }
 0x505   :  { %v2920_v39 = vadd.f32 %v2919_v12, %v2906_v37  ;;  %v5853_v12 = vor.u32 %v6386_v6, %v5852_v54  ;;  %v2232_v37 = vperm.slane %v9128_v36, 2 }
 0x507   :  { %v2934_v4 = vadd.f32 %v2933_v25, %v2920_v39  ;;  %3946 = vmatpush.bf16.msra.mxu3 %v5853_v12  ;;  %v5710_v25 = vld [vmem:[%s9568_s6 + $0x210] sm:$0xf0]  ;;  %v2240_v39 = vperm.slane %v2232_v37, 2  ;;  %v5492_v12 = vld [vmem:[%s9568_s6 + $0x48] sm:$0xf] }
 0x508   :  { %v2935_v51 = vpop.f32.mrf.mxu3  ;;  %v5713_v26 = vor.u32 %v6348_v24, %v5710_v25  ;;  %v5493_v21 = vor.u32 %v6295_v49, %v5492_v12  ;;  %v5668_v24 = vld [vmem:[%s9568_s6 + $0x1a8] sm:$0xf]  ;;  %v6339_v25 = vld [vmem:[%s9568_s6 + $0x1b4] sm:$0xf0]  ;;  %v6384_v37 = vld [vmem:[%s9568_s6 + $0x324] sm:$0xf] }
 0x509   :  { %v2975_v50 = vpop.f32.mrf.mxu2  ;;  %v3106_v13 = vmax.f32 %v2934_v4, 0.0  ;;  %v5902_v4 = vld [vmem:[%s9568_s6 + $0x390] sm:$0xf0]  ;;  %v5669_v29 = vor.u32 %v6339_v25, %v5668_v24  ;;  %v5812_v12 = vld [vmem:[%s9568_s6 + $0x2c8] sm:$0xf] }
 0x50a   :  { %v2907_v48 = vpop.f32.mrf.mxu1  ;;  %3989 = vmatpush.bf16.msrb.mxu2 %v5713_v26  ;;  %v5870_v26 = vld [vmem:[%s9568_s6 + $0x350] sm:$0xf0]  ;;  %v6375_v49 = vld [vmem:[%s9568_s6 + $0x2d4] sm:$0xf0] }
 0x50b   :  { %v2908_v56 = vadd.f32 %v2907_v48, %v2894_v58  ;;  %3947 = vmatpush.bf16.msra.mxu3 %v5837_v23  ;;  %v3003_v58 = vpop.f32.mrf.mxu0  ;;  %v6291_v23 = vld [vmem:[%s9568_s6 + $0x34] sm:$0xf0]  ;;  %v5873_v53 = vor.u32 %v6388_v59, %v5870_v26 }
 0x50d   :  { %v2922_v44 = vadd.f32 %v2921_v34, %v2908_v56  ;;  %v5937_v34 = vor.u32 %v6404_v30, %v5934_v32  ;;  %v5508_v56 = vld [vmem:[%s9568_s6 + $0x68] sm:$0xf]  ;;  %v6287_v32 = vld [vmem:[%s9568_s6 + $0x14] sm:$0xf0] }
 0x50e   :  { %v5460_v30 = vld [vmem:[%s9568_s6 + $0x8] sm:$0xf] }
 0x50f   :  { %v2936_v9 = vadd.f32 %v2935_v51, %v2922_v44  ;;  %3996 = vmatpush.bf16.msrb.mxu3 %v5953_v20  ;;  %v6400_v51 = vld [vmem:[%s9568_s6 + $0x3a4] sm:$0xf]  ;;  %v5905_v44 = vor.u32 %v6396_v3, %v5902_v4 }
 0x510   :  { %v2989_v27 = vpop.f32.mrf.mxu3  ;;  %v5921_v1 = vor.u32 %v6400_v51, %v5918_v52  ;;  %v5461_v52 = vor.u32 %v6287_v32, %v5460_v30  ;;  %v6345_v30 = vld [vmem:[%s9568_s6 + $0x1ec] sm:$0xf]  ;;  %v5702_v32 = vld [vmem:[%s9568_s6 + $0x1f8] sm:$0xf0] }
 0x511   :  { %v3110_v31 = vmax.f32 %v2936_v9, 0.0  ;;  %v2977_v33 = vpop.f32.mrf.mxu2  ;;  %v5509_v9 = vor.u32 %v6299_v57, %v5508_v56  ;;  %v6380_v56 = vld [vmem:[%s9568_s6 + $0x304] sm:$0xf]  ;;  %v5838_v57 = vld [vmem:[%s9568_s6 + $0x310] sm:$0xf0] }
 0x512   :  { %v2961_v16 = vpop.f32.mrf.mxu1  ;;  %v5841_v3 = vor.u32 %v6380_v56, %v5838_v57  ;;  %v6359_v57 = vld [vmem:[%s9568_s6 + $0x254] sm:$0xf0] }
 0x513   :  { %v9098_v2 = vpack.c.bf16 %v3110_v31, %v3106_v13  ;;  %v2962_v43 = vadd.f32 %v2961_v16, %v2948_v22  ;;  %3997 = vmatpush.bf16.msrb.mxu3 %v5937_v34  ;;  %v6343_v13 = vld [vmem:[%s9568_s6 + $0x1d4] sm:$0xf0]  ;;  %v6392_v31 = vld [vmem:[%s9568_s6 + $0x364] sm:$0xf]  ;;  %v3005_v19 = vpop.f32.mrf.mxu0  ;;  %v5476_v22 = vld [vmem:[%s9568_s6 + $0x28] sm:$0xf] }
 0x514   :  { %v5889_v16 = vor.u32 %v6392_v31, %v5886_v14  ;;  %v5685_v8 = vor.u32 %v6343_v13, %v5684_v61  ;;  %v5477_v28 = vor.u32 %v6291_v23, %v5476_v22  ;;  %v6305_v61 = vld [vmem:[%s9568_s6 + $0xac] sm:$0xf]  ;;  %v2233_v13 = vperm.slane %v9128_v36, 6  ;;  %v5526_v22 = vld [vmem:[%s9568_s6 + $0x98] sm:$0xf0] }
 0x515   :  { %3906 = vmatmul.bf16.vlgmr.msra.gmra.mxu0 %v9098_v2  ;;  %v2976_v40 = vadd.f32 %v2975_v50, %v2962_v43  ;;  %v3006_v43 = vadd.f32 %v3005_v19, %v2240_v39  ;;  %v5813_v14 = vor.u32 %v6375_v49, %v5812_v12  ;;  %v5796_v19 = vld [vmem:[%s9568_s6 + $0x2a8] sm:$0xf]  ;;  %v6355_v49 = vld [vmem:[%s9568_s6 + $0x234] sm:$0xf0] }
 0x516   :  { %4010 = vmatpush.bf16.msra.mxu0 %v5573_v17  ;;  %v2241_v24 = vperm.slane %v2233_v13, 2 }
 0x517   :  { %v2990_v48 = vadd.f32 %v2989_v27, %v2976_v40  ;;  %3998 = vmatpush.bf16.msrb.mxu3 %v5921_v1  ;;  %v3004_v27 = vadd.f32 %v3003_v58, %v2240_v39  ;;  %v5854_v40 = vld [vmem:[%s9568_s6 + $0x330] sm:$0xf0]  ;;  %v5636_v1 = vld [vmem:[%s9568_s6 + $0x168] sm:$0xf]  ;;  %v6331_v39 = vld [vmem:[%s9568_s6 + $0x174] sm:$0xf0] }
 0x518   :  { %v2991_v18 = vpop.f32.mrf.mxu3  ;;  %v5857_v45 = vor.u32 %v6384_v37, %v5854_v40 }
 0x519   :  { %v3107_v50 = vmax.f32 %v2990_v48, 0.0  ;;  %v3031_v54 = vpop.f32.mrf.mxu2 }
 0x51a   :  { %4011 = vmatpush.bf16.msra.mxu0 %v5557_v0  ;;  %v2963_v41 = vpop.f32.mrf.mxu1 }
 0x51b   :  { %v2964_v46 = vadd.f32 %v2963_v41, %v2950_v35  ;;  %3999 = vmatpush.bf16.msrb.mxu3 %v5905_v44  ;;  %v6335_v35 = vld [vmem:[%s9568_s6 + $0x194] sm:$0xf0]  ;;  %v6313_v41 = vld [vmem:[%s9568_s6 + $0xec] sm:$0xf]  ;;  %v3059_v23 = vpop.f32.mrf.mxu0 }
 0x51d   :  { %v2978_v5 = vadd.f32 %v2977_v33, %v2964_v46  ;;  %v5652_v33 = vld [vmem:[%s9568_s6 + $0x188] sm:$0xf] }
 0x51e   :  { %4012 = vmatpush.bf16.msra.mxu0 %v5541_v42  ;;  %v5574_v42 = vld [vmem:[%s9568_s6 + $0xf8] sm:$0xf0]  ;;  %v5653_v58 = vor.u32 %v6335_v35, %v5652_v33 }
 0x51f   :  { %v2992_v62 = vadd.f32 %v2991_v18, %v2978_v5  ;;  %4000 = vmatpush.bf16.msrb.mxu3 %v5889_v16  ;;  %v5577_v5 = vor.u32 %v6313_v41, %v5574_v42  ;;  %v5604_v16 = vld [vmem:[%s9568_s6 + $0x128] sm:$0xf]  ;;  %v3060_v41 = vadd.f32 %v3059_v23, %v2241_v24  ;;  %v5705_v42 = vor.u32 %v6345_v30, %v5702_v32 }
 0x521   :  { %v3111_v38 = vmax.f32 %v2992_v62, 0.0  ;;  %v3045_v15 = vpop.f32.mrf.mxu3  ;;  %v3033_v18 = vpop.f32.mrf.mxu2  ;;  %v6309_v62 = vld [vmem:[%s9568_s6 + $0xcc] sm:$0xf] }
 0x522   :  { %4013 = vmatpush.bf16.msra.mxu0 %v5525_v55  ;;  %v3017_v6 = vpop.f32.mrf.mxu1  ;;  %v5828_v55 = vld [vmem:[%s9568_s6 + $0x2e8] sm:$0xf] }
 0x523   :  { %v9170_v7 = vpack.c.bf16 %v3111_v38, %v3107_v50  ;;  %v3018_v17 = vadd.f32 %v3017_v6, %v3004_v27  ;;  %4001 = vmatpush.bf16.msrb.mxu3 %v5873_v53  ;;  %v5637_v50 = vor.u32 %v6331_v39, %v5636_v1  ;;  %v5561_v6 = vor.u32 %v6309_v62, %v5558_v63  ;;  %v5542_v27 = vld [vmem:[%s9568_s6 + $0xb8] sm:$0xf0]  ;;  %v5588_v53 = vld [vmem:[%s9568_s6 + $0x108] sm:$0xf]  ;;  %v3061_v39 = vpop.f32.mrf.mxu0  ;;  %v6337_v63 = vld [vmem:[%s9568_s6 + $0x1ac] sm:$0xf] }
 0x524   :  { %v5478_v62 = vld [vmem:[%s9568_s6 + $0x38] sm:$0xf0] }
 0x525   :  { %3920 = vmatmul.bf16.vlgmr.msra.gmra.mxu1 %v9170_v7  ;;  %3962 = vmatmul.bf16.vlgmr.msrb.gmra.mxu0 %v9098_v2  ;;  %v3032_v20 = vadd.f32 %v3031_v54, %v3018_v17  ;;  %v5829_v54 = vor.u32 %v6379_v60, %v5828_v55  ;;  %v6323_v17 = vld [vmem:[%s9568_s6 + $0x134] sm:$0xf0]  ;;  %v5748_v55 = vld [vmem:[%s9568_s6 + $0x248] sm:$0xf]  ;;  %v6289_v60 = vld [vmem:[%s9568_s6 + $0x2c] sm:$0xf] }
 0x526   :  { %4014 = vmatpush.bf16.msra.mxu0 %v5509_v9  ;;  %4024 = vmatpush.bf16.msra.mxu1 %v5701_v11  ;;  %v5620_v9 = vld [vmem:[%s9568_s6 + $0x148] sm:$0xf]  ;;  %v6327_v11 = vld [vmem:[%s9568_s6 + $0x154] sm:$0xf0]  ;;  %v5605_v25 = vor.u32 %v6323_v17, %v5604_v16 }
 0x527   :  { %v3046_v46 = vadd.f32 %v3045_v15, %v3032_v20  ;;  %4002 = vmatpush.bf16.msrb.mxu3 %v5857_v45  ;;  %v5621_v31 = vor.u32 %v6327_v11, %v5620_v9  ;;  %v5545_v15 = vor.u32 %v6305_v61, %v5542_v27  ;;  %v5780_v20 = vld [vmem:[%s9568_s6 + $0x288] sm:$0xf]  ;;  %v6363_v45 = vld [vmem:[%s9568_s6 + $0x274] sm:$0xf0]  ;;  %v6285_v61 = vld [vmem:[%s9568_s6 + $0xc] sm:$0xf] }
 0x528   :  { %v5732_v9 = vld [vmem:[%s9568_s6 + $0x228] sm:$0xf]  ;;  %v5462_v27 = vld [vmem:[%s9568_s6 + $0x18] sm:$0xf0] }
 0x529   :  { %v3047_v51 = vpop.f32.mrf.mxu3  ;;  %v3108_v4 = vmax.f32 %v3046_v46, 0.0  ;;  %v6293_v46 = vld [vmem:[%s9568_s6 + $0x4c] sm:$0xf] }
 0x52a   :  { %4015 = vmatpush.bf16.msra.mxu0 %v5493_v21  ;;  %4025 = vmatpush.bf16.msra.mxu1 %v5685_v8  ;;  %v3019_v0 = vpop.f32.mrf.mxu1  ;;  %v6371_v21 = vld [vmem:[%s9568_s6 + $0x2b4] sm:$0xf0]  ;;  %v6301_v8 = vld [vmem:[%s9568_s6 + $0x8c] sm:$0xf] }
 0x52b   :  { %v3020_v34 = vadd.f32 %v3019_v0, %v3006_v43  ;;  %4003 = vmatpush.bf16.msrb.mxu3 %v5841_v3  ;;  %v5797_v59 = vor.u32 %v6371_v21, %v5796_v19  ;;  %v5529_v26 = vor.u32 %v6301_v8, %v5526_v22  ;;  %v6319_v43 = vld [vmem:[%s9568_s6 + $0x114] sm:$0xf0]  ;;  %v5670_v3 = vld [vmem:[%s9568_s6 + $0x1b8] sm:$0xf0]  ;;  %v5733_v19 = vor.u32 %v6355_v49, %v5732_v9  ;;  %v5716_v8 = vld [vmem:[%s9568_s6 + $0x208] sm:$0xf] }
 0x52c   :  { %v6367_v0 = vld [vmem:[%s9568_s6 + $0x294] sm:$0xf0]  ;;  %v5589_v33 = vor.u32 %v6319_v43, %v5588_v53  ;;  %v5673_v12 = vor.u32 %v6337_v63, %v5670_v3  ;;  %v5465_v21 = vor.u32 %v6285_v61, %v5462_v27  ;;  %v5638_v53 = vld [vmem:[%s9568_s6 + $0x178] sm:$0xf0]  ;;  %v6377_v43 = vld [vmem:[%s9568_s6 + $0x2ec] sm:$0xf] }
 0x52d   :  { %v3034_v47 = vadd.f32 %v3033_v18, %v3020_v34  ;;  %v5781_v37 = vor.u32 %v6367_v0, %v5780_v20  ;;  %v5764_v18 = vld [vmem:[%s9568_s6 + $0x268] sm:$0xf]  ;;  %v6351_v22 = vld [vmem:[%s9568_s6 + $0x214] sm:$0xf0]  ;;  %v5830_v20 = vld [vmem:[%s9568_s6 + $0x2f8] sm:$0xf0] }
 0x52e   :  { %4016 = vmatpush.bf16.msra.mxu0 %v5477_v28  ;;  %4026 = vmatpush.bf16.msra.mxu1 %v5669_v29  ;;  %v6297_v28 = vld [vmem:[%s9568_s6 + $0x6c] sm:$0xf]  ;;  %v5510_v29 = vld [vmem:[%s9568_s6 + $0x78] sm:$0xf0]  ;;  %v5876_v61 = vld [vmem:[%s9568_s6 + $0x348] sm:$0xf] }
 0x52f   :  { %v3048_v48 = vadd.f32 %v3047_v51, %v3034_v47  ;;  %v5513_v40 = vor.u32 %v6297_v28, %v5510_v29  ;;  %v5494_v47 = vld [vmem:[%s9568_s6 + $0x58] sm:$0xf0]  ;;  %v5717_v29 = vor.u32 %v6351_v22, %v5716_v8  ;;  %v6365_v63 = vld [vmem:[%s9568_s6 + $0x28c] sm:$0xf]  ;;  %v6391_v27 = vld [vmem:[%s9568_s6 + $0x354] sm:$0xf0] }
 0x530   :  { %v5782_v3 = vld [vmem:[%s9568_s6 + $0x298] sm:$0xf0]  ;;  %v6361_v9 = vld [vmem:[%s9568_s6 + $0x26c] sm:$0xf]  ;;  %v5844_v22 = vld [vmem:[%s9568_s6 + $0x308] sm:$0xf] }
 0x531   :  { %v3112_v44 = vmax.f32 %v3048_v48, 0.0  ;;  %v5765_v48 = vor.u32 %v6363_v45, %v5764_v18  ;;  %v5622_v18 = vld [vmem:[%s9568_s6 + $0x158] sm:$0xf0] }
 0x532   :  { %4017 = vmatpush.bf16.msra.mxu0 %v5461_v52  ;;  %4027 = vmatpush.bf16.msra.mxu1 %v5653_v58  ;;  %v6341_v52 = vld [vmem:[%s9568_s6 + $0x1cc] sm:$0xf]  ;;  %v5686_v58 = vld [vmem:[%s9568_s6 + $0x1d8] sm:$0xf0] }
 0x533   :  { %v9249_v38 = vpack.c.bf16 %v3112_v44, %v3108_v4  ;;  %v5689_v56 = vor.u32 %v6341_v52, %v5686_v58  ;;  %v3062_v4 = vadd.f32 %v3061_v39, %v2241_v24  ;;  %v6403_v52 = vld [vmem:[%s9568_s6 + $0x3b4] sm:$0xf0]  ;;  %v6321_v58 = vld [vmem:[%s9568_s6 + $0x12c] sm:$0xf]  ;;  %v5798_v39 = vld [vmem:[%s9568_s6 + $0x2b8] sm:$0xf0] }
 0x535   :  { %3934 = vmatmul.bf16.vlgmr.msra.gmra.mxu2 %v9249_v38  ;;  %3976 = vmatmul.bf16.vlgmr.msrb.gmra.mxu1 %v9170_v7 }
 0x536   :  { %4066 = vmatpush.bf16.msrb.mxu0 %v5577_v5  ;;  %4028 = vmatpush.bf16.msra.mxu1 %v5637_v50  ;;  %v5497_v5 = vor.u32 %v6293_v46, %v5494_v47 }
 0x537   :  { %4018 = vmatmul.bf16.vlgmr.msra.gmra.mxu0 %v9098_v2  ;;  %4038 = vmatpush.bf16.msra.mxu2 %v5829_v54  ;;  %v5749_v54 = vor.u32 %v6359_v57, %v5748_v55  ;;  %v6399_v57 = vld [vmem:[%s9568_s6 + $0x394] sm:$0xf0] }
 0x539   :  { %v3087_v34 = vpop.f32.mrf.mxu2 }
 0x53a   :  { %4067 = vmatpush.bf16.msrb.mxu0 %v5561_v6  ;;  %4029 = vmatpush.bf16.msra.mxu1 %v5621_v31  ;;  %v5481_v6 = vor.u32 %v6289_v60, %v5478_v62  ;;  %v6333_v31 = vld [vmem:[%s9568_s6 + $0x18c] sm:$0xf]  ;;  %v5590_v62 = vld [vmem:[%s9568_s6 + $0x118] sm:$0xf0] }
 0x53b   :  { %4039 = vmatpush.bf16.msra.mxu2 %v5813_v14  ;;  %v5654_v14 = vld [vmem:[%s9568_s6 + $0x198] sm:$0xf0]  ;;  %v6317_v60 = vld [vmem:[%s9568_s6 + $0x10c] sm:$0xf] }
 0x53c   :  { %v5657_v24 = vor.u32 %v6333_v31, %v5654_v14  ;;  %v5750_v31 = vld [vmem:[%s9568_s6 + $0x258] sm:$0xf0]  ;;  %v5877_v14 = vor.u32 %v6391_v27, %v5876_v61 }
 0x53e   :  { %4068 = vmatpush.bf16.msrb.mxu0 %v5545_v15  ;;  %4030 = vmatpush.bf16.msra.mxu1 %v5605_v25  ;;  %v5956_v25 = vld [vmem:[%s9568_s6 + $0x3e8] sm:$0xf] }
 0x53f   :  { %4040 = vmatpush.bf16.msra.mxu2 %v5797_v59  ;;  %v6411_v59 = vld [vmem:[%s9568_s6 + $0x3f4] sm:$0xf0] }
 0x540   :  { %v5957_v30 = vor.u32 %v6411_v59, %v5956_v25  ;;  %v5718_v25 = vld [vmem:[%s9568_s6 + $0x218] sm:$0xf0]  ;;  %v6409_v59 = vld [vmem:[%s9568_s6 + $0x3ec] sm:$0xf] }
 0x541   :  { %v3101_v51 = vpop.f32.mrf.mxu3  ;;  %v3089_v13 = vpop.f32.mrf.mxu2 }
 0x542   :  { %v3073_v35 = vpop.f32.mrf.mxu1  ;;  %4069 = vmatpush.bf16.msrb.mxu0 %v5529_v26  ;;  %4031 = vmatpush.bf16.msra.mxu1 %v5589_v33  ;;  %v6329_v26 = vld [vmem:[%s9568_s6 + $0x16c] sm:$0xf] }
 0x543   :  { %v3074_v1 = vadd.f32 %v3073_v35, %v3060_v41  ;;  %4041 = vmatpush.bf16.msra.mxu2 %v5781_v37  ;;  %v5641_v33 = vor.u32 %v6329_v26, %v5638_v53  ;;  %v5940_v35 = vld [vmem:[%s9568_s6 + $0x3c8] sm:$0xf]  ;;  %v6407_v37 = vld [vmem:[%s9568_s6 + $0x3d4] sm:$0xf0]  ;;  %v6373_v41 = vld [vmem:[%s9568_s6 + $0x2cc] sm:$0xf] }
 0x544   :  { %v5941_v45 = vor.u32 %v6407_v37, %v5940_v35  ;;  %v5958_v26 = vld [vmem:[%s9568_s6 + $0x3f8] sm:$0xf0]  ;;  %v6397_v35 = vld [vmem:[%s9568_s6 + $0x38c] sm:$0xf] }
 0x545   :  { %3990 = vmatmul.bf16.vlgmr.msrb.gmra.mxu2 %v9249_v38  ;;  %4032 = vmatmul.bf16.vlgmr.msra.gmra.mxu1 %v9170_v7  ;;  %v3088_v44 = vadd.f32 %v3087_v34, %v3074_v1  ;;  %v5833_v34 = vor.u32 %v6377_v43, %v5830_v20  ;;  %v6369_v1 = vld [vmem:[%s9568_s6 + $0x2ac] sm:$0xf]  ;;  %v5961_v20 = vor.u32 %v6409_v59, %v5958_v26  ;;  %v5910_v37 = vld [vmem:[%s9568_s6 + $0x398] sm:$0xf0] }
 0x546   :  { %4070 = vmatpush.bf16.msrb.mxu0 %v5513_v40  ;;  %4080 = vmatpush.bf16.msrb.mxu1 %v5705_v42  ;;  %v6325_v40 = vld [vmem:[%s9568_s6 + $0x14c] sm:$0xf]  ;;  %v5814_v42 = vld [vmem:[%s9568_s6 + $0x2d8] sm:$0xf0]  ;;  %v5801_v55 = vor.u32 %v6369_v1, %v5798_v39 }
 0x547   :  { %4042 = vmatpush.bf16.msra.mxu2 %v5765_v48  ;;  %v3102_v15 = vadd.f32 %v3101_v51, %v3088_v44  ;;  %v5625_v46 = vor.u32 %v6325_v40, %v5622_v18  ;;  %v5817_v47 = vor.u32 %v6373_v41, %v5814_v42  ;;  %v5924_v51 = vld [vmem:[%s9568_s6 + $0x3a8] sm:$0xf]  ;;  %v5593_v44 = vor.u32 %v6317_v60, %v5590_v62  ;;  %v6393_v18 = vld [vmem:[%s9568_s6 + $0x36c] sm:$0xf] }
 0x548   :  { %v5925_v48 = vor.u32 %v6403_v52, %v5924_v51  ;;  %v5913_v40 = vor.u32 %v6397_v35, %v5910_v37  ;;  %v6389_v42 = vld [vmem:[%s9568_s6 + $0x34c] sm:$0xf]  ;;  %v5862_v51 = vld [vmem:[%s9568_s6 + $0x338] sm:$0xf0] }
 0x549   :  { %v3103_v17 = vpop.f32.mrf.mxu3  ;;  %v3109_v0 = vmax.f32 %v3102_v15, 0.0 }
 0x54a   :  { %v3075_v50 = vpop.f32.mrf.mxu1  ;;  %4071 = vmatpush.bf16.msrb.mxu0 %v5497_v5  ;;  %4081 = vmatpush.bf16.msrb.mxu1 %v5689_v56  ;;  %v5908_v56 = vld [vmem:[%s9568_s6 + $0x388] sm:$0xf] }
 0x54b   :  { %v3076_v11 = vadd.f32 %v3075_v50, %v3062_v4  ;;  %4043 = vmatpush.bf16.msra.mxu2 %v5749_v54  ;;  %v5909_v4 = vor.u32 %v6399_v57, %v5908_v56  ;;  %v5785_v50 = vor.u32 %v6365_v63, %v5782_v3  ;;  %v5892_v54 = vld [vmem:[%s9568_s6 + $0x368] sm:$0xf] }
 0x54d   :  { %v3090_v16 = vadd.f32 %v3089_v13, %v3076_v11  ;;  %v5766_v11 = vld [vmem:[%s9568_s6 + $0x278] sm:$0xf0]  ;;  %v6357_v13 = vld [vmem:[%s9568_s6 + $0x24c] sm:$0xf] }
 0x54e   :  { %4072 = vmatpush.bf16.msrb.mxu0 %v5481_v6  ;;  %4082 = vmatpush.bf16.msrb.mxu1 %v5673_v12  ;;  %v6395_v6 = vld [vmem:[%s9568_s6 + $0x374] sm:$0xf0]  ;;  %v5769_v49 = vor.u32 %v6361_v9, %v5766_v11  ;;  %v5753_v15 = vor.u32 %v6357_v13, %v5750_v31  ;;  %v3247_v9 = vperm.slane %v8986_v10, 7 }
 0x54f   :  { %v3104_v23 = vadd.f32 %v3103_v17, %v3090_v16  ;;  %4044 = vmatpush.bf16.msra.mxu2 %v5733_v19  ;;  %v5893_v12 = vor.u32 %v6395_v6, %v5892_v54  ;;  %v5860_v16 = vld [vmem:[%s9568_s6 + $0x328] sm:$0xf]  ;;  %v6387_v17 = vld [vmem:[%s9568_s6 + $0x334] sm:$0xf0]  ;;  %v6353_v19 = vld [vmem:[%s9568_s6 + $0x22c] sm:$0xf] }
 0x551   :  { %v3113_v28 = vmax.f32 %v3104_v23, 0.0  ;;  %v6383_v23 = vld [vmem:[%s9568_s6 + $0x314] sm:$0xf0] }
 0x552   :  { %4073 = vmatpush.bf16.msrb.mxu0 %v5465_v21  ;;  %4083 = vmatpush.bf16.msrb.mxu1 %v5657_v24  ;;  %v5734_v21 = vld [vmem:[%s9568_s6 + $0x238] sm:$0xf0]  ;;  %v6349_v24 = vld [vmem:[%s9568_s6 + $0x20c] sm:$0xf]  ;;  %v5845_v53 = vor.u32 %v6383_v23, %v5844_v22 }
 0x553   :  { %v9395_v32 = vpack.c.bf16 %v3113_v28, %v3109_v0  ;;  %4045 = vmatpush.bf16.msra.mxu2 %v5717_v29  ;;  %v5737_v8 = vor.u32 %v6353_v19, %v5734_v21  ;;  %v5721_v43 = vor.u32 %v6349_v24, %v5718_v25  ;;  %v6405_v0 = vld [vmem:[%s9568_s6 + $0x3cc] sm:$0xf]  ;;  %v5942_v28 = vld [vmem:[%s9568_s6 + $0x3d8] sm:$0xf0] }
 0x554   :  { %v5945_v29 = vor.u32 %v6405_v0, %v5942_v28 }
 0x555   :  { %3948 = vmatmul.bf16.vlgmr.msra.gmra.mxu3 %v9395_v32  ;;  %4074 = vmatmul.bf16.vlgmr.msrb.gmra.mxu0 %v9098_v2  ;;  %v5606_v2 = vld [vmem:[%s9568_s6 + $0x138] sm:$0xf0] }
 0x556   :  { %4052 = vmatpush.bf16.msra.mxu3 %v5957_v30  ;;  %4084 = vmatpush.bf16.msrb.mxu1 %v5641_v33  ;;  %v5609_v5 = vor.u32 %v6321_v58, %v5606_v2  ;;  %v6401_v30 = vld [vmem:[%s9568_s6 + $0x3ac] sm:$0xf]  ;;  %v5926_v33 = vld [vmem:[%s9568_s6 + $0x3b8] sm:$0xf0] }
 0x557   :  { %4094 = vmatpush.bf16.msrb.mxu2 %v5833_v34  ;;  %v5929_v34 = vor.u32 %v6401_v30, %v5926_v33  ;;  %v6381_v58 = vld [vmem:[%s9568_s6 + $0x30c] sm:$0xf]  ;;  %v5846_v2 = vld [vmem:[%s9568_s6 + $0x318] sm:$0xf0] }
 0x558   :  { %4046 = vmatmul.bf16.vlgmr.msra.gmra.mxu2 %v9249_v38  ;;  %v5849_v1 = vor.u32 %v6381_v58, %v5846_v2 }
 0x55a   :  { %4053 = vmatpush.bf16.msra.mxu3 %v5941_v45  ;;  %4085 = vmatpush.bf16.msrb.mxu1 %v5625_v46  ;;  %v5878_v45 = vld [vmem:[%s9568_s6 + $0x358] sm:$0xf0] }
 0x55b   :  { %4095 = vmatpush.bf16.msrb.mxu2 %v5817_v47  ;;  %v5881_v46 = vor.u32 %v6389_v42, %v5878_v45  ;;  %v6385_v47 = vld [vmem:[%s9568_s6 + $0x32c] sm:$0xf]  ;;  %v3249_v42 = vperm.slane %v9128_v36, 7 }
 0x55c   :  { %v5865_v52 = vor.u32 %v6385_v47, %v5862_v51 }
 0x55e   :  { %4054 = vmatpush.bf16.msra.mxu3 %v5925_v48  ;;  %4086 = vmatpush.bf16.msrb.mxu1 %v5609_v5 }
 0x55f   :  { %4096 = vmatpush.bf16.msrb.mxu2 %v5801_v55  ;;  %v3246_v55 = vperm.slane %v8986_v10, 3  ;;  %v3248_v10 = vperm.slane %v9128_v36, 3 }
 0x561   :  { %v3254_v56 = vperm.slane %v3246_v55, 3  ;;  %v3256_v24 = vperm.slane %v3248_v10, 3 }
 0x562   :  { %4055 = vmatpush.bf16.msra.mxu3 %v5909_v4  ;;  %4087 = vmatpush.bf16.msrb.mxu1 %v5593_v44 }
 0x563   :  { %4097 = vmatpush.bf16.msrb.mxu2 %v5785_v50 }
 0x565   :  { %4004 = vmatmul.bf16.vlgmr.msrb.gmra.mxu3 %v9395_v32  ;;  %4088 = vmatmul.bf16.vlgmr.msrb.gmra.mxu1 %v9170_v7  ;;  %v5861_v7 = vor.u32 %v6387_v17, %v5860_v16 }
 0x566   :  { %4056 = vmatpush.bf16.msra.mxu3 %v5893_v12 }
 0x567   :  { %4098 = vmatpush.bf16.msrb.mxu2 %v5769_v49  ;;  %v3255_v49 = vperm.slane %v3247_v9, 3 }
 0x56a   :  { %4057 = vmatpush.bf16.msra.mxu3 %v5877_v14 }
 0x56b   :  { %4099 = vmatpush.bf16.msrb.mxu2 %v5753_v15 }
 0x56e   :  { %4058 = vmatpush.bf16.msra.mxu3 %v5861_v7 }
 0x56f   :  { %4100 = vmatpush.bf16.msrb.mxu2 %v5737_v8 }
 0x572   :  { %4059 = vmatpush.bf16.msra.mxu3 %v5845_v53 }
 0x573   :  { %4101 = vmatpush.bf16.msrb.mxu2 %v5721_v43 }
 0x575   :  { %4060 = vmatmul.bf16.vlgmr.msra.gmra.mxu3 %v9395_v32 }
 0x576   :  { %4108 = vmatpush.bf16.msrb.mxu3 %v5961_v20  ;;  %4102 = vmatmul.bf16.vlgmr.msrb.gmra.mxu2 %v9249_v38  ;;  %v5894_v38 = vld [vmem:[%s9568_s6 + $0x378] sm:$0xf0]  ;;  %s6514_s6 = smov [#allocation2]  }
 0x577   :  { %v5897_v41 = vor.u32 %v6393_v18, %v5894_v38  ;;  %s4134_s29 = sshll.u32 %s6514_s6, 4  ;;  %s4135_s29 = int_to_ptr.vmem [resolvable:$true] %s4134_s29 }
 0x57a   :  { %4109 = vmatpush.bf16.msrb.mxu3 %v5945_v29 }
 0x57e   :  { %4110 = vmatpush.bf16.msrb.mxu3 %v5929_v34 }
 0x582   :  { %4111 = vmatpush.bf16.msrb.mxu3 %v5913_v40 }
 0x586   :  { %4112 = vmatpush.bf16.msrb.mxu3 %v5897_v41 }
 0x58a   :  { %4113 = vmatpush.bf16.msrb.mxu3 %v5881_v46  ;;  %v3257_v46 = vperm.slane %v3249_v42, 3 }
 0x58e   :  { %4114 = vmatpush.bf16.msrb.mxu3 %v5865_v52 }
 0x592   :  { %4115 = vmatpush.bf16.msrb.mxu3 %v5849_v1  ;;  %v3907_v39 = vpop.f32.mrf.mxu0 }
 0x593   :  { %v3908_v62 = vadd.f32 %v3907_v39, %v3254_v56 }
 0x595   :  { %4116 = vmatmul.bf16.vlgmr.msrb.gmra.mxu3 %v9395_v32 }
 0x59a   :  { %v3909_v57 = vpop.f32.mrf.mxu0 }
 0x59b   :  { %v3910_v6 = vadd.f32 %v3909_v57, %v3254_v56 }
 0x5a2   :  { %v3921_v48 = vpop.f32.mrf.mxu1  ;;  %v3963_v54 = vpop.f32.mrf.mxu0 }
 0x5a3   :  { %v3922_v3 = vadd.f32 %v3921_v48, %v3908_v62  ;;  %v3964_v31 = vadd.f32 %v3963_v54, %v3255_v49 }
 0x5aa   :  { %v3923_v60 = vpop.f32.mrf.mxu1  ;;  %v3965_v14 = vpop.f32.mrf.mxu0 }
 0x5ab   :  { %v3924_v11 = vadd.f32 %v3923_v60, %v3910_v6  ;;  %v3966_v8 = vadd.f32 %v3965_v14, %v3255_v49 }
 0x5b2   :  { %v3977_v32 = vpop.f32.mrf.mxu1 }
 0x5b3   :  { %v3978_v15 = vadd.f32 %v3977_v32, %v3964_v31 }
 0x5b4   :  { %v4019_v23 = vpop.f32.mrf.mxu0 }
 0x5b5   :  { %v4020_v20 = vadd.f32 %v4019_v23, %v3256_v24 }
 0x5b8   :  { %v3935_v5 = vpop.f32.mrf.mxu2 }
 0x5b9   :  { %v3936_v4 = vadd.f32 %v3935_v5, %v3922_v3 }
 0x5ba   :  { %v3979_v16 = vpop.f32.mrf.mxu1 }
 0x5bb   :  { %v3980_v22 = vadd.f32 %v3979_v16, %v3966_v8 }
 0x5bc   :  { %v4021_v29 = vpop.f32.mrf.mxu0 }
 0x5bd   :  { %v4022_v35 = vadd.f32 %v4021_v29, %v3256_v24 }
 0x5c0   :  { %v3937_v63 = vpop.f32.mrf.mxu2 }
 0x5c1   :  { %v3938_v61 = vadd.f32 %v3937_v63, %v3924_v11 }
 0x5c2   :  { %v4033_v59 = vpop.f32.mrf.mxu1 }
 0x5c3   :  { %v4034_v0 = vadd.f32 %v4033_v59, %v4020_v20 }
 0x5c8   :  { %v3991_v12 = vpop.f32.mrf.mxu2 }
 0x5c9   :  { %v3992_v17 = vadd.f32 %v3991_v12, %v3978_v15 }
 0x5ca   :  { %v4035_v34 = vpop.f32.mrf.mxu1 }
 0x5cb   :  { %v4036_v40 = vadd.f32 %v4035_v34, %v4022_v35 }
 0x5d0   :  { %v3993_v19 = vpop.f32.mrf.mxu2 }
 0x5d1   :  { %v3994_v25 = vadd.f32 %v3993_v19, %v3980_v22 }
 0x5d2   :  { %v4075_v45 = vpop.f32.mrf.mxu0 }
 0x5d3   :  { %v4076_v52 = vadd.f32 %v4075_v45, %v3257_v46 }
 0x5d8   :  { %v3949_v44 = vpop.f32.mrf.mxu3 }
 0x5d9   :  { %v3950_v50 = vadd.f32 %v3949_v44, %v3936_v4 }
 0x5da   :  { %v4077_v1 = vpop.f32.mrf.mxu0 }
 0x5db   :  { %4122 = vst [vmem:[#allocation2] sm:$0xff] %v3950_v50  ;;  %v4047_v43 = vpop.f32.mrf.mxu2  ;;  %v4078_v55 = vadd.f32 %v4077_v1, %v3257_v46 }
 0x5dc   :  { %v4048_v28 = vadd.f32 %v4047_v43, %v4034_v0 }
 0x5e0   :  { %v3951_v27 = vpop.f32.mrf.mxu3 }
 0x5e1   :  { %v3952_v13 = vadd.f32 %v3951_v27, %v3938_v61 }
 0x5e2   :  { %v4089_v47 = vpop.f32.mrf.mxu1 }
 0x5e3   :  { %4126 = vst [vmem:[#allocation2 + $0x20] sm:$0xff] %v3952_v13  ;;  %v4049_v37 = vpop.f32.mrf.mxu2  ;;  %v4090_v58 = vadd.f32 %v4089_v47, %v4076_v52 }
 0x5e4   :  { %v4050_v18 = vadd.f32 %v4049_v37, %v4036_v40 }
 0x5e8   :  { %v4005_v21 = vpop.f32.mrf.mxu3 }
 0x5e9   :  { %v4006_v7 = vadd.f32 %v4005_v21, %v3992_v17 }
 0x5ea   :  { %v4091_v5 = vpop.f32.mrf.mxu1 }
 0x5eb   :  { %4123 = vst [vmem:[#allocation2 + $0x8] sm:$0xff] %v4006_v7  ;;  %v4092_v57 = vadd.f32 %v4091_v5, %v4078_v55 }
 0x5f0   :  { %v4007_v26 = vpop.f32.mrf.mxu3 }
 0x5f1   :  { %v4008_v53 = vadd.f32 %v4007_v26, %v3994_v25 }
 0x5f3   :  { %4127 = vst [vmem:[#allocation2 + $0x28] sm:$0xff] %v4008_v53 }
 0x5f8   :  { %v4061_v30 = vpop.f32.mrf.mxu3 }
 0x5f9   :  { %v4062_v33 = vadd.f32 %v4061_v30, %v4048_v28  ;;  %v4103_v51 = vpop.f32.mrf.mxu2 }
 0x5fa   :  { %v4104_v2 = vadd.f32 %v4103_v51, %v4090_v58 }
 0x5fb   :  { %4124 = vst [vmem:[#allocation2 + $0x10] sm:$0xff] %v4062_v33 }
 0x600   :  { %v4063_v38 = vpop.f32.mrf.mxu3 }
 0x601   :  { %v4064_v41 = vadd.f32 %v4063_v38, %v4050_v18  ;;  %v4105_v56 = vpop.f32.mrf.mxu2 }
 0x602   :  { %v4106_v36 = vadd.f32 %v4105_v56, %v4092_v57 }
 0x603   :  { %4128 = vst [vmem:[#allocation2 + $0x30] sm:$0xff] %v4064_v41 }
 0x618   :  { %v4117_v39 = vpop.f32.mrf.mxu3 }
 0x619   :  { %v4118_v48 = vadd.f32 %v4117_v39, %v4104_v2 }
 0x61b   :  { %4125 = vst [vmem:[#allocation2 + $0x18] sm:$0xff] %v4118_v48 }
 0x620   :  { %v4119_v60 = vpop.f32.mrf.mxu3 }
 0x621   :  { %v4120_v62 = vadd.f32 %v4119_v60, %v4106_v36 }
 0x623   :  { %4129 = vst [vmem:[#allocation2 + $0x38] sm:$0xff] %v4120_v62 }
 0x624   :  { %4142 = dma.vmem_to_hbm [thread:$0]  %s4135_s29, 1024, %s4137_s9, [#allocation3], %s6515_s10, %s6515_s10, %s6516_s5  }
 0x625   :  { %6511 = dma.done.wait [#allocation3], 1024  }
 0x626   :  { %6512 = vsyncadd [#allocation3], 4294966272 }
 0x627   :  { %4147 = vsyncpa [#allocation3], 1 }

</bundles_post_ra>
